<compile_context>
chip_gen: v7x
topology: tpu7x:2x2x1
jax: 0.10.0
libtpu: 0.0.40
codegen_flags: <defaults>
</compile_context>

<pallas_src>
import functools

import jax
import jax.numpy as jnp
from jax.experimental import pallas as pl
from jax.experimental.pallas import tpu as pltpu

NEG_INF = -1e9  # finite "minus infinity": exp underflows to exactly 0, rows stay NaN-free


# --------------------------------------------------------------------------------------
# Kernel: the full decoder stack. grid axis 0 == layer index; x lives in VMEM scratch.
# --------------------------------------------------------------------------------------
def decoder_kernel(
    mask_ref, pad_ref, tgt_ref,
    sa_qkv_w, sa_qkv_b, sa_wo, sa_ob,
    ca_qkv_w, ca_qkv_b, ca_wo, ca_ob,
    ln1_w, ln1_b, ln2_w, ln2_b, ln3_w, ln3_b,
    ff1_w, ff1_b, ff2_w, ff2_b,
    out_ref,
    x_scr,
    *, nhead,
):
    layer = pl.program_id(0)
    B, T, D = tgt_ref.shape
    N = B * T
    Dh = D // nhead

    # layer 0: load the input activations into the resident VMEM accumulator
    @pl.when(layer == 0)
    def _():
        x_scr[...] = tgt_ref[...].reshape(N, D)

    x = x_scr[...]                              # (N, D) running activations, f32
    mem = tgt_ref[...].reshape(N, D)            # cross-attention memory = original tgt

    # additive self-attention bias built in-kernel: (1,T,T) tgt_mask + (B,1,T) key-padding
    bias = mask_ref[0][None, :, :] + pad_ref[...]          # (B, T, T)

    def layer_norm(h, w_ref, b_ref):
        mu = jnp.mean(h, axis=-1, keepdims=True)
        var = jnp.mean(jnp.square(h - mu), axis=-1, keepdims=True)
        return (h - mu) * jax.lax.rsqrt(var + 1e-5) * w_ref[0] + b_ref[0]

    def mha(q_in, kv_in, qkv_w, qkv_b, wo, ob, attn_bias):
        # qkv_w: (1,3,H,D,Dh), qkv_b: (1,3,H,1,Dh), wo: (1,H,Dh,D), ob: (1,1,D)
        out = jnp.zeros((N, D), jnp.float32) + ob[0]
        for h in range(nhead):                         # static; per-head weights indexed on
            q = jnp.dot(q_in, qkv_w[0, 0, h],          # leading dims -> no lane slicing
                        preferred_element_type=jnp.float32) + qkv_b[0, 0, h]
            k = jnp.dot(kv_in, qkv_w[0, 1, h],
                        preferred_element_type=jnp.float32) + qkv_b[0, 1, h]
            v = jnp.dot(kv_in, qkv_w[0, 2, h],
                        preferred_element_type=jnp.float32) + qkv_b[0, 2, h]
            q3 = q.reshape(B, T, Dh)
            k3 = k.reshape(B, T, Dh)
            v3 = v.reshape(B, T, Dh)
            # softmax scale already folded into the Q projection host-side
            s = jnp.einsum('bqd,bkd->bqk', q3, k3,
                           preferred_element_type=jnp.float32)          # (B, T, T)
            if attn_bias is not None:
                s = s + attn_bias
            s = s - jnp.max(s, axis=-1, keepdims=True)
            p = jnp.exp(s)
            p = p * pl.reciprocal(jnp.sum(p, axis=-1, keepdims=True), approx=True)
            o = jnp.einsum('bqk,bkd->bqd', p, v3,
                           preferred_element_type=jnp.float32)          # (B, T, Dh)
            # concat-of-heads @ Wo  ==  sum_h  o_h @ Wo_h
            out = out + jnp.dot(o.reshape(N, Dh), wo[0, h],
                                preferred_element_type=jnp.float32)
        return out

    # --- self attention (masked) + residual + LN1 ---
    x = layer_norm(x + mha(x, x, sa_qkv_w, sa_qkv_b, sa_wo, sa_ob, bias), ln1_w, ln1_b)
    # --- cross attention over original tgt (no mask) + residual + LN2 ---
    x = layer_norm(x + mha(x, mem, ca_qkv_w, ca_qkv_b, ca_wo, ca_ob, None), ln2_w, ln2_b)
    # --- feed-forward + residual + LN3 (dropout identity in eval) ---
    h1 = jnp.maximum(
        jnp.dot(x, ff1_w[0], preferred_element_type=jnp.float32) + ff1_b[0], 0.0)
    ff = jnp.dot(h1, ff2_w[0], preferred_element_type=jnp.float32) + ff2_b[0]
    x = layer_norm(x + ff, ln3_w, ln3_b)

    x_scr[...] = x

    # single lane-contiguous writeback at the very end (output block index constant over grid)
    @pl.when(layer == pl.num_programs(0) - 1)
    def _():
        out_ref[...] = x.reshape(B, T, D).astype(out_ref.dtype)


# --------------------------------------------------------------------------------------
# Wrapper
# --------------------------------------------------------------------------------------
_WEIGHT_NAMES = [
    "sa_qkv_w", "sa_qkv_b", "sa_wo", "sa_ob",
    "ca_qkv_w", "ca_qkv_b", "ca_wo", "ca_ob",
    "ln1_w", "ln1_b", "ln2_w", "ln2_b", "ln3_w", "ln3_b",
    "ff1_w", "ff1_b", "ff2_w", "ff2_b",
]


def decoder_forward(tgt, tgt_mask, tgt_pad_mask, packed, nhead):
    """Full TransformerDecoder forward (memory = original tgt) as ONE fused Pallas kernel."""
    B, T, D = tgt.shape
    L = packed["sa_qkv_w"].shape[0]

    tgt = tgt.astype(jnp.float32)
    mask = tgt_mask.astype(jnp.float32).reshape(1, T, T)
    pad = jnp.where(tgt_pad_mask, NEG_INF, 0.0).astype(jnp.float32).reshape(B, 1, T)

    weights = [packed[n] for n in _WEIGHT_NAMES]

    act_specs = [
        pl.BlockSpec((1, T, T), lambda l: (0, 0, 0)),   # tgt_mask (shared, DMA'd once)
        pl.BlockSpec((B, 1, T), lambda l: (0, 0, 0)),   # key-padding bias
        pl.BlockSpec((B, T, D), lambda l: (0, 0, 0)),   # tgt (layer-0 init + cross-attn memory)
    ]
    w_specs = [
        pl.BlockSpec((1,) + w.shape[1:],
                     lambda l, _nz=w.ndim - 1: (l,) + (0,) * _nz)       # one layer per grid step
        for w in weights
    ]

    return pl.pallas_call(
        functools.partial(decoder_kernel, nhead=nhead),
        out_shape=jax.ShapeDtypeStruct((B, T, D), jnp.float32),
        grid=(L,),
        in_specs=act_specs + w_specs,
        out_specs=pl.BlockSpec((B, T, D), lambda l: (0, 0, 0)),
        scratch_shapes=[pltpu.VMEM((B * T, D), jnp.float32)],           # resident activations
        compiler_params=pltpu.CompilerParams(
            dimension_semantics=("arbitrary",),        # layer axis carries the activation
            vmem_limit_bytes=32 * 1024 * 1024,
        ),
    )(mask, pad, tgt, *weights)


# --------------------------------------------------------------------------------------
# Parameters: synthetic weights in PyTorch layout, then packed to the kernel layout.
# --------------------------------------------------------------------------------------
def init_torch_params(key, num_layers, d_model, nhead, d_ff):
    """Deterministic synthetic weights with nn.TransformerDecoderLayer shapes/names."""
    layers = []
    for i in range(num_layers):
        ks = jax.random.split(jax.random.fold_in(key, i), 8)
        r = lambda k, shape: (0.05 * jax.random.normal(k, shape)).astype(jnp.float32)
        zeros = lambda s: jnp.zeros(s, jnp.float32)
        ones = lambda s: jnp.ones(s, jnp.float32)
        layers.append({
            "self_attn.in_proj_weight": r(ks[0], (3 * d_model, d_model)),
            "self_attn.in_proj_bias": r(ks[1], (3 * d_model,)),
            "self_attn.out_proj.weight": r(ks[2], (d_model, d_model)),
            "self_attn.out_proj.bias": zeros((d_model,)),
            "multihead_attn.in_proj_weight": r(ks[3], (3 * d_model, d_model)),
            "multihead_attn.in_proj_bias": r(ks[4], (3 * d_model,)),
            "multihead_attn.out_proj.weight": r(ks[5], (d_model, d_model)),
            "multihead_attn.out_proj.bias": zeros((d_model,)),
            "linear1.weight": r(ks[6], (d_ff, d_model)), "linear1.bias": zeros((d_ff,)),
            "linear2.weight": r(ks[7], (d_model, d_ff)), "linear2.bias": zeros((d_model,)),
            "norm1.weight": ones((d_model,)), "norm1.bias": zeros((d_model,)),
            "norm2.weight": ones((d_model,)), "norm2.bias": zeros((d_model,)),
            "norm3.weight": ones((d_model,)), "norm3.bias": zeros((d_model,)),
        })
    return layers


def pack_params(layers, d_model, nhead):
    """torch layout -> layer-stacked, per-head kernel layout.

    torch MHA computes q = x @ Wq.T + bq with Wq = in_proj_weight[:D]. The kernel uses
    x @ wq with wq = Wq.T split per head along the output dim, and the 1/sqrt(Dh) softmax
    scale folded into the Q projection.
    """
    H, D = nhead, d_model
    Dh = D // H
    scale = 1.0 / float(Dh) ** 0.5

    def attn(prefix, p):
        w = p[prefix + ".in_proj_weight"]                        # (3D, D) = (out, in)
        b = p[prefix + ".in_proj_bias"]                          # (3D,)
        w3 = w.reshape(3, D, D).transpose(0, 2, 1)               # (3, D_in, D_out)  -> x @ w
        w3 = w3.reshape(3, D, H, Dh).transpose(0, 2, 1, 3)       # (3, H, D, Dh)
        b3 = b.reshape(3, H, 1, Dh)                              # (3, H, 1, Dh)
        w3 = w3.at[0].multiply(scale)                            # fold softmax scale into Q
        b3 = b3.at[0].multiply(scale)
        wo = p[prefix + ".out_proj.weight"].T.reshape(H, Dh, D)  # (H, Dh, D)
        ob = p[prefix + ".out_proj.bias"].reshape(1, D)
        return w3, b3, wo, ob

    stacked = {k: [] for k in _WEIGHT_NAMES}
    for p in layers:
        sw, sb, so, sob = attn("self_attn", p)
        cw, cb, co, cob = attn("multihead_attn", p)
        vals = {
            "sa_qkv_w": sw, "sa_qkv_b": sb, "sa_wo": so, "sa_ob": sob,
            "ca_qkv_w": cw, "ca_qkv_b": cb, "ca_wo": co, "ca_ob": cob,
            "ln1_w": p["norm1.weight"].reshape(1, D), "ln1_b": p["norm1.bias"].reshape(1, D),
            "ln2_w": p["norm2.weight"].reshape(1, D), "ln2_b": p["norm2.bias"].reshape(1, D),
            "ln3_w": p["norm3.weight"].reshape(1, D), "ln3_b": p["norm3.bias"].reshape(1, D),
            "ff1_w": p["linear1.weight"].T, "ff1_b": p["linear1.bias"].reshape(1, -1),
            "ff2_w": p["linear2.weight"].T, "ff2_b": p["linear2.bias"].reshape(1, D),
        }
        for k, v in vals.items():
            stacked[k].append(v)
    return {k: jnp.stack(v, axis=0) for k, v in stacked.items()}


# --------------------------------------------------------------------------------------
# Pure-JAX reference (mirrors nn.TransformerDecoder semantics) for a sanity check.
# --------------------------------------------------------------------------------------
def reference_decoder(tgt, tgt_mask, tgt_pad_mask, torch_layers, nhead):
    B, T, D = tgt.shape
    H = nhead
    Dh = D // H
    bias = tgt_mask[None, :, :] + jnp.where(tgt_pad_mask, NEG_INF, 0.0)[:, None, :]

    def ln(x, w, b):
        mu = x.mean(-1, keepdims=True)
        var = ((x - mu) ** 2).mean(-1, keepdims=True)
        return (x - mu) / jnp.sqrt(var + 1e-5) * w + b

    def mha(q_in, kv_in, wi, bi, wo, bo, attn_bias):
        q = q_in @ wi[:D].T + bi[:D]
        k = kv_in @ wi[D:2 * D].T + bi[D:2 * D]
        v = kv_in @ wi[2 * D:].T + bi[2 * D:]
        q = q.reshape(B, T, H, Dh).transpose(0, 2, 1, 3)
        k = k.reshape(B, T, H, Dh).transpose(0, 2, 1, 3)
        v = v.reshape(B, T, H, Dh).transpose(0, 2, 1, 3)
        s = jnp.einsum('bhqd,bhkd->bhqk', q, k) / jnp.sqrt(jnp.float32(Dh))
        if attn_bias is not None:
            s = s + attn_bias[:, None, :, :]
        p = jax.nn.softmax(s, axis=-1)
        o = jnp.einsum('bhqk,bhkd->bhqd', p, v).transpose(0, 2, 1, 3).reshape(B, T, D)
        return o @ wo.T + bo

    x = tgt
    mem = tgt
    for p in torch_layers:
        x = ln(x + mha(x, x, p["self_attn.in_proj_weight"], p["self_attn.in_proj_bias"],
                       p["self_attn.out_proj.weight"], p["self_attn.out_proj.bias"], bias),
               p["norm1.weight"], p["norm1.bias"])
        x = ln(x + mha(x, mem, p["multihead_attn.in_proj_weight"],
                       p["multihead_attn.in_proj_bias"],
                       p["multihead_attn.out_proj.weight"],
                       p["multihead_attn.out_proj.bias"], None),
               p["norm2.weight"], p["norm2.bias"])
        h = jax.nn.relu(x @ p["linear1.weight"].T + p["linear1.bias"])
        x = ln(x + h @ p["linear2.weight"].T + p["linear2.bias"],
               p["norm3.weight"], p["norm3.bias"])
    return x


if __name__ == "__main__":
    # small shapes consistent with the module
    B, T = 2, 8
    d_model, nhead, num_layers, d_ff, dropout = 32, 4, 2, 64, 0.1  # dropout unused (eval)

    key = jax.random.PRNGKey(0)
    k_tgt, k_par = jax.random.split(key)

    tgt = jax.random.normal(k_tgt, (B, T, d_model), jnp.float32)

    # causal mask (like nn.Transformer.generate_square_subsequent_mask), finite -inf
    causal = jnp.where(jnp.triu(jnp.ones((T, T), jnp.bool_), k=1), NEG_INF, 0.0)
    # padding mask: True = padded; pad the last 2 positions of batch element 1
    tgt_pad_mask = jnp.zeros((B, T), jnp.bool_).at[1, -2:].set(True)

    torch_layers = init_torch_params(k_par, num_layers, d_model, nhead, d_ff)
    packed = pack_params(torch_layers, d_model, nhead)

    out = decoder_forward(tgt, causal, tgt_pad_mask, packed, nhead)
    out = jax.block_until_ready(out)
    assert out.shape == (B, T, d_model)
    assert bool(jnp.all(jnp.isfinite(out)))

    ref = reference_decoder(tgt, causal, tgt_pad_mask, torch_layers, nhead)
    max_err = float(jnp.max(jnp.abs(out - ref)))
    assert max_err < 2e-2, f"kernel/reference mismatch: max abs err {max_err}"

    print("KERNEL_OK")
</pallas_src>

<mosaic_0001>
module attributes {stable_mosaic.version = 11 : i64} {
  func.func @decoder_kernel(%arg0: i32, %arg1: memref<1x8x8xf32, #tpu.memory_space<vmem>>, %arg2: memref<2x1x8xf32, #tpu.memory_space<vmem>>, %arg3: memref<2x8x32xf32, #tpu.memory_space<vmem>>, %arg4: memref<1x3x4x32x8xf32, #tpu.memory_space<vmem>>, %arg5: memref<1x3x4x1x8xf32, #tpu.memory_space<vmem>>, %arg6: memref<1x4x8x32xf32, #tpu.memory_space<vmem>>, %arg7: memref<1x1x32xf32, #tpu.memory_space<vmem>>, %arg8: memref<1x3x4x32x8xf32, #tpu.memory_space<vmem>>, %arg9: memref<1x3x4x1x8xf32, #tpu.memory_space<vmem>>, %arg10: memref<1x4x8x32xf32, #tpu.memory_space<vmem>>, %arg11: memref<1x1x32xf32, #tpu.memory_space<vmem>>, %arg12: memref<1x1x32xf32, #tpu.memory_space<vmem>>, %arg13: memref<1x1x32xf32, #tpu.memory_space<vmem>>, %arg14: memref<1x1x32xf32, #tpu.memory_space<vmem>>, %arg15: memref<1x1x32xf32, #tpu.memory_space<vmem>>, %arg16: memref<1x1x32xf32, #tpu.memory_space<vmem>>, %arg17: memref<1x1x32xf32, #tpu.memory_space<vmem>>, %arg18: memref<1x32x64xf32, #tpu.memory_space<vmem>>, %arg19: memref<1x1x64xf32, #tpu.memory_space<vmem>>, %arg20: memref<1x64x32xf32, #tpu.memory_space<vmem>>, %arg21: memref<1x1x32xf32, #tpu.memory_space<vmem>>, %arg22: memref<2x8x32xf32, #tpu.memory_space<vmem>>, %arg23: memref<16x32xf32, #tpu.memory_space<vmem>>) attributes {dimension_semantics = [#tpu.dimension_semantics<arbitrary>], iteration_bounds = array<i64: 2>, scalar_prefetch = 0 : i64, scratch_operands = 1 : i64, tpu.core_type = #tpu.core_type<tc>, window_params = [{pipeline_mode = #tpu.pipeline_mode<synchronous>, transform_indices = @transform_0, window_bounds = array<i64: 1, 8, 8>}, {pipeline_mode = #tpu.pipeline_mode<synchronous>, transform_indices = @transform_1, window_bounds = array<i64: 2, 1, 8>}, {pipeline_mode = #tpu.pipeline_mode<synchronous>, transform_indices = @transform_2, window_bounds = array<i64: 2, 8, 32>}, {transform_indices = @transform_3, window_bounds = array<i64: 1, 3, 4, 32, 8>}, {transform_indices = @transform_4, window_bounds = array<i64: 1, 3, 4, 1, 8>}, {transform_indices = @transform_5, window_bounds = array<i64: 1, 4, 8, 32>}, {transform_indices = @transform_6, window_bounds = array<i64: 1, 1, 32>}, {transform_indices = @transform_7, window_bounds = array<i64: 1, 3, 4, 32, 8>}, {transform_indices = @transform_8, window_bounds = array<i64: 1, 3, 4, 1, 8>}, {transform_indices = @transform_9, window_bounds = array<i64: 1, 4, 8, 32>}, {transform_indices = @transform_10, window_bounds = array<i64: 1, 1, 32>}, {transform_indices = @transform_11, window_bounds = array<i64: 1, 1, 32>}, {transform_indices = @transform_12, window_bounds = array<i64: 1, 1, 32>}, {transform_indices = @transform_13, window_bounds = array<i64: 1, 1, 32>}, {transform_indices = @transform_14, window_bounds = array<i64: 1, 1, 32>}, {transform_indices = @transform_15, window_bounds = array<i64: 1, 1, 32>}, {transform_indices = @transform_16, window_bounds = array<i64: 1, 1, 32>}, {transform_indices = @transform_17, window_bounds = array<i64: 1, 32, 64>}, {transform_indices = @transform_18, window_bounds = array<i64: 1, 1, 64>}, {transform_indices = @transform_19, window_bounds = array<i64: 1, 64, 32>}, {transform_indices = @transform_20, window_bounds = array<i64: 1, 1, 32>}, {pipeline_mode = #tpu.pipeline_mode<synchronous>, transform_indices = @transform_21, window_bounds = array<i64: 2, 8, 32>}]} {
    %c0_i32 = arith.constant 0 : i32
    %0 = arith.cmpi eq, %arg0, %c0_i32 : i32
    %1 = arith.extui %0 : i1 to i32
    %c0_i32_0 = arith.constant 0 : i32
    %2 = arith.cmpi ne, %1, %c0_i32_0 : i32
    scf.if %2 {
      %c0_402 = arith.constant 0 : index
      %c0_403 = arith.constant 0 : index
      %c0_404 = arith.constant 0 : index
      %456 = vector.load %arg3[%c0_402, %c0_403, %c0_404] : memref<2x8x32xf32, #tpu.memory_space<vmem>>, vector<2x8x32xf32>
      %457 = vector.shape_cast %456 : vector<2x8x32xf32> to vector<16x32xf32>
      %c0_405 = arith.constant 0 : index
      %c0_406 = arith.constant 0 : index
      %458 = vector.load %arg23[%c0_405, %c0_406] : memref<16x32xf32, #tpu.memory_space<vmem>>, vector<16x32xf32>
      tpu.vector_store %arg23[%c0_405, %c0_406], %457 {strides = array<i32>} : memref<16x32xf32, #tpu.memory_space<vmem>>, vector<16x32xf32>,
    } else {
    }
    %c0 = arith.constant 0 : index
    %c0_1 = arith.constant 0 : index
    %3 = vector.load %arg23[%c0, %c0_1] : memref<16x32xf32, #tpu.memory_space<vmem>>, vector<16x32xf32>
    %c0_2 = arith.constant 0 : index
    %c0_3 = arith.constant 0 : index
    %c0_4 = arith.constant 0 : index
    %4 = vector.load %arg3[%c0_2, %c0_3, %c0_4] : memref<2x8x32xf32, #tpu.memory_space<vmem>>, vector<2x8x32xf32>
    %5 = vector.shape_cast %4 : vector<2x8x32xf32> to vector<16x32xf32>
    %c0_5 = arith.constant 0 : index
    %c0_6 = arith.constant 0 : index
    %c0_7 = arith.constant 0 : index
    %6 = vector.load %arg1[%c0_5, %c0_6, %c0_7] : memref<1x8x8xf32, #tpu.memory_space<vmem>>, vector<1x8x8xf32>
    %7 = vector.shape_cast %6 : vector<1x8x8xf32> to vector<8x8xf32>
    %8 = vector.shape_cast %7 : vector<8x8xf32> to vector<1x8x8xf32>
    %c0_8 = arith.constant 0 : index
    %c0_9 = arith.constant 0 : index
    %c0_10 = arith.constant 0 : index
    %9 = vector.load %arg2[%c0_8, %c0_9, %c0_10] : memref<2x1x8xf32, #tpu.memory_space<vmem>>, vector<2x1x8xf32>
    %10 = vector.broadcast %8 : vector<1x8x8xf32> to vector<2x8x8xf32>
    %11 = vector.broadcast %9 : vector<2x1x8xf32> to vector<2x8x8xf32>
    %12 = arith.addf %10, %11 : vector<2x8x8xf32>
    %cst = arith.constant 0.000000e+00 : f32
    %13 = vector.broadcast %cst : f32 to vector<16x32xf32>
    %c0_11 = arith.constant 0 : index
    %c0_12 = arith.constant 0 : index
    %c0_13 = arith.constant 0 : index
    %14 = vector.load %arg7[%c0_11, %c0_12, %c0_13] : memref<1x1x32xf32, #tpu.memory_space<vmem>>, vector<1x1x32xf32>
    %15 = vector.shape_cast %14 : vector<1x1x32xf32> to vector<1x32xf32>
    %16 = vector.broadcast %15 : vector<1x32xf32> to vector<16x32xf32>
    %17 = arith.addf %13, %16 : vector<16x32xf32>
    %c0_14 = arith.constant 0 : index
    %c0_15 = arith.constant 0 : index
    %c0_16 = arith.constant 0 : index
    %c0_17 = arith.constant 0 : index
    %c0_18 = arith.constant 0 : index
    %18 = vector.load %arg4[%c0_14, %c0_15, %c0_16, %c0_17, %c0_18] : memref<1x3x4x32x8xf32, #tpu.memory_space<vmem>>, vector<1x1x1x32x8xf32>
    %19 = vector.shape_cast %18 : vector<1x1x1x32x8xf32> to vector<32x8xf32>
    %cst_19 = arith.constant dense<0.000000e+00> : vector<16x8xf32>
    %20 = tpu.matmul %3, %19, %cst_19 {dimension_numbers = #tpu.dot_dimension_numbers<[1], [0], [0], [1], [0, 0, 1, 1], [], []>} : vector<16x32xf32>, vector<32x8xf32>, vector<16x8xf32> -> vector<16x8xf32>
    %c0_20 = arith.constant 0 : index
    %c0_21 = arith.constant 0 : index
    %c0_22 = arith.constant 0 : index
    %c0_23 = arith.constant 0 : index
    %c0_24 = arith.constant 0 : index
    %21 = vector.load %arg5[%c0_20, %c0_21, %c0_22, %c0_23, %c0_24] : memref<1x3x4x1x8xf32, #tpu.memory_space<vmem>>, vector<1x1x1x1x8xf32>
    %22 = vector.shape_cast %21 : vector<1x1x1x1x8xf32> to vector<1x8xf32>
    %23 = vector.broadcast %22 : vector<1x8xf32> to vector<16x8xf32>
    %24 = arith.addf %20, %23 : vector<16x8xf32>
    %c0_25 = arith.constant 0 : index
    %c1 = arith.constant 1 : index
    %c0_26 = arith.constant 0 : index
    %c0_27 = arith.constant 0 : index
    %c0_28 = arith.constant 0 : index
    %25 = vector.load %arg4[%c0_25, %c1, %c0_26, %c0_27, %c0_28] : memref<1x3x4x32x8xf32, #tpu.memory_space<vmem>>, vector<1x1x1x32x8xf32>
    %26 = vector.shape_cast %25 : vector<1x1x1x32x8xf32> to vector<32x8xf32>
    %cst_29 = arith.constant dense<0.000000e+00> : vector<16x8xf32>
    %27 = tpu.matmul %3, %26, %cst_29 {dimension_numbers = #tpu.dot_dimension_numbers<[1], [0], [0], [1], [0, 0, 1, 1], [], []>} : vector<16x32xf32>, vector<32x8xf32>, vector<16x8xf32> -> vector<16x8xf32>
    %c0_30 = arith.constant 0 : index
    %c1_31 = arith.constant 1 : index
    %c0_32 = arith.constant 0 : index
    %c0_33 = arith.constant 0 : index
    %c0_34 = arith.constant 0 : index
    %28 = vector.load %arg5[%c0_30, %c1_31, %c0_32, %c0_33, %c0_34] : memref<1x3x4x1x8xf32, #tpu.memory_space<vmem>>, vector<1x1x1x1x8xf32>
    %29 = vector.shape_cast %28 : vector<1x1x1x1x8xf32> to vector<1x8xf32>
    %30 = vector.broadcast %29 : vector<1x8xf32> to vector<16x8xf32>
    %31 = arith.addf %27, %30 : vector<16x8xf32>
    %c0_35 = arith.constant 0 : index
    %c2 = arith.constant 2 : index
    %c0_36 = arith.constant 0 : index
    %c0_37 = arith.constant 0 : index
    %c0_38 = arith.constant 0 : index
    %32 = vector.load %arg4[%c0_35, %c2, %c0_36, %c0_37, %c0_38] : memref<1x3x4x32x8xf32, #tpu.memory_space<vmem>>, vector<1x1x1x32x8xf32>
    %33 = vector.shape_cast %32 : vector<1x1x1x32x8xf32> to vector<32x8xf32>
    %cst_39 = arith.constant dense<0.000000e+00> : vector<16x8xf32>
    %34 = tpu.matmul %3, %33, %cst_39 {dimension_numbers = #tpu.dot_dimension_numbers<[1], [0], [0], [1], [0, 0, 1, 1], [], []>} : vector<16x32xf32>, vector<32x8xf32>, vector<16x8xf32> -> vector<16x8xf32>
    %c0_40 = arith.constant 0 : index
    %c2_41 = arith.constant 2 : index
    %c0_42 = arith.constant 0 : index
    %c0_43 = arith.constant 0 : index
    %c0_44 = arith.constant 0 : index
    %35 = vector.load %arg5[%c0_40, %c2_41, %c0_42, %c0_43, %c0_44] : memref<1x3x4x1x8xf32, #tpu.memory_space<vmem>>, vector<1x1x1x1x8xf32>
    %36 = vector.shape_cast %35 : vector<1x1x1x1x8xf32> to vector<1x8xf32>
    %37 = vector.broadcast %36 : vector<1x8xf32> to vector<16x8xf32>
    %38 = arith.addf %34, %37 : vector<16x8xf32>
    %39 = vector.shape_cast %24 : vector<16x8xf32> to vector<2x8x8xf32>
    %40 = vector.shape_cast %31 : vector<16x8xf32> to vector<2x8x8xf32>
    %41 = vector.shape_cast %38 : vector<16x8xf32> to vector<2x8x8xf32>
    "tpu.trace_start"() <{level = 10 : i32, message = "bqd,bkd->bqk"}> : () -> ()
    %cst_45 = arith.constant dense<0.000000e+00> : vector<2x8x8xf32>
    %42 = tpu.matmul %39, %40, %cst_45 {dimension_numbers = #tpu.dot_dimension_numbers<[2], [2], [1], [1], [0, 0, 0, 1, 1, 1], [0], [0]>} : vector<2x8x8xf32>, vector<2x8x8xf32>, vector<2x8x8xf32> -> vector<2x8x8xf32>
    "tpu.trace_stop"() : () -> ()
    %43 = arith.addf %42, %12 : vector<2x8x8xf32>
    %cst_46 = arith.constant dense<0xFF800000> : vector<2x8xf32>
    %44 = vector.multi_reduction <maximumf>, %43, %cst_46 [2] : vector<2x8x8xf32> to vector<2x8xf32>
    %45 = vector.shape_cast %44 : vector<2x8xf32> to vector<2x8x1xf32>
    %46 = vector.broadcast %45 : vector<2x8x1xf32> to vector<2x8x8xf32>
    %47 = arith.subf %43, %46 : vector<2x8x8xf32>
    %48 = math.exp %47 : vector<2x8x8xf32>
    %cst_47 = arith.constant dense<0.000000e+00> : vector<2x8xf32>
    %49 = vector.multi_reduction <add>, %48, %cst_47 [2] : vector<2x8x8xf32> to vector<2x8xf32>
    %50 = vector.shape_cast %49 : vector<2x8xf32> to vector<2x8x1xf32>
    %51 = tpu.reciprocal %50 {approx = true} : vector<2x8x1xf32> -> vector<2x8x1xf32>
    %52 = vector.broadcast %51 : vector<2x8x1xf32> to vector<2x8x8xf32>
    %53 = arith.mulf %48, %52 : vector<2x8x8xf32>
    "tpu.trace_start"() <{level = 10 : i32, message = "bqk,bkd->bqd"}> : () -> ()
    %cst_48 = arith.constant dense<0.000000e+00> : vector<2x8x8xf32>
    %54 = tpu.matmul %53, %41, %cst_48 {dimension_numbers = #tpu.dot_dimension_numbers<[2], [1], [1], [2], [0, 0, 0, 1, 1, 2], [0], [0]>} : vector<2x8x8xf32>, vector<2x8x8xf32>, vector<2x8x8xf32> -> vector<2x8x8xf32>
    "tpu.trace_stop"() : () -> ()
    %55 = vector.shape_cast %54 : vector<2x8x8xf32> to vector<16x8xf32>
    %c0_49 = arith.constant 0 : index
    %c0_50 = arith.constant 0 : index
    %c0_51 = arith.constant 0 : index
    %c0_52 = arith.constant 0 : index
    %56 = vector.load %arg6[%c0_49, %c0_50, %c0_51, %c0_52] : memref<1x4x8x32xf32, #tpu.memory_space<vmem>>, vector<1x1x8x32xf32>
    %57 = vector.shape_cast %56 : vector<1x1x8x32xf32> to vector<8x32xf32>
    %cst_53 = arith.constant dense<0.000000e+00> : vector<16x32xf32>
    %58 = tpu.matmul %55, %57, %cst_53 {dimension_numbers = #tpu.dot_dimension_numbers<[1], [0], [0], [1], [0, 0, 1, 1], [], []>} : vector<16x8xf32>, vector<8x32xf32>, vector<16x32xf32> -> vector<16x32xf32>
    %59 = arith.addf %17, %58 : vector<16x32xf32>
    %c0_54 = arith.constant 0 : index
    %c0_55 = arith.constant 0 : index
    %c1_56 = arith.constant 1 : index
    %c0_57 = arith.constant 0 : index
    %c0_58 = arith.constant 0 : index
    %60 = vector.load %arg4[%c0_54, %c0_55, %c1_56, %c0_57, %c0_58] : memref<1x3x4x32x8xf32, #tpu.memory_space<vmem>>, vector<1x1x1x32x8xf32>
    %61 = vector.shape_cast %60 : vector<1x1x1x32x8xf32> to vector<32x8xf32>
    %cst_59 = arith.constant dense<0.000000e+00> : vector<16x8xf32>
    %62 = tpu.matmul %3, %61, %cst_59 {dimension_numbers = #tpu.dot_dimension_numbers<[1], [0], [0], [1], [0, 0, 1, 1], [], []>} : vector<16x32xf32>, vector<32x8xf32>, vector<16x8xf32> -> vector<16x8xf32>
    %c0_60 = arith.constant 0 : index
    %c0_61 = arith.constant 0 : index
    %c1_62 = arith.constant 1 : index
    %c0_63 = arith.constant 0 : index
    %c0_64 = arith.constant 0 : index
    %63 = vector.load %arg5[%c0_60, %c0_61, %c1_62, %c0_63, %c0_64] : memref<1x3x4x1x8xf32, #tpu.memory_space<vmem>>, vector<1x1x1x1x8xf32>
    %64 = vector.shape_cast %63 : vector<1x1x1x1x8xf32> to vector<1x8xf32>
    %65 = vector.broadcast %64 : vector<1x8xf32> to vector<16x8xf32>
    %66 = arith.addf %62, %65 : vector<16x8xf32>
    %c0_65 = arith.constant 0 : index
    %c1_66 = arith.constant 1 : index
    %c1_67 = arith.constant 1 : index
    %c0_68 = arith.constant 0 : index
    %c0_69 = arith.constant 0 : index
    %67 = vector.load %arg4[%c0_65, %c1_66, %c1_67, %c0_68, %c0_69] : memref<1x3x4x32x8xf32, #tpu.memory_space<vmem>>, vector<1x1x1x32x8xf32>
    %68 = vector.shape_cast %67 : vector<1x1x1x32x8xf32> to vector<32x8xf32>
    %cst_70 = arith.constant dense<0.000000e+00> : vector<16x8xf32>
    %69 = tpu.matmul %3, %68, %cst_70 {dimension_numbers = #tpu.dot_dimension_numbers<[1], [0], [0], [1], [0, 0, 1, 1], [], []>} : vector<16x32xf32>, vector<32x8xf32>, vector<16x8xf32> -> vector<16x8xf32>
    %c0_71 = arith.constant 0 : index
    %c1_72 = arith.constant 1 : index
    %c1_73 = arith.constant 1 : index
    %c0_74 = arith.constant 0 : index
    %c0_75 = arith.constant 0 : index
    %70 = vector.load %arg5[%c0_71, %c1_72, %c1_73, %c0_74, %c0_75] : memref<1x3x4x1x8xf32, #tpu.memory_space<vmem>>, vector<1x1x1x1x8xf32>
    %71 = vector.shape_cast %70 : vector<1x1x1x1x8xf32> to vector<1x8xf32>
    %72 = vector.broadcast %71 : vector<1x8xf32> to vector<16x8xf32>
    %73 = arith.addf %69, %72 : vector<16x8xf32>
    %c0_76 = arith.constant 0 : index
    %c2_77 = arith.constant 2 : index
    %c1_78 = arith.constant 1 : index
    %c0_79 = arith.constant 0 : index
    %c0_80 = arith.constant 0 : index
    %74 = vector.load %arg4[%c0_76, %c2_77, %c1_78, %c0_79, %c0_80] : memref<1x3x4x32x8xf32, #tpu.memory_space<vmem>>, vector<1x1x1x32x8xf32>
    %75 = vector.shape_cast %74 : vector<1x1x1x32x8xf32> to vector<32x8xf32>
    %cst_81 = arith.constant dense<0.000000e+00> : vector<16x8xf32>
    %76 = tpu.matmul %3, %75, %cst_81 {dimension_numbers = #tpu.dot_dimension_numbers<[1], [0], [0], [1], [0, 0, 1, 1], [], []>} : vector<16x32xf32>, vector<32x8xf32>, vector<16x8xf32> -> vector<16x8xf32>
    %c0_82 = arith.constant 0 : index
    %c2_83 = arith.constant 2 : index
    %c1_84 = arith.constant 1 : index
    %c0_85 = arith.constant 0 : index
    %c0_86 = arith.constant 0 : index
    %77 = vector.load %arg5[%c0_82, %c2_83, %c1_84, %c0_85, %c0_86] : memref<1x3x4x1x8xf32, #tpu.memory_space<vmem>>, vector<1x1x1x1x8xf32>
    %78 = vector.shape_cast %77 : vector<1x1x1x1x8xf32> to vector<1x8xf32>
    %79 = vector.broadcast %78 : vector<1x8xf32> to vector<16x8xf32>
    %80 = arith.addf %76, %79 : vector<16x8xf32>
    %81 = vector.shape_cast %66 : vector<16x8xf32> to vector<2x8x8xf32>
    %82 = vector.shape_cast %73 : vector<16x8xf32> to vector<2x8x8xf32>
    %83 = vector.shape_cast %80 : vector<16x8xf32> to vector<2x8x8xf32>
    "tpu.trace_start"() <{level = 10 : i32, message = "bqd,bkd->bqk"}> : () -> ()
    %cst_87 = arith.constant dense<0.000000e+00> : vector<2x8x8xf32>
    %84 = tpu.matmul %81, %82, %cst_87 {dimension_numbers = #tpu.dot_dimension_numbers<[2], [2], [1], [1], [0, 0, 0, 1, 1, 1], [0], [0]>} : vector<2x8x8xf32>, vector<2x8x8xf32>, vector<2x8x8xf32> -> vector<2x8x8xf32>
    "tpu.trace_stop"() : () -> ()
    %85 = arith.addf %84, %12 : vector<2x8x8xf32>
    %cst_88 = arith.constant dense<0xFF800000> : vector<2x8xf32>
    %86 = vector.multi_reduction <maximumf>, %85, %cst_88 [2] : vector<2x8x8xf32> to vector<2x8xf32>
    %87 = vector.shape_cast %86 : vector<2x8xf32> to vector<2x8x1xf32>
    %88 = vector.broadcast %87 : vector<2x8x1xf32> to vector<2x8x8xf32>
    %89 = arith.subf %85, %88 : vector<2x8x8xf32>
    %90 = math.exp %89 : vector<2x8x8xf32>
    %cst_89 = arith.constant dense<0.000000e+00> : vector<2x8xf32>
    %91 = vector.multi_reduction <add>, %90, %cst_89 [2] : vector<2x8x8xf32> to vector<2x8xf32>
    %92 = vector.shape_cast %91 : vector<2x8xf32> to vector<2x8x1xf32>
    %93 = tpu.reciprocal %92 {approx = true} : vector<2x8x1xf32> -> vector<2x8x1xf32>
    %94 = vector.broadcast %93 : vector<2x8x1xf32> to vector<2x8x8xf32>
    %95 = arith.mulf %90, %94 : vector<2x8x8xf32>
    "tpu.trace_start"() <{level = 10 : i32, message = "bqk,bkd->bqd"}> : () -> ()
    %cst_90 = arith.constant dense<0.000000e+00> : vector<2x8x8xf32>
    %96 = tpu.matmul %95, %83, %cst_90 {dimension_numbers = #tpu.dot_dimension_numbers<[2], [1], [1], [2], [0, 0, 0, 1, 1, 2], [0], [0]>} : vector<2x8x8xf32>, vector<2x8x8xf32>, vector<2x8x8xf32> -> vector<2x8x8xf32>
    "tpu.trace_stop"() : () -> ()
    %97 = vector.shape_cast %96 : vector<2x8x8xf32> to vector<16x8xf32>
    %c0_91 = arith.constant 0 : index
    %c1_92 = arith.constant 1 : index
    %c0_93 = arith.constant 0 : index
    %c0_94 = arith.constant 0 : index
    %98 = vector.load %arg6[%c0_91, %c1_92, %c0_93, %c0_94] : memref<1x4x8x32xf32, #tpu.memory_space<vmem>>, vector<1x1x8x32xf32>
    %99 = vector.shape_cast %98 : vector<1x1x8x32xf32> to vector<8x32xf32>
    %cst_95 = arith.constant dense<0.000000e+00> : vector<16x32xf32>
    %100 = tpu.matmul %97, %99, %cst_95 {dimension_numbers = #tpu.dot_dimension_numbers<[1], [0], [0], [1], [0, 0, 1, 1], [], []>} : vector<16x8xf32>, vector<8x32xf32>, vector<16x32xf32> -> vector<16x32xf32>
    %101 = arith.addf %59, %100 : vector<16x32xf32>
    %c0_96 = arith.constant 0 : index
    %c0_97 = arith.constant 0 : index
    %c2_98 = arith.constant 2 : index
    %c0_99 = arith.constant 0 : index
    %c0_100 = arith.constant 0 : index
    %102 = vector.load %arg4[%c0_96, %c0_97, %c2_98, %c0_99, %c0_100] : memref<1x3x4x32x8xf32, #tpu.memory_space<vmem>>, vector<1x1x1x32x8xf32>
    %103 = vector.shape_cast %102 : vector<1x1x1x32x8xf32> to vector<32x8xf32>
    %cst_101 = arith.constant dense<0.000000e+00> : vector<16x8xf32>
    %104 = tpu.matmul %3, %103, %cst_101 {dimension_numbers = #tpu.dot_dimension_numbers<[1], [0], [0], [1], [0, 0, 1, 1], [], []>} : vector<16x32xf32>, vector<32x8xf32>, vector<16x8xf32> -> vector<16x8xf32>
    %c0_102 = arith.constant 0 : index
    %c0_103 = arith.constant 0 : index
    %c2_104 = arith.constant 2 : index
    %c0_105 = arith.constant 0 : index
    %c0_106 = arith.constant 0 : index
    %105 = vector.load %arg5[%c0_102, %c0_103, %c2_104, %c0_105, %c0_106] : memref<1x3x4x1x8xf32, #tpu.memory_space<vmem>>, vector<1x1x1x1x8xf32>
    %106 = vector.shape_cast %105 : vector<1x1x1x1x8xf32> to vector<1x8xf32>
    %107 = vector.broadcast %106 : vector<1x8xf32> to vector<16x8xf32>
    %108 = arith.addf %104, %107 : vector<16x8xf32>
    %c0_107 = arith.constant 0 : index
    %c1_108 = arith.constant 1 : index
    %c2_109 = arith.constant 2 : index
    %c0_110 = arith.constant 0 : index
    %c0_111 = arith.constant 0 : index
    %109 = vector.load %arg4[%c0_107, %c1_108, %c2_109, %c0_110, %c0_111] : memref<1x3x4x32x8xf32, #tpu.memory_space<vmem>>, vector<1x1x1x32x8xf32>
    %110 = vector.shape_cast %109 : vector<1x1x1x32x8xf32> to vector<32x8xf32>
    %cst_112 = arith.constant dense<0.000000e+00> : vector<16x8xf32>
    %111 = tpu.matmul %3, %110, %cst_112 {dimension_numbers = #tpu.dot_dimension_numbers<[1], [0], [0], [1], [0, 0, 1, 1], [], []>} : vector<16x32xf32>, vector<32x8xf32>, vector<16x8xf32> -> vector<16x8xf32>
    %c0_113 = arith.constant 0 : index
    %c1_114 = arith.constant 1 : index
    %c2_115 = arith.constant 2 : index
    %c0_116 = arith.constant 0 : index
    %c0_117 = arith.constant 0 : index
    %112 = vector.load %arg5[%c0_113, %c1_114, %c2_115, %c0_116, %c0_117] : memref<1x3x4x1x8xf32, #tpu.memory_space<vmem>>, vector<1x1x1x1x8xf32>
    %113 = vector.shape_cast %112 : vector<1x1x1x1x8xf32> to vector<1x8xf32>
    %114 = vector.broadcast %113 : vector<1x8xf32> to vector<16x8xf32>
    %115 = arith.addf %111, %114 : vector<16x8xf32>
    %c0_118 = arith.constant 0 : index
    %c2_119 = arith.constant 2 : index
    %c2_120 = arith.constant 2 : index
    %c0_121 = arith.constant 0 : index
    %c0_122 = arith.constant 0 : index
    %116 = vector.load %arg4[%c0_118, %c2_119, %c2_120, %c0_121, %c0_122] : memref<1x3x4x32x8xf32, #tpu.memory_space<vmem>>, vector<1x1x1x32x8xf32>
    %117 = vector.shape_cast %116 : vector<1x1x1x32x8xf32> to vector<32x8xf32>
    %cst_123 = arith.constant dense<0.000000e+00> : vector<16x8xf32>
    %118 = tpu.matmul %3, %117, %cst_123 {dimension_numbers = #tpu.dot_dimension_numbers<[1], [0], [0], [1], [0, 0, 1, 1], [], []>} : vector<16x32xf32>, vector<32x8xf32>, vector<16x8xf32> -> vector<16x8xf32>
    %c0_124 = arith.constant 0 : index
    %c2_125 = arith.constant 2 : index
    %c2_126 = arith.constant 2 : index
    %c0_127 = arith.constant 0 : index
    %c0_128 = arith.constant 0 : index
    %119 = vector.load %arg5[%c0_124, %c2_125, %c2_126, %c0_127, %c0_128] : memref<1x3x4x1x8xf32, #tpu.memory_space<vmem>>, vector<1x1x1x1x8xf32>
    %120 = vector.shape_cast %119 : vector<1x1x1x1x8xf32> to vector<1x8xf32>
    %121 = vector.broadcast %120 : vector<1x8xf32> to vector<16x8xf32>
    %122 = arith.addf %118, %121 : vector<16x8xf32>
    %123 = vector.shape_cast %108 : vector<16x8xf32> to vector<2x8x8xf32>
    %124 = vector.shape_cast %115 : vector<16x8xf32> to vector<2x8x8xf32>
    %125 = vector.shape_cast %122 : vector<16x8xf32> to vector<2x8x8xf32>
    "tpu.trace_start"() <{level = 10 : i32, message = "bqd,bkd->bqk"}> : () -> ()
    %cst_129 = arith.constant dense<0.000000e+00> : vector<2x8x8xf32>
    %126 = tpu.matmul %123, %124, %cst_129 {dimension_numbers = #tpu.dot_dimension_numbers<[2], [2], [1], [1], [0, 0, 0, 1, 1, 1], [0], [0]>} : vector<2x8x8xf32>, vector<2x8x8xf32>, vector<2x8x8xf32> -> vector<2x8x8xf32>
    "tpu.trace_stop"() : () -> ()
    %127 = arith.addf %126, %12 : vector<2x8x8xf32>
    %cst_130 = arith.constant dense<0xFF800000> : vector<2x8xf32>
    %128 = vector.multi_reduction <maximumf>, %127, %cst_130 [2] : vector<2x8x8xf32> to vector<2x8xf32>
    %129 = vector.shape_cast %128 : vector<2x8xf32> to vector<2x8x1xf32>
    %130 = vector.broadcast %129 : vector<2x8x1xf32> to vector<2x8x8xf32>
    %131 = arith.subf %127, %130 : vector<2x8x8xf32>
    %132 = math.exp %131 : vector<2x8x8xf32>
    %cst_131 = arith.constant dense<0.000000e+00> : vector<2x8xf32>
    %133 = vector.multi_reduction <add>, %132, %cst_131 [2] : vector<2x8x8xf32> to vector<2x8xf32>
    %134 = vector.shape_cast %133 : vector<2x8xf32> to vector<2x8x1xf32>
    %135 = tpu.reciprocal %134 {approx = true} : vector<2x8x1xf32> -> vector<2x8x1xf32>
    %136 = vector.broadcast %135 : vector<2x8x1xf32> to vector<2x8x8xf32>
    %137 = arith.mulf %132, %136 : vector<2x8x8xf32>
    "tpu.trace_start"() <{level = 10 : i32, message = "bqk,bkd->bqd"}> : () -> ()
    %cst_132 = arith.constant dense<0.000000e+00> : vector<2x8x8xf32>
    %138 = tpu.matmul %137, %125, %cst_132 {dimension_numbers = #tpu.dot_dimension_numbers<[2], [1], [1], [2], [0, 0, 0, 1, 1, 2], [0], [0]>} : vector<2x8x8xf32>, vector<2x8x8xf32>, vector<2x8x8xf32> -> vector<2x8x8xf32>
    "tpu.trace_stop"() : () -> ()
    %139 = vector.shape_cast %138 : vector<2x8x8xf32> to vector<16x8xf32>
    %c0_133 = arith.constant 0 : index
    %c2_134 = arith.constant 2 : index
    %c0_135 = arith.constant 0 : index
    %c0_136 = arith.constant 0 : index
    %140 = vector.load %arg6[%c0_133, %c2_134, %c0_135, %c0_136] : memref<1x4x8x32xf32, #tpu.memory_space<vmem>>, vector<1x1x8x32xf32>
    %141 = vector.shape_cast %140 : vector<1x1x8x32xf32> to vector<8x32xf32>
    %cst_137 = arith.constant dense<0.000000e+00> : vector<16x32xf32>
    %142 = tpu.matmul %139, %141, %cst_137 {dimension_numbers = #tpu.dot_dimension_numbers<[1], [0], [0], [1], [0, 0, 1, 1], [], []>} : vector<16x8xf32>, vector<8x32xf32>, vector<16x32xf32> -> vector<16x32xf32>
    %143 = arith.addf %101, %142 : vector<16x32xf32>
    %c0_138 = arith.constant 0 : index
    %c0_139 = arith.constant 0 : index
    %c3 = arith.constant 3 : index
    %c0_140 = arith.constant 0 : index
    %c0_141 = arith.constant 0 : index
    %144 = vector.load %arg4[%c0_138, %c0_139, %c3, %c0_140, %c0_141] : memref<1x3x4x32x8xf32, #tpu.memory_space<vmem>>, vector<1x1x1x32x8xf32>
    %145 = vector.shape_cast %144 : vector<1x1x1x32x8xf32> to vector<32x8xf32>
    %cst_142 = arith.constant dense<0.000000e+00> : vector<16x8xf32>
    %146 = tpu.matmul %3, %145, %cst_142 {dimension_numbers = #tpu.dot_dimension_numbers<[1], [0], [0], [1], [0, 0, 1, 1], [], []>} : vector<16x32xf32>, vector<32x8xf32>, vector<16x8xf32> -> vector<16x8xf32>
    %c0_143 = arith.constant 0 : index
    %c0_144 = arith.constant 0 : index
    %c3_145 = arith.constant 3 : index
    %c0_146 = arith.constant 0 : index
    %c0_147 = arith.constant 0 : index
    %147 = vector.load %arg5[%c0_143, %c0_144, %c3_145, %c0_146, %c0_147] : memref<1x3x4x1x8xf32, #tpu.memory_space<vmem>>, vector<1x1x1x1x8xf32>
    %148 = vector.shape_cast %147 : vector<1x1x1x1x8xf32> to vector<1x8xf32>
    %149 = vector.broadcast %148 : vector<1x8xf32> to vector<16x8xf32>
    %150 = arith.addf %146, %149 : vector<16x8xf32>
    %c0_148 = arith.constant 0 : index
    %c1_149 = arith.constant 1 : index
    %c3_150 = arith.constant 3 : index
    %c0_151 = arith.constant 0 : index
    %c0_152 = arith.constant 0 : index
    %151 = vector.load %arg4[%c0_148, %c1_149, %c3_150, %c0_151, %c0_152] : memref<1x3x4x32x8xf32, #tpu.memory_space<vmem>>, vector<1x1x1x32x8xf32>
    %152 = vector.shape_cast %151 : vector<1x1x1x32x8xf32> to vector<32x8xf32>
    %cst_153 = arith.constant dense<0.000000e+00> : vector<16x8xf32>
    %153 = tpu.matmul %3, %152, %cst_153 {dimension_numbers = #tpu.dot_dimension_numbers<[1], [0], [0], [1], [0, 0, 1, 1], [], []>} : vector<16x32xf32>, vector<32x8xf32>, vector<16x8xf32> -> vector<16x8xf32>
    %c0_154 = arith.constant 0 : index
    %c1_155 = arith.constant 1 : index
    %c3_156 = arith.constant 3 : index
    %c0_157 = arith.constant 0 : index
    %c0_158 = arith.constant 0 : index
    %154 = vector.load %arg5[%c0_154, %c1_155, %c3_156, %c0_157, %c0_158] : memref<1x3x4x1x8xf32, #tpu.memory_space<vmem>>, vector<1x1x1x1x8xf32>
    %155 = vector.shape_cast %154 : vector<1x1x1x1x8xf32> to vector<1x8xf32>
    %156 = vector.broadcast %155 : vector<1x8xf32> to vector<16x8xf32>
    %157 = arith.addf %153, %156 : vector<16x8xf32>
    %c0_159 = arith.constant 0 : index
    %c2_160 = arith.constant 2 : index
    %c3_161 = arith.constant 3 : index
    %c0_162 = arith.constant 0 : index
    %c0_163 = arith.constant 0 : index
    %158 = vector.load %arg4[%c0_159, %c2_160, %c3_161, %c0_162, %c0_163] : memref<1x3x4x32x8xf32, #tpu.memory_space<vmem>>, vector<1x1x1x32x8xf32>
    %159 = vector.shape_cast %158 : vector<1x1x1x32x8xf32> to vector<32x8xf32>
    %cst_164 = arith.constant dense<0.000000e+00> : vector<16x8xf32>
    %160 = tpu.matmul %3, %159, %cst_164 {dimension_numbers = #tpu.dot_dimension_numbers<[1], [0], [0], [1], [0, 0, 1, 1], [], []>} : vector<16x32xf32>, vector<32x8xf32>, vector<16x8xf32> -> vector<16x8xf32>
    %c0_165 = arith.constant 0 : index
    %c2_166 = arith.constant 2 : index
    %c3_167 = arith.constant 3 : index
    %c0_168 = arith.constant 0 : index
    %c0_169 = arith.constant 0 : index
    %161 = vector.load %arg5[%c0_165, %c2_166, %c3_167, %c0_168, %c0_169] : memref<1x3x4x1x8xf32, #tpu.memory_space<vmem>>, vector<1x1x1x1x8xf32>
    %162 = vector.shape_cast %161 : vector<1x1x1x1x8xf32> to vector<1x8xf32>
    %163 = vector.broadcast %162 : vector<1x8xf32> to vector<16x8xf32>
    %164 = arith.addf %160, %163 : vector<16x8xf32>
    %165 = vector.shape_cast %150 : vector<16x8xf32> to vector<2x8x8xf32>
    %166 = vector.shape_cast %157 : vector<16x8xf32> to vector<2x8x8xf32>
    %167 = vector.shape_cast %164 : vector<16x8xf32> to vector<2x8x8xf32>
    "tpu.trace_start"() <{level = 10 : i32, message = "bqd,bkd->bqk"}> : () -> ()
    %cst_170 = arith.constant dense<0.000000e+00> : vector<2x8x8xf32>
    %168 = tpu.matmul %165, %166, %cst_170 {dimension_numbers = #tpu.dot_dimension_numbers<[2], [2], [1], [1], [0, 0, 0, 1, 1, 1], [0], [0]>} : vector<2x8x8xf32>, vector<2x8x8xf32>, vector<2x8x8xf32> -> vector<2x8x8xf32>
    "tpu.trace_stop"() : () -> ()
    %169 = arith.addf %168, %12 : vector<2x8x8xf32>
    %cst_171 = arith.constant dense<0xFF800000> : vector<2x8xf32>
    %170 = vector.multi_reduction <maximumf>, %169, %cst_171 [2] : vector<2x8x8xf32> to vector<2x8xf32>
    %171 = vector.shape_cast %170 : vector<2x8xf32> to vector<2x8x1xf32>
    %172 = vector.broadcast %171 : vector<2x8x1xf32> to vector<2x8x8xf32>
    %173 = arith.subf %169, %172 : vector<2x8x8xf32>
    %174 = math.exp %173 : vector<2x8x8xf32>
    %cst_172 = arith.constant dense<0.000000e+00> : vector<2x8xf32>
    %175 = vector.multi_reduction <add>, %174, %cst_172 [2] : vector<2x8x8xf32> to vector<2x8xf32>
    %176 = vector.shape_cast %175 : vector<2x8xf32> to vector<2x8x1xf32>
    %177 = tpu.reciprocal %176 {approx = true} : vector<2x8x1xf32> -> vector<2x8x1xf32>
    %178 = vector.broadcast %177 : vector<2x8x1xf32> to vector<2x8x8xf32>
    %179 = arith.mulf %174, %178 : vector<2x8x8xf32>
    "tpu.trace_start"() <{level = 10 : i32, message = "bqk,bkd->bqd"}> : () -> ()
    %cst_173 = arith.constant dense<0.000000e+00> : vector<2x8x8xf32>
    %180 = tpu.matmul %179, %167, %cst_173 {dimension_numbers = #tpu.dot_dimension_numbers<[2], [1], [1], [2], [0, 0, 0, 1, 1, 2], [0], [0]>} : vector<2x8x8xf32>, vector<2x8x8xf32>, vector<2x8x8xf32> -> vector<2x8x8xf32>
    "tpu.trace_stop"() : () -> ()
    %181 = vector.shape_cast %180 : vector<2x8x8xf32> to vector<16x8xf32>
    %c0_174 = arith.constant 0 : index
    %c3_175 = arith.constant 3 : index
    %c0_176 = arith.constant 0 : index
    %c0_177 = arith.constant 0 : index
    %182 = vector.load %arg6[%c0_174, %c3_175, %c0_176, %c0_177] : memref<1x4x8x32xf32, #tpu.memory_space<vmem>>, vector<1x1x8x32xf32>
    %183 = vector.shape_cast %182 : vector<1x1x8x32xf32> to vector<8x32xf32>
    %cst_178 = arith.constant dense<0.000000e+00> : vector<16x32xf32>
    %184 = tpu.matmul %181, %183, %cst_178 {dimension_numbers = #tpu.dot_dimension_numbers<[1], [0], [0], [1], [0, 0, 1, 1], [], []>} : vector<16x8xf32>, vector<8x32xf32>, vector<16x32xf32> -> vector<16x32xf32>
    %185 = arith.addf %143, %184 : vector<16x32xf32>
    %186 = arith.addf %3, %185 : vector<16x32xf32>
    %cst_179 = arith.constant dense<0.000000e+00> : vector<16xf32>
    %187 = vector.multi_reduction <add>, %186, %cst_179 [1] : vector<16x32xf32> to vector<16xf32>
    %188 = vector.shape_cast %187 : vector<16xf32> to vector<16x1xf32>
    %cst_180 = arith.constant 3.200000e+01 : f32
    %189 = vector.broadcast %cst_180 : f32 to vector<16x1xf32>
    %190 = arith.divf %188, %189 : vector<16x1xf32>
    %191 = vector.broadcast %190 : vector<16x1xf32> to vector<16x32xf32>
    %192 = arith.subf %186, %191 : vector<16x32xf32>
    %193 = arith.mulf %192, %192 : vector<16x32xf32>
    %cst_181 = arith.constant dense<0.000000e+00> : vector<16xf32>
    %194 = vector.multi_reduction <add>, %193, %cst_181 [1] : vector<16x32xf32> to vector<16xf32>
    %195 = vector.shape_cast %194 : vector<16xf32> to vector<16x1xf32>
    %cst_182 = arith.constant 3.200000e+01 : f32
    %196 = vector.broadcast %cst_182 : f32 to vector<16x1xf32>
    %197 = arith.divf %195, %196 : vector<16x1xf32>
    %198 = vector.broadcast %190 : vector<16x1xf32> to vector<16x32xf32>
    %199 = arith.subf %186, %198 : vector<16x32xf32>
    %cst_183 = arith.constant 9.99999974E-6 : f32
    %200 = vector.broadcast %cst_183 : f32 to vector<16x1xf32>
    %201 = arith.addf %197, %200 : vector<16x1xf32>
    %202 = math.rsqrt %201 : vector<16x1xf32>
    %203 = vector.broadcast %202 : vector<16x1xf32> to vector<16x32xf32>
    %204 = arith.mulf %199, %203 : vector<16x32xf32>
    %c0_184 = arith.constant 0 : index
    %c0_185 = arith.constant 0 : index
    %c0_186 = arith.constant 0 : index
    %205 = vector.load %arg12[%c0_184, %c0_185, %c0_186] : memref<1x1x32xf32, #tpu.memory_space<vmem>>, vector<1x1x32xf32>
    %206 = vector.shape_cast %205 : vector<1x1x32xf32> to vector<1x32xf32>
    %207 = vector.broadcast %206 : vector<1x32xf32> to vector<16x32xf32>
    %208 = arith.mulf %204, %207 : vector<16x32xf32>
    %c0_187 = arith.constant 0 : index
    %c0_188 = arith.constant 0 : index
    %c0_189 = arith.constant 0 : index
    %209 = vector.load %arg13[%c0_187, %c0_188, %c0_189] : memref<1x1x32xf32, #tpu.memory_space<vmem>>, vector<1x1x32xf32>
    %210 = vector.shape_cast %209 : vector<1x1x32xf32> to vector<1x32xf32>
    %211 = vector.broadcast %210 : vector<1x32xf32> to vector<16x32xf32>
    %212 = arith.addf %208, %211 : vector<16x32xf32>
    %cst_190 = arith.constant 0.000000e+00 : f32
    %213 = vector.broadcast %cst_190 : f32 to vector<16x32xf32>
    %c0_191 = arith.constant 0 : index
    %c0_192 = arith.constant 0 : index
    %c0_193 = arith.constant 0 : index
    %214 = vector.load %arg11[%c0_191, %c0_192, %c0_193] : memref<1x1x32xf32, #tpu.memory_space<vmem>>, vector<1x1x32xf32>
    %215 = vector.shape_cast %214 : vector<1x1x32xf32> to vector<1x32xf32>
    %216 = vector.broadcast %215 : vector<1x32xf32> to vector<16x32xf32>
    %217 = arith.addf %213, %216 : vector<16x32xf32>
    %c0_194 = arith.constant 0 : index
    %c0_195 = arith.constant 0 : index
    %c0_196 = arith.constant 0 : index
    %c0_197 = arith.constant 0 : index
    %c0_198 = arith.constant 0 : index
    %218 = vector.load %arg8[%c0_194, %c0_195, %c0_196, %c0_197, %c0_198] : memref<1x3x4x32x8xf32, #tpu.memory_space<vmem>>, vector<1x1x1x32x8xf32>
    %219 = vector.shape_cast %218 : vector<1x1x1x32x8xf32> to vector<32x8xf32>
    %cst_199 = arith.constant dense<0.000000e+00> : vector<16x8xf32>
    %220 = tpu.matmul %212, %219, %cst_199 {dimension_numbers = #tpu.dot_dimension_numbers<[1], [0], [0], [1], [0, 0, 1, 1], [], []>} : vector<16x32xf32>, vector<32x8xf32>, vector<16x8xf32> -> vector<16x8xf32>
    %c0_200 = arith.constant 0 : index
    %c0_201 = arith.constant 0 : index
    %c0_202 = arith.constant 0 : index
    %c0_203 = arith.constant 0 : index
    %c0_204 = arith.constant 0 : index
    %221 = vector.load %arg9[%c0_200, %c0_201, %c0_202, %c0_203, %c0_204] : memref<1x3x4x1x8xf32, #tpu.memory_space<vmem>>, vector<1x1x1x1x8xf32>
    %222 = vector.shape_cast %221 : vector<1x1x1x1x8xf32> to vector<1x8xf32>
    %223 = vector.broadcast %222 : vector<1x8xf32> to vector<16x8xf32>
    %224 = arith.addf %220, %223 : vector<16x8xf32>
    %c0_205 = arith.constant 0 : index
    %c1_206 = arith.constant 1 : index
    %c0_207 = arith.constant 0 : index
    %c0_208 = arith.constant 0 : index
    %c0_209 = arith.constant 0 : index
    %225 = vector.load %arg8[%c0_205, %c1_206, %c0_207, %c0_208, %c0_209] : memref<1x3x4x32x8xf32, #tpu.memory_space<vmem>>, vector<1x1x1x32x8xf32>
    %226 = vector.shape_cast %225 : vector<1x1x1x32x8xf32> to vector<32x8xf32>
    %cst_210 = arith.constant dense<0.000000e+00> : vector<16x8xf32>
    %227 = tpu.matmul %5, %226, %cst_210 {dimension_numbers = #tpu.dot_dimension_numbers<[1], [0], [0], [1], [0, 0, 1, 1], [], []>} : vector<16x32xf32>, vector<32x8xf32>, vector<16x8xf32> -> vector<16x8xf32>
    %c0_211 = arith.constant 0 : index
    %c1_212 = arith.constant 1 : index
    %c0_213 = arith.constant 0 : index
    %c0_214 = arith.constant 0 : index
    %c0_215 = arith.constant 0 : index
    %228 = vector.load %arg9[%c0_211, %c1_212, %c0_213, %c0_214, %c0_215] : memref<1x3x4x1x8xf32, #tpu.memory_space<vmem>>, vector<1x1x1x1x8xf32>
    %229 = vector.shape_cast %228 : vector<1x1x1x1x8xf32> to vector<1x8xf32>
    %230 = vector.broadcast %229 : vector<1x8xf32> to vector<16x8xf32>
    %231 = arith.addf %227, %230 : vector<16x8xf32>
    %c0_216 = arith.constant 0 : index
    %c2_217 = arith.constant 2 : index
    %c0_218 = arith.constant 0 : index
    %c0_219 = arith.constant 0 : index
    %c0_220 = arith.constant 0 : index
    %232 = vector.load %arg8[%c0_216, %c2_217, %c0_218, %c0_219, %c0_220] : memref<1x3x4x32x8xf32, #tpu.memory_space<vmem>>, vector<1x1x1x32x8xf32>
    %233 = vector.shape_cast %232 : vector<1x1x1x32x8xf32> to vector<32x8xf32>
    %cst_221 = arith.constant dense<0.000000e+00> : vector<16x8xf32>
    %234 = tpu.matmul %5, %233, %cst_221 {dimension_numbers = #tpu.dot_dimension_numbers<[1], [0], [0], [1], [0, 0, 1, 1], [], []>} : vector<16x32xf32>, vector<32x8xf32>, vector<16x8xf32> -> vector<16x8xf32>
    %c0_222 = arith.constant 0 : index
    %c2_223 = arith.constant 2 : index
    %c0_224 = arith.constant 0 : index
    %c0_225 = arith.constant 0 : index
    %c0_226 = arith.constant 0 : index
    %235 = vector.load %arg9[%c0_222, %c2_223, %c0_224, %c0_225, %c0_226] : memref<1x3x4x1x8xf32, #tpu.memory_space<vmem>>, vector<1x1x1x1x8xf32>
    %236 = vector.shape_cast %235 : vector<1x1x1x1x8xf32> to vector<1x8xf32>
    %237 = vector.broadcast %236 : vector<1x8xf32> to vector<16x8xf32>
    %238 = arith.addf %234, %237 : vector<16x8xf32>
    %239 = vector.shape_cast %224 : vector<16x8xf32> to vector<2x8x8xf32>
    %240 = vector.shape_cast %231 : vector<16x8xf32> to vector<2x8x8xf32>
    %241 = vector.shape_cast %238 : vector<16x8xf32> to vector<2x8x8xf32>
    "tpu.trace_start"() <{level = 10 : i32, message = "bqd,bkd->bqk"}> : () -> ()
    %cst_227 = arith.constant dense<0.000000e+00> : vector<2x8x8xf32>
    %242 = tpu.matmul %239, %240, %cst_227 {dimension_numbers = #tpu.dot_dimension_numbers<[2], [2], [1], [1], [0, 0, 0, 1, 1, 1], [0], [0]>} : vector<2x8x8xf32>, vector<2x8x8xf32>, vector<2x8x8xf32> -> vector<2x8x8xf32>
    "tpu.trace_stop"() : () -> ()
    %cst_228 = arith.constant dense<0xFF800000> : vector<2x8xf32>
    %243 = vector.multi_reduction <maximumf>, %242, %cst_228 [2] : vector<2x8x8xf32> to vector<2x8xf32>
    %244 = vector.shape_cast %243 : vector<2x8xf32> to vector<2x8x1xf32>
    %245 = vector.broadcast %244 : vector<2x8x1xf32> to vector<2x8x8xf32>
    %246 = arith.subf %242, %245 : vector<2x8x8xf32>
    %247 = math.exp %246 : vector<2x8x8xf32>
    %cst_229 = arith.constant dense<0.000000e+00> : vector<2x8xf32>
    %248 = vector.multi_reduction <add>, %247, %cst_229 [2] : vector<2x8x8xf32> to vector<2x8xf32>
    %249 = vector.shape_cast %248 : vector<2x8xf32> to vector<2x8x1xf32>
    %250 = tpu.reciprocal %249 {approx = true} : vector<2x8x1xf32> -> vector<2x8x1xf32>
    %251 = vector.broadcast %250 : vector<2x8x1xf32> to vector<2x8x8xf32>
    %252 = arith.mulf %247, %251 : vector<2x8x8xf32>
    "tpu.trace_start"() <{level = 10 : i32, message = "bqk,bkd->bqd"}> : () -> ()
    %cst_230 = arith.constant dense<0.000000e+00> : vector<2x8x8xf32>
    %253 = tpu.matmul %252, %241, %cst_230 {dimension_numbers = #tpu.dot_dimension_numbers<[2], [1], [1], [2], [0, 0, 0, 1, 1, 2], [0], [0]>} : vector<2x8x8xf32>, vector<2x8x8xf32>, vector<2x8x8xf32> -> vector<2x8x8xf32>
    "tpu.trace_stop"() : () -> ()
    %254 = vector.shape_cast %253 : vector<2x8x8xf32> to vector<16x8xf32>
    %c0_231 = arith.constant 0 : index
    %c0_232 = arith.constant 0 : index
    %c0_233 = arith.constant 0 : index
    %c0_234 = arith.constant 0 : index
    %255 = vector.load %arg10[%c0_231, %c0_232, %c0_233, %c0_234] : memref<1x4x8x32xf32, #tpu.memory_space<vmem>>, vector<1x1x8x32xf32>
    %256 = vector.shape_cast %255 : vector<1x1x8x32xf32> to vector<8x32xf32>
    %cst_235 = arith.constant dense<0.000000e+00> : vector<16x32xf32>
    %257 = tpu.matmul %254, %256, %cst_235 {dimension_numbers = #tpu.dot_dimension_numbers<[1], [0], [0], [1], [0, 0, 1, 1], [], []>} : vector<16x8xf32>, vector<8x32xf32>, vector<16x32xf32> -> vector<16x32xf32>
    %258 = arith.addf %217, %257 : vector<16x32xf32>
    %c0_236 = arith.constant 0 : index
    %c0_237 = arith.constant 0 : index
    %c1_238 = arith.constant 1 : index
    %c0_239 = arith.constant 0 : index
    %c0_240 = arith.constant 0 : index
    %259 = vector.load %arg8[%c0_236, %c0_237, %c1_238, %c0_239, %c0_240] : memref<1x3x4x32x8xf32, #tpu.memory_space<vmem>>, vector<1x1x1x32x8xf32>
    %260 = vector.shape_cast %259 : vector<1x1x1x32x8xf32> to vector<32x8xf32>
    %cst_241 = arith.constant dense<0.000000e+00> : vector<16x8xf32>
    %261 = tpu.matmul %212, %260, %cst_241 {dimension_numbers = #tpu.dot_dimension_numbers<[1], [0], [0], [1], [0, 0, 1, 1], [], []>} : vector<16x32xf32>, vector<32x8xf32>, vector<16x8xf32> -> vector<16x8xf32>
    %c0_242 = arith.constant 0 : index
    %c0_243 = arith.constant 0 : index
    %c1_244 = arith.constant 1 : index
    %c0_245 = arith.constant 0 : index
    %c0_246 = arith.constant 0 : index
    %262 = vector.load %arg9[%c0_242, %c0_243, %c1_244, %c0_245, %c0_246] : memref<1x3x4x1x8xf32, #tpu.memory_space<vmem>>, vector<1x1x1x1x8xf32>
    %263 = vector.shape_cast %262 : vector<1x1x1x1x8xf32> to vector<1x8xf32>
    %264 = vector.broadcast %263 : vector<1x8xf32> to vector<16x8xf32>
    %265 = arith.addf %261, %264 : vector<16x8xf32>
    %c0_247 = arith.constant 0 : index
    %c1_248 = arith.constant 1 : index
    %c1_249 = arith.constant 1 : index
    %c0_250 = arith.constant 0 : index
    %c0_251 = arith.constant 0 : index
    %266 = vector.load %arg8[%c0_247, %c1_248, %c1_249, %c0_250, %c0_251] : memref<1x3x4x32x8xf32, #tpu.memory_space<vmem>>, vector<1x1x1x32x8xf32>
    %267 = vector.shape_cast %266 : vector<1x1x1x32x8xf32> to vector<32x8xf32>
    %cst_252 = arith.constant dense<0.000000e+00> : vector<16x8xf32>
    %268 = tpu.matmul %5, %267, %cst_252 {dimension_numbers = #tpu.dot_dimension_numbers<[1], [0], [0], [1], [0, 0, 1, 1], [], []>} : vector<16x32xf32>, vector<32x8xf32>, vector<16x8xf32> -> vector<16x8xf32>
    %c0_253 = arith.constant 0 : index
    %c1_254 = arith.constant 1 : index
    %c1_255 = arith.constant 1 : index
    %c0_256 = arith.constant 0 : index
    %c0_257 = arith.constant 0 : index
    %269 = vector.load %arg9[%c0_253, %c1_254, %c1_255, %c0_256, %c0_257] : memref<1x3x4x1x8xf32, #tpu.memory_space<vmem>>, vector<1x1x1x1x8xf32>
    %270 = vector.shape_cast %269 : vector<1x1x1x1x8xf32> to vector<1x8xf32>
    %271 = vector.broadcast %270 : vector<1x8xf32> to vector<16x8xf32>
    %272 = arith.addf %268, %271 : vector<16x8xf32>
    %c0_258 = arith.constant 0 : index
    %c2_259 = arith.constant 2 : index
    %c1_260 = arith.constant 1 : index
    %c0_261 = arith.constant 0 : index
    %c0_262 = arith.constant 0 : index
    %273 = vector.load %arg8[%c0_258, %c2_259, %c1_260, %c0_261, %c0_262] : memref<1x3x4x32x8xf32, #tpu.memory_space<vmem>>, vector<1x1x1x32x8xf32>
    %274 = vector.shape_cast %273 : vector<1x1x1x32x8xf32> to vector<32x8xf32>
    %cst_263 = arith.constant dense<0.000000e+00> : vector<16x8xf32>
    %275 = tpu.matmul %5, %274, %cst_263 {dimension_numbers = #tpu.dot_dimension_numbers<[1], [0], [0], [1], [0, 0, 1, 1], [], []>} : vector<16x32xf32>, vector<32x8xf32>, vector<16x8xf32> -> vector<16x8xf32>
    %c0_264 = arith.constant 0 : index
    %c2_265 = arith.constant 2 : index
    %c1_266 = arith.constant 1 : index
    %c0_267 = arith.constant 0 : index
    %c0_268 = arith.constant 0 : index
    %276 = vector.load %arg9[%c0_264, %c2_265, %c1_266, %c0_267, %c0_268] : memref<1x3x4x1x8xf32, #tpu.memory_space<vmem>>, vector<1x1x1x1x8xf32>
    %277 = vector.shape_cast %276 : vector<1x1x1x1x8xf32> to vector<1x8xf32>
    %278 = vector.broadcast %277 : vector<1x8xf32> to vector<16x8xf32>
    %279 = arith.addf %275, %278 : vector<16x8xf32>
    %280 = vector.shape_cast %265 : vector<16x8xf32> to vector<2x8x8xf32>
    %281 = vector.shape_cast %272 : vector<16x8xf32> to vector<2x8x8xf32>
    %282 = vector.shape_cast %279 : vector<16x8xf32> to vector<2x8x8xf32>
    "tpu.trace_start"() <{level = 10 : i32, message = "bqd,bkd->bqk"}> : () -> ()
    %cst_269 = arith.constant dense<0.000000e+00> : vector<2x8x8xf32>
    %283 = tpu.matmul %280, %281, %cst_269 {dimension_numbers = #tpu.dot_dimension_numbers<[2], [2], [1], [1], [0, 0, 0, 1, 1, 1], [0], [0]>} : vector<2x8x8xf32>, vector<2x8x8xf32>, vector<2x8x8xf32> -> vector<2x8x8xf32>
    "tpu.trace_stop"() : () -> ()
    %cst_270 = arith.constant dense<0xFF800000> : vector<2x8xf32>
    %284 = vector.multi_reduction <maximumf>, %283, %cst_270 [2] : vector<2x8x8xf32> to vector<2x8xf32>
    %285 = vector.shape_cast %284 : vector<2x8xf32> to vector<2x8x1xf32>
    %286 = vector.broadcast %285 : vector<2x8x1xf32> to vector<2x8x8xf32>
    %287 = arith.subf %283, %286 : vector<2x8x8xf32>
    %288 = math.exp %287 : vector<2x8x8xf32>
    %cst_271 = arith.constant dense<0.000000e+00> : vector<2x8xf32>
    %289 = vector.multi_reduction <add>, %288, %cst_271 [2] : vector<2x8x8xf32> to vector<2x8xf32>
    %290 = vector.shape_cast %289 : vector<2x8xf32> to vector<2x8x1xf32>
    %291 = tpu.reciprocal %290 {approx = true} : vector<2x8x1xf32> -> vector<2x8x1xf32>
    %292 = vector.broadcast %291 : vector<2x8x1xf32> to vector<2x8x8xf32>
    %293 = arith.mulf %288, %292 : vector<2x8x8xf32>
    "tpu.trace_start"() <{level = 10 : i32, message = "bqk,bkd->bqd"}> : () -> ()
    %cst_272 = arith.constant dense<0.000000e+00> : vector<2x8x8xf32>
    %294 = tpu.matmul %293, %282, %cst_272 {dimension_numbers = #tpu.dot_dimension_numbers<[2], [1], [1], [2], [0, 0, 0, 1, 1, 2], [0], [0]>} : vector<2x8x8xf32>, vector<2x8x8xf32>, vector<2x8x8xf32> -> vector<2x8x8xf32>
    "tpu.trace_stop"() : () -> ()
    %295 = vector.shape_cast %294 : vector<2x8x8xf32> to vector<16x8xf32>
    %c0_273 = arith.constant 0 : index
    %c1_274 = arith.constant 1 : index
    %c0_275 = arith.constant 0 : index
    %c0_276 = arith.constant 0 : index
    %296 = vector.load %arg10[%c0_273, %c1_274, %c0_275, %c0_276] : memref<1x4x8x32xf32, #tpu.memory_space<vmem>>, vector<1x1x8x32xf32>
    %297 = vector.shape_cast %296 : vector<1x1x8x32xf32> to vector<8x32xf32>
    %cst_277 = arith.constant dense<0.000000e+00> : vector<16x32xf32>
    %298 = tpu.matmul %295, %297, %cst_277 {dimension_numbers = #tpu.dot_dimension_numbers<[1], [0], [0], [1], [0, 0, 1, 1], [], []>} : vector<16x8xf32>, vector<8x32xf32>, vector<16x32xf32> -> vector<16x32xf32>
    %299 = arith.addf %258, %298 : vector<16x32xf32>
    %c0_278 = arith.constant 0 : index
    %c0_279 = arith.constant 0 : index
    %c2_280 = arith.constant 2 : index
    %c0_281 = arith.constant 0 : index
    %c0_282 = arith.constant 0 : index
    %300 = vector.load %arg8[%c0_278, %c0_279, %c2_280, %c0_281, %c0_282] : memref<1x3x4x32x8xf32, #tpu.memory_space<vmem>>, vector<1x1x1x32x8xf32>
    %301 = vector.shape_cast %300 : vector<1x1x1x32x8xf32> to vector<32x8xf32>
    %cst_283 = arith.constant dense<0.000000e+00> : vector<16x8xf32>
    %302 = tpu.matmul %212, %301, %cst_283 {dimension_numbers = #tpu.dot_dimension_numbers<[1], [0], [0], [1], [0, 0, 1, 1], [], []>} : vector<16x32xf32>, vector<32x8xf32>, vector<16x8xf32> -> vector<16x8xf32>
    %c0_284 = arith.constant 0 : index
    %c0_285 = arith.constant 0 : index
    %c2_286 = arith.constant 2 : index
    %c0_287 = arith.constant 0 : index
    %c0_288 = arith.constant 0 : index
    %303 = vector.load %arg9[%c0_284, %c0_285, %c2_286, %c0_287, %c0_288] : memref<1x3x4x1x8xf32, #tpu.memory_space<vmem>>, vector<1x1x1x1x8xf32>
    %304 = vector.shape_cast %303 : vector<1x1x1x1x8xf32> to vector<1x8xf32>
    %305 = vector.broadcast %304 : vector<1x8xf32> to vector<16x8xf32>
    %306 = arith.addf %302, %305 : vector<16x8xf32>
    %c0_289 = arith.constant 0 : index
    %c1_290 = arith.constant 1 : index
    %c2_291 = arith.constant 2 : index
    %c0_292 = arith.constant 0 : index
    %c0_293 = arith.constant 0 : index
    %307 = vector.load %arg8[%c0_289, %c1_290, %c2_291, %c0_292, %c0_293] : memref<1x3x4x32x8xf32, #tpu.memory_space<vmem>>, vector<1x1x1x32x8xf32>
    %308 = vector.shape_cast %307 : vector<1x1x1x32x8xf32> to vector<32x8xf32>
    %cst_294 = arith.constant dense<0.000000e+00> : vector<16x8xf32>
    %309 = tpu.matmul %5, %308, %cst_294 {dimension_numbers = #tpu.dot_dimension_numbers<[1], [0], [0], [1], [0, 0, 1, 1], [], []>} : vector<16x32xf32>, vector<32x8xf32>, vector<16x8xf32> -> vector<16x8xf32>
    %c0_295 = arith.constant 0 : index
    %c1_296 = arith.constant 1 : index
    %c2_297 = arith.constant 2 : index
    %c0_298 = arith.constant 0 : index
    %c0_299 = arith.constant 0 : index
    %310 = vector.load %arg9[%c0_295, %c1_296, %c2_297, %c0_298, %c0_299] : memref<1x3x4x1x8xf32, #tpu.memory_space<vmem>>, vector<1x1x1x1x8xf32>
    %311 = vector.shape_cast %310 : vector<1x1x1x1x8xf32> to vector<1x8xf32>
    %312 = vector.broadcast %311 : vector<1x8xf32> to vector<16x8xf32>
    %313 = arith.addf %309, %312 : vector<16x8xf32>
    %c0_300 = arith.constant 0 : index
    %c2_301 = arith.constant 2 : index
    %c2_302 = arith.constant 2 : index
    %c0_303 = arith.constant 0 : index
    %c0_304 = arith.constant 0 : index
    %314 = vector.load %arg8[%c0_300, %c2_301, %c2_302, %c0_303, %c0_304] : memref<1x3x4x32x8xf32, #tpu.memory_space<vmem>>, vector<1x1x1x32x8xf32>
    %315 = vector.shape_cast %314 : vector<1x1x1x32x8xf32> to vector<32x8xf32>
    %cst_305 = arith.constant dense<0.000000e+00> : vector<16x8xf32>
    %316 = tpu.matmul %5, %315, %cst_305 {dimension_numbers = #tpu.dot_dimension_numbers<[1], [0], [0], [1], [0, 0, 1, 1], [], []>} : vector<16x32xf32>, vector<32x8xf32>, vector<16x8xf32> -> vector<16x8xf32>
    %c0_306 = arith.constant 0 : index
    %c2_307 = arith.constant 2 : index
    %c2_308 = arith.constant 2 : index
    %c0_309 = arith.constant 0 : index
    %c0_310 = arith.constant 0 : index
    %317 = vector.load %arg9[%c0_306, %c2_307, %c2_308, %c0_309, %c0_310] : memref<1x3x4x1x8xf32, #tpu.memory_space<vmem>>, vector<1x1x1x1x8xf32>
    %318 = vector.shape_cast %317 : vector<1x1x1x1x8xf32> to vector<1x8xf32>
    %319 = vector.broadcast %318 : vector<1x8xf32> to vector<16x8xf32>
    %320 = arith.addf %316, %319 : vector<16x8xf32>
    %321 = vector.shape_cast %306 : vector<16x8xf32> to vector<2x8x8xf32>
    %322 = vector.shape_cast %313 : vector<16x8xf32> to vector<2x8x8xf32>
    %323 = vector.shape_cast %320 : vector<16x8xf32> to vector<2x8x8xf32>
    "tpu.trace_start"() <{level = 10 : i32, message = "bqd,bkd->bqk"}> : () -> ()
    %cst_311 = arith.constant dense<0.000000e+00> : vector<2x8x8xf32>
    %324 = tpu.matmul %321, %322, %cst_311 {dimension_numbers = #tpu.dot_dimension_numbers<[2], [2], [1], [1], [0, 0, 0, 1, 1, 1], [0], [0]>} : vector<2x8x8xf32>, vector<2x8x8xf32>, vector<2x8x8xf32> -> vector<2x8x8xf32>
    "tpu.trace_stop"() : () -> ()
    %cst_312 = arith.constant dense<0xFF800000> : vector<2x8xf32>
    %325 = vector.multi_reduction <maximumf>, %324, %cst_312 [2] : vector<2x8x8xf32> to vector<2x8xf32>
    %326 = vector.shape_cast %325 : vector<2x8xf32> to vector<2x8x1xf32>
    %327 = vector.broadcast %326 : vector<2x8x1xf32> to vector<2x8x8xf32>
    %328 = arith.subf %324, %327 : vector<2x8x8xf32>
    %329 = math.exp %328 : vector<2x8x8xf32>
    %cst_313 = arith.constant dense<0.000000e+00> : vector<2x8xf32>
    %330 = vector.multi_reduction <add>, %329, %cst_313 [2] : vector<2x8x8xf32> to vector<2x8xf32>
    %331 = vector.shape_cast %330 : vector<2x8xf32> to vector<2x8x1xf32>
    %332 = tpu.reciprocal %331 {approx = true} : vector<2x8x1xf32> -> vector<2x8x1xf32>
    %333 = vector.broadcast %332 : vector<2x8x1xf32> to vector<2x8x8xf32>
    %334 = arith.mulf %329, %333 : vector<2x8x8xf32>
    "tpu.trace_start"() <{level = 10 : i32, message = "bqk,bkd->bqd"}> : () -> ()
    %cst_314 = arith.constant dense<0.000000e+00> : vector<2x8x8xf32>
    %335 = tpu.matmul %334, %323, %cst_314 {dimension_numbers = #tpu.dot_dimension_numbers<[2], [1], [1], [2], [0, 0, 0, 1, 1, 2], [0], [0]>} : vector<2x8x8xf32>, vector<2x8x8xf32>, vector<2x8x8xf32> -> vector<2x8x8xf32>
    "tpu.trace_stop"() : () -> ()
    %336 = vector.shape_cast %335 : vector<2x8x8xf32> to vector<16x8xf32>
    %c0_315 = arith.constant 0 : index
    %c2_316 = arith.constant 2 : index
    %c0_317 = arith.constant 0 : index
    %c0_318 = arith.constant 0 : index
    %337 = vector.load %arg10[%c0_315, %c2_316, %c0_317, %c0_318] : memref<1x4x8x32xf32, #tpu.memory_space<vmem>>, vector<1x1x8x32xf32>
    %338 = vector.shape_cast %337 : vector<1x1x8x32xf32> to vector<8x32xf32>
    %cst_319 = arith.constant dense<0.000000e+00> : vector<16x32xf32>
    %339 = tpu.matmul %336, %338, %cst_319 {dimension_numbers = #tpu.dot_dimension_numbers<[1], [0], [0], [1], [0, 0, 1, 1], [], []>} : vector<16x8xf32>, vector<8x32xf32>, vector<16x32xf32> -> vector<16x32xf32>
    %340 = arith.addf %299, %339 : vector<16x32xf32>
    %c0_320 = arith.constant 0 : index
    %c0_321 = arith.constant 0 : index
    %c3_322 = arith.constant 3 : index
    %c0_323 = arith.constant 0 : index
    %c0_324 = arith.constant 0 : index
    %341 = vector.load %arg8[%c0_320, %c0_321, %c3_322, %c0_323, %c0_324] : memref<1x3x4x32x8xf32, #tpu.memory_space<vmem>>, vector<1x1x1x32x8xf32>
    %342 = vector.shape_cast %341 : vector<1x1x1x32x8xf32> to vector<32x8xf32>
    %cst_325 = arith.constant dense<0.000000e+00> : vector<16x8xf32>
    %343 = tpu.matmul %212, %342, %cst_325 {dimension_numbers = #tpu.dot_dimension_numbers<[1], [0], [0], [1], [0, 0, 1, 1], [], []>} : vector<16x32xf32>, vector<32x8xf32>, vector<16x8xf32> -> vector<16x8xf32>
    %c0_326 = arith.constant 0 : index
    %c0_327 = arith.constant 0 : index
    %c3_328 = arith.constant 3 : index
    %c0_329 = arith.constant 0 : index
    %c0_330 = arith.constant 0 : index
    %344 = vector.load %arg9[%c0_326, %c0_327, %c3_328, %c0_329, %c0_330] : memref<1x3x4x1x8xf32, #tpu.memory_space<vmem>>, vector<1x1x1x1x8xf32>
    %345 = vector.shape_cast %344 : vector<1x1x1x1x8xf32> to vector<1x8xf32>
    %346 = vector.broadcast %345 : vector<1x8xf32> to vector<16x8xf32>
    %347 = arith.addf %343, %346 : vector<16x8xf32>
    %c0_331 = arith.constant 0 : index
    %c1_332 = arith.constant 1 : index
    %c3_333 = arith.constant 3 : index
    %c0_334 = arith.constant 0 : index
    %c0_335 = arith.constant 0 : index
    %348 = vector.load %arg8[%c0_331, %c1_332, %c3_333, %c0_334, %c0_335] : memref<1x3x4x32x8xf32, #tpu.memory_space<vmem>>, vector<1x1x1x32x8xf32>
    %349 = vector.shape_cast %348 : vector<1x1x1x32x8xf32> to vector<32x8xf32>
    %cst_336 = arith.constant dense<0.000000e+00> : vector<16x8xf32>
    %350 = tpu.matmul %5, %349, %cst_336 {dimension_numbers = #tpu.dot_dimension_numbers<[1], [0], [0], [1], [0, 0, 1, 1], [], []>} : vector<16x32xf32>, vector<32x8xf32>, vector<16x8xf32> -> vector<16x8xf32>
    %c0_337 = arith.constant 0 : index
    %c1_338 = arith.constant 1 : index
    %c3_339 = arith.constant 3 : index
    %c0_340 = arith.constant 0 : index
    %c0_341 = arith.constant 0 : index
    %351 = vector.load %arg9[%c0_337, %c1_338, %c3_339, %c0_340, %c0_341] : memref<1x3x4x1x8xf32, #tpu.memory_space<vmem>>, vector<1x1x1x1x8xf32>
    %352 = vector.shape_cast %351 : vector<1x1x1x1x8xf32> to vector<1x8xf32>
    %353 = vector.broadcast %352 : vector<1x8xf32> to vector<16x8xf32>
    %354 = arith.addf %350, %353 : vector<16x8xf32>
    %c0_342 = arith.constant 0 : index
    %c2_343 = arith.constant 2 : index
    %c3_344 = arith.constant 3 : index
    %c0_345 = arith.constant 0 : index
    %c0_346 = arith.constant 0 : index
    %355 = vector.load %arg8[%c0_342, %c2_343, %c3_344, %c0_345, %c0_346] : memref<1x3x4x32x8xf32, #tpu.memory_space<vmem>>, vector<1x1x1x32x8xf32>
    %356 = vector.shape_cast %355 : vector<1x1x1x32x8xf32> to vector<32x8xf32>
    %cst_347 = arith.constant dense<0.000000e+00> : vector<16x8xf32>
    %357 = tpu.matmul %5, %356, %cst_347 {dimension_numbers = #tpu.dot_dimension_numbers<[1], [0], [0], [1], [0, 0, 1, 1], [], []>} : vector<16x32xf32>, vector<32x8xf32>, vector<16x8xf32> -> vector<16x8xf32>
    %c0_348 = arith.constant 0 : index
    %c2_349 = arith.constant 2 : index
    %c3_350 = arith.constant 3 : index
    %c0_351 = arith.constant 0 : index
    %c0_352 = arith.constant 0 : index
    %358 = vector.load %arg9[%c0_348, %c2_349, %c3_350, %c0_351, %c0_352] : memref<1x3x4x1x8xf32, #tpu.memory_space<vmem>>, vector<1x1x1x1x8xf32>
    %359 = vector.shape_cast %358 : vector<1x1x1x1x8xf32> to vector<1x8xf32>
    %360 = vector.broadcast %359 : vector<1x8xf32> to vector<16x8xf32>
    %361 = arith.addf %357, %360 : vector<16x8xf32>
    %362 = vector.shape_cast %347 : vector<16x8xf32> to vector<2x8x8xf32>
    %363 = vector.shape_cast %354 : vector<16x8xf32> to vector<2x8x8xf32>
    %364 = vector.shape_cast %361 : vector<16x8xf32> to vector<2x8x8xf32>
    "tpu.trace_start"() <{level = 10 : i32, message = "bqd,bkd->bqk"}> : () -> ()
    %cst_353 = arith.constant dense<0.000000e+00> : vector<2x8x8xf32>
    %365 = tpu.matmul %362, %363, %cst_353 {dimension_numbers = #tpu.dot_dimension_numbers<[2], [2], [1], [1], [0, 0, 0, 1, 1, 1], [0], [0]>} : vector<2x8x8xf32>, vector<2x8x8xf32>, vector<2x8x8xf32> -> vector<2x8x8xf32>
    "tpu.trace_stop"() : () -> ()
    %cst_354 = arith.constant dense<0xFF800000> : vector<2x8xf32>
    %366 = vector.multi_reduction <maximumf>, %365, %cst_354 [2] : vector<2x8x8xf32> to vector<2x8xf32>
    %367 = vector.shape_cast %366 : vector<2x8xf32> to vector<2x8x1xf32>
    %368 = vector.broadcast %367 : vector<2x8x1xf32> to vector<2x8x8xf32>
    %369 = arith.subf %365, %368 : vector<2x8x8xf32>
    %370 = math.exp %369 : vector<2x8x8xf32>
    %cst_355 = arith.constant dense<0.000000e+00> : vector<2x8xf32>
    %371 = vector.multi_reduction <add>, %370, %cst_355 [2] : vector<2x8x8xf32> to vector<2x8xf32>
    %372 = vector.shape_cast %371 : vector<2x8xf32> to vector<2x8x1xf32>
    %373 = tpu.reciprocal %372 {approx = true} : vector<2x8x1xf32> -> vector<2x8x1xf32>
    %374 = vector.broadcast %373 : vector<2x8x1xf32> to vector<2x8x8xf32>
    %375 = arith.mulf %370, %374 : vector<2x8x8xf32>
    "tpu.trace_start"() <{level = 10 : i32, message = "bqk,bkd->bqd"}> : () -> ()
    %cst_356 = arith.constant dense<0.000000e+00> : vector<2x8x8xf32>
    %376 = tpu.matmul %375, %364, %cst_356 {dimension_numbers = #tpu.dot_dimension_numbers<[2], [1], [1], [2], [0, 0, 0, 1, 1, 2], [0], [0]>} : vector<2x8x8xf32>, vector<2x8x8xf32>, vector<2x8x8xf32> -> vector<2x8x8xf32>
    "tpu.trace_stop"() : () -> ()
    %377 = vector.shape_cast %376 : vector<2x8x8xf32> to vector<16x8xf32>
    %c0_357 = arith.constant 0 : index
    %c3_358 = arith.constant 3 : index
    %c0_359 = arith.constant 0 : index
    %c0_360 = arith.constant 0 : index
    %378 = vector.load %arg10[%c0_357, %c3_358, %c0_359, %c0_360] : memref<1x4x8x32xf32, #tpu.memory_space<vmem>>, vector<1x1x8x32xf32>
    %379 = vector.shape_cast %378 : vector<1x1x8x32xf32> to vector<8x32xf32>
    %cst_361 = arith.constant dense<0.000000e+00> : vector<16x32xf32>
    %380 = tpu.matmul %377, %379, %cst_361 {dimension_numbers = #tpu.dot_dimension_numbers<[1], [0], [0], [1], [0, 0, 1, 1], [], []>} : vector<16x8xf32>, vector<8x32xf32>, vector<16x32xf32> -> vector<16x32xf32>
    %381 = arith.addf %340, %380 : vector<16x32xf32>
    %382 = arith.addf %212, %381 : vector<16x32xf32>
    %cst_362 = arith.constant dense<0.000000e+00> : vector<16xf32>
    %383 = vector.multi_reduction <add>, %382, %cst_362 [1] : vector<16x32xf32> to vector<16xf32>
    %384 = vector.shape_cast %383 : vector<16xf32> to vector<16x1xf32>
    %cst_363 = arith.constant 3.200000e+01 : f32
    %385 = vector.broadcast %cst_363 : f32 to vector<16x1xf32>
    %386 = arith.divf %384, %385 : vector<16x1xf32>
    %387 = vector.broadcast %386 : vector<16x1xf32> to vector<16x32xf32>
    %388 = arith.subf %382, %387 : vector<16x32xf32>
    %389 = arith.mulf %388, %388 : vector<16x32xf32>
    %cst_364 = arith.constant dense<0.000000e+00> : vector<16xf32>
    %390 = vector.multi_reduction <add>, %389, %cst_364 [1] : vector<16x32xf32> to vector<16xf32>
    %391 = vector.shape_cast %390 : vector<16xf32> to vector<16x1xf32>
    %cst_365 = arith.constant 3.200000e+01 : f32
    %392 = vector.broadcast %cst_365 : f32 to vector<16x1xf32>
    %393 = arith.divf %391, %392 : vector<16x1xf32>
    %394 = vector.broadcast %386 : vector<16x1xf32> to vector<16x32xf32>
    %395 = arith.subf %382, %394 : vector<16x32xf32>
    %cst_366 = arith.constant 9.99999974E-6 : f32
    %396 = vector.broadcast %cst_366 : f32 to vector<16x1xf32>
    %397 = arith.addf %393, %396 : vector<16x1xf32>
    %398 = math.rsqrt %397 : vector<16x1xf32>
    %399 = vector.broadcast %398 : vector<16x1xf32> to vector<16x32xf32>
    %400 = arith.mulf %395, %399 : vector<16x32xf32>
    %c0_367 = arith.constant 0 : index
    %c0_368 = arith.constant 0 : index
    %c0_369 = arith.constant 0 : index
    %401 = vector.load %arg14[%c0_367, %c0_368, %c0_369] : memref<1x1x32xf32, #tpu.memory_space<vmem>>, vector<1x1x32xf32>
    %402 = vector.shape_cast %401 : vector<1x1x32xf32> to vector<1x32xf32>
    %403 = vector.broadcast %402 : vector<1x32xf32> to vector<16x32xf32>
    %404 = arith.mulf %400, %403 : vector<16x32xf32>
    %c0_370 = arith.constant 0 : index
    %c0_371 = arith.constant 0 : index
    %c0_372 = arith.constant 0 : index
    %405 = vector.load %arg15[%c0_370, %c0_371, %c0_372] : memref<1x1x32xf32, #tpu.memory_space<vmem>>, vector<1x1x32xf32>
    %406 = vector.shape_cast %405 : vector<1x1x32xf32> to vector<1x32xf32>
    %407 = vector.broadcast %406 : vector<1x32xf32> to vector<16x32xf32>
    %408 = arith.addf %404, %407 : vector<16x32xf32>
    %c0_373 = arith.constant 0 : index
    %c0_374 = arith.constant 0 : index
    %c0_375 = arith.constant 0 : index
    %409 = vector.load %arg18[%c0_373, %c0_374, %c0_375] : memref<1x32x64xf32, #tpu.memory_space<vmem>>, vector<1x32x64xf32>
    %410 = vector.shape_cast %409 : vector<1x32x64xf32> to vector<32x64xf32>
    %cst_376 = arith.constant dense<0.000000e+00> : vector<16x64xf32>
    %411 = tpu.matmul %408, %410, %cst_376 {dimension_numbers = #tpu.dot_dimension_numbers<[1], [0], [0], [1], [0, 0, 1, 1], [], []>} : vector<16x32xf32>, vector<32x64xf32>, vector<16x64xf32> -> vector<16x64xf32>
    %c0_377 = arith.constant 0 : index
    %c0_378 = arith.constant 0 : index
    %c0_379 = arith.constant 0 : index
    %412 = vector.load %arg19[%c0_377, %c0_378, %c0_379] : memref<1x1x64xf32, #tpu.memory_space<vmem>>, vector<1x1x64xf32>
    %413 = vector.shape_cast %412 : vector<1x1x64xf32> to vector<1x64xf32>
    %414 = vector.broadcast %413 : vector<1x64xf32> to vector<16x64xf32>
    %415 = arith.addf %411, %414 : vector<16x64xf32>
    %cst_380 = arith.constant 0.000000e+00 : f32
    %416 = vector.broadcast %cst_380 : f32 to vector<16x64xf32>
    %417 = arith.maximumf %415, %416 : vector<16x64xf32>
    %c0_381 = arith.constant 0 : index
    %c0_382 = arith.constant 0 : index
    %c0_383 = arith.constant 0 : index
    %418 = vector.load %arg20[%c0_381, %c0_382, %c0_383] : memref<1x64x32xf32, #tpu.memory_space<vmem>>, vector<1x64x32xf32>
    %419 = vector.shape_cast %418 : vector<1x64x32xf32> to vector<64x32xf32>
    %cst_384 = arith.constant dense<0.000000e+00> : vector<16x32xf32>
    %420 = tpu.matmul %417, %419, %cst_384 {dimension_numbers = #tpu.dot_dimension_numbers<[1], [0], [0], [1], [0, 0, 1, 1], [], []>} : vector<16x64xf32>, vector<64x32xf32>, vector<16x32xf32> -> vector<16x32xf32>
    %c0_385 = arith.constant 0 : index
    %c0_386 = arith.constant 0 : index
    %c0_387 = arith.constant 0 : index
    %421 = vector.load %arg21[%c0_385, %c0_386, %c0_387] : memref<1x1x32xf32, #tpu.memory_space<vmem>>, vector<1x1x32xf32>
    %422 = vector.shape_cast %421 : vector<1x1x32xf32> to vector<1x32xf32>
    %423 = vector.broadcast %422 : vector<1x32xf32> to vector<16x32xf32>
    %424 = arith.addf %420, %423 : vector<16x32xf32>
    %425 = arith.addf %408, %424 : vector<16x32xf32>
    %cst_388 = arith.constant dense<0.000000e+00> : vector<16xf32>
    %426 = vector.multi_reduction <add>, %425, %cst_388 [1] : vector<16x32xf32> to vector<16xf32>
    %427 = vector.shape_cast %426 : vector<16xf32> to vector<16x1xf32>
    %cst_389 = arith.constant 3.200000e+01 : f32
    %428 = vector.broadcast %cst_389 : f32 to vector<16x1xf32>
    %429 = arith.divf %427, %428 : vector<16x1xf32>
    %430 = vector.broadcast %429 : vector<16x1xf32> to vector<16x32xf32>
    %431 = arith.subf %425, %430 : vector<16x32xf32>
    %432 = arith.mulf %431, %431 : vector<16x32xf32>
    %cst_390 = arith.constant dense<0.000000e+00> : vector<16xf32>
    %433 = vector.multi_reduction <add>, %432, %cst_390 [1] : vector<16x32xf32> to vector<16xf32>
    %434 = vector.shape_cast %433 : vector<16xf32> to vector<16x1xf32>
    %cst_391 = arith.constant 3.200000e+01 : f32
    %435 = vector.broadcast %cst_391 : f32 to vector<16x1xf32>
    %436 = arith.divf %434, %435 : vector<16x1xf32>
    %437 = vector.broadcast %429 : vector<16x1xf32> to vector<16x32xf32>
    %438 = arith.subf %425, %437 : vector<16x32xf32>
    %cst_392 = arith.constant 9.99999974E-6 : f32
    %439 = vector.broadcast %cst_392 : f32 to vector<16x1xf32>
    %440 = arith.addf %436, %439 : vector<16x1xf32>
    %441 = math.rsqrt %440 : vector<16x1xf32>
    %442 = vector.broadcast %441 : vector<16x1xf32> to vector<16x32xf32>
    %443 = arith.mulf %438, %442 : vector<16x32xf32>
    %c0_393 = arith.constant 0 : index
    %c0_394 = arith.constant 0 : index
    %c0_395 = arith.constant 0 : index
    %444 = vector.load %arg16[%c0_393, %c0_394, %c0_395] : memref<1x1x32xf32, #tpu.memory_space<vmem>>, vector<1x1x32xf32>
    %445 = vector.shape_cast %444 : vector<1x1x32xf32> to vector<1x32xf32>
    %446 = vector.broadcast %445 : vector<1x32xf32> to vector<16x32xf32>
    %447 = arith.mulf %443, %446 : vector<16x32xf32>
    %c0_396 = arith.constant 0 : index
    %c0_397 = arith.constant 0 : index
    %c0_398 = arith.constant 0 : index
    %448 = vector.load %arg17[%c0_396, %c0_397, %c0_398] : memref<1x1x32xf32, #tpu.memory_space<vmem>>, vector<1x1x32xf32>
    %449 = vector.shape_cast %448 : vector<1x1x32xf32> to vector<1x32xf32>
    %450 = vector.broadcast %449 : vector<1x32xf32> to vector<16x32xf32>
    %451 = arith.addf %447, %450 : vector<16x32xf32>
    %c0_399 = arith.constant 0 : index
    %c0_400 = arith.constant 0 : index
    %452 = vector.load %arg23[%c0_399, %c0_400] : memref<16x32xf32, #tpu.memory_space<vmem>>, vector<16x32xf32>
    tpu.vector_store %arg23[%c0_399, %c0_400], %451 {strides = array<i32>} : memref<16x32xf32, #tpu.memory_space<vmem>>, vector<16x32xf32>,
    %c1_i32 = arith.constant 1 : i32
    %453 = arith.cmpi eq, %arg0, %c1_i32 : i32
    %454 = arith.extui %453 : i1 to i32
    %c0_i32_401 = arith.constant 0 : i32
    %455 = arith.cmpi ne, %454, %c0_i32_401 : i32
    scf.if %455 {
      %456 = vector.shape_cast %451 : vector<16x32xf32> to vector<2x8x32xf32>
      %c0_402 = arith.constant 0 : index
      %c0_403 = arith.constant 0 : index
      %c0_404 = arith.constant 0 : index
      %457 = vector.load %arg22[%c0_402, %c0_403, %c0_404] : memref<2x8x32xf32, #tpu.memory_space<vmem>>, vector<2x8x32xf32>
      tpu.vector_store %arg22[%c0_402, %c0_403, %c0_404], %456 {strides = array<i32>} : memref<2x8x32xf32, #tpu.memory_space<vmem>>, vector<2x8x32xf32>,
    } else {
    }
    return
  }
  func.func @transform_0(%arg0: i32) -> (i32, i32, i32) {
    %c0_i32 = arith.constant 0 : i32
    %c0_i32_0 = arith.constant 0 : i32
    %c0_i32_1 = arith.constant 0 : i32
    %c0_i32_2 = arith.constant 0 : i32
    return %c0_i32, %c0_i32_0, %c0_i32_1 : i32, i32, i32
  }
  func.func @transform_1(%arg0: i32) -> (i32, i32, i32) {
    %c0_i32 = arith.constant 0 : i32
    %c0_i32_0 = arith.constant 0 : i32
    %c0_i32_1 = arith.constant 0 : i32
    %c0_i32_2 = arith.constant 0 : i32
    return %c0_i32, %c0_i32_0, %c0_i32_1 : i32, i32, i32
  }
  func.func @transform_2(%arg0: i32) -> (i32, i32, i32) {
    %c0_i32 = arith.constant 0 : i32
    %c0_i32_0 = arith.constant 0 : i32
    %c0_i32_1 = arith.constant 0 : i32
    %c0_i32_2 = arith.constant 0 : i32
    return %c0_i32, %c0_i32_0, %c0_i32_1 : i32, i32, i32
  }
  func.func @transform_3(%arg0: i32) -> (i32, i32, i32, i32, i32) {
    %c0_i32 = arith.constant 0 : i32
    %c0_i32_0 = arith.constant 0 : i32
    %c0_i32_1 = arith.constant 0 : i32
    %c0_i32_2 = arith.constant 0 : i32
    %c0_i32_3 = arith.constant 0 : i32
    return %arg0, %c0_i32, %c0_i32_0, %c0_i32_1, %c0_i32_2 : i32, i32, i32, i32, i32
  }
  func.func @transform_4(%arg0: i32) -> (i32, i32, i32, i32, i32) {
    %c0_i32 = arith.constant 0 : i32
    %c0_i32_0 = arith.constant 0 : i32
    %c0_i32_1 = arith.constant 0 : i32
    %c0_i32_2 = arith.constant 0 : i32
    %c0_i32_3 = arith.constant 0 : i32
    return %arg0, %c0_i32, %c0_i32_0, %c0_i32_1, %c0_i32_2 : i32, i32, i32, i32, i32
  }
  func.func @transform_5(%arg0: i32) -> (i32, i32, i32, i32) {
    %c0_i32 = arith.constant 0 : i32
    %c0_i32_0 = arith.constant 0 : i32
    %c0_i32_1 = arith.constant 0 : i32
    %c0_i32_2 = arith.constant 0 : i32
    return %arg0, %c0_i32, %c0_i32_0, %c0_i32_1 : i32, i32, i32, i32
  }
  func.func @transform_6(%arg0: i32) -> (i32, i32, i32) {
    %c0_i32 = arith.constant 0 : i32
    %c0_i32_0 = arith.constant 0 : i32
    %c0_i32_1 = arith.constant 0 : i32
    return %arg0, %c0_i32, %c0_i32_0 : i32, i32, i32
  }
  func.func @transform_7(%arg0: i32) -> (i32, i32, i32, i32, i32) {
    %c0_i32 = arith.constant 0 : i32
    %c0_i32_0 = arith.constant 0 : i32
    %c0_i32_1 = arith.constant 0 : i32
    %c0_i32_2 = arith.constant 0 : i32
    %c0_i32_3 = arith.constant 0 : i32
    return %arg0, %c0_i32, %c0_i32_0, %c0_i32_1, %c0_i32_2 : i32, i32, i32, i32, i32
  }
  func.func @transform_8(%arg0: i32) -> (i32, i32, i32, i32, i32) {
    %c0_i32 = arith.constant 0 : i32
    %c0_i32_0 = arith.constant 0 : i32
    %c0_i32_1 = arith.constant 0 : i32
    %c0_i32_2 = arith.constant 0 : i32
    %c0_i32_3 = arith.constant 0 : i32
    return %arg0, %c0_i32, %c0_i32_0, %c0_i32_1, %c0_i32_2 : i32, i32, i32, i32, i32
  }
  func.func @transform_9(%arg0: i32) -> (i32, i32, i32, i32) {
    %c0_i32 = arith.constant 0 : i32
    %c0_i32_0 = arith.constant 0 : i32
    %c0_i32_1 = arith.constant 0 : i32
    %c0_i32_2 = arith.constant 0 : i32
    return %arg0, %c0_i32, %c0_i32_0, %c0_i32_1 : i32, i32, i32, i32
  }
  func.func @transform_10(%arg0: i32) -> (i32, i32, i32) {
    %c0_i32 = arith.constant 0 : i32
    %c0_i32_0 = arith.constant 0 : i32
    %c0_i32_1 = arith.constant 0 : i32
    return %arg0, %c0_i32, %c0_i32_0 : i32, i32, i32
  }
  func.func @transform_11(%arg0: i32) -> (i32, i32, i32) {
    %c0_i32 = arith.constant 0 : i32
    %c0_i32_0 = arith.constant 0 : i32
    %c0_i32_1 = arith.constant 0 : i32
    return %arg0, %c0_i32, %c0_i32_0 : i32, i32, i32
  }
  func.func @transform_12(%arg0: i32) -> (i32, i32, i32) {
    %c0_i32 = arith.constant 0 : i32
    %c0_i32_0 = arith.constant 0 : i32
    %c0_i32_1 = arith.constant 0 : i32
    return %arg0, %c0_i32, %c0_i32_0 : i32, i32, i32
  }
  func.func @transform_13(%arg0: i32) -> (i32, i32, i32) {
    %c0_i32 = arith.constant 0 : i32
    %c0_i32_0 = arith.constant 0 : i32
    %c0_i32_1 = arith.constant 0 : i32
    return %arg0, %c0_i32, %c0_i32_0 : i32, i32, i32
  }
  func.func @transform_14(%arg0: i32) -> (i32, i32, i32) {
    %c0_i32 = arith.constant 0 : i32
    %c0_i32_0 = arith.constant 0 : i32
    %c0_i32_1 = arith.constant 0 : i32
    return %arg0, %c0_i32, %c0_i32_0 : i32, i32, i32
  }
  func.func @transform_15(%arg0: i32) -> (i32, i32, i32) {
    %c0_i32 = arith.constant 0 : i32
    %c0_i32_0 = arith.constant 0 : i32
    %c0_i32_1 = arith.constant 0 : i32
    return %arg0, %c0_i32, %c0_i32_0 : i32, i32, i32
  }
  func.func @transform_16(%arg0: i32) -> (i32, i32, i32) {
    %c0_i32 = arith.constant 0 : i32
    %c0_i32_0 = arith.constant 0 : i32
    %c0_i32_1 = arith.constant 0 : i32
    return %arg0, %c0_i32, %c0_i32_0 : i32, i32, i32
  }
  func.func @transform_17(%arg0: i32) -> (i32, i32, i32) {
    %c0_i32 = arith.constant 0 : i32
    %c0_i32_0 = arith.constant 0 : i32
    %c0_i32_1 = arith.constant 0 : i32
    return %arg0, %c0_i32, %c0_i32_0 : i32, i32, i32
  }
  func.func @transform_18(%arg0: i32) -> (i32, i32, i32) {
    %c0_i32 = arith.constant 0 : i32
    %c0_i32_0 = arith.constant 0 : i32
    %c0_i32_1 = arith.constant 0 : i32
    return %arg0, %c0_i32, %c0_i32_0 : i32, i32, i32
  }
  func.func @transform_19(%arg0: i32) -> (i32, i32, i32) {
    %c0_i32 = arith.constant 0 : i32
    %c0_i32_0 = arith.constant 0 : i32
    %c0_i32_1 = arith.constant 0 : i32
    return %arg0, %c0_i32, %c0_i32_0 : i32, i32, i32
  }
  func.func @transform_20(%arg0: i32) -> (i32, i32, i32) {
    %c0_i32 = arith.constant 0 : i32
    %c0_i32_0 = arith.constant 0 : i32
    %c0_i32_1 = arith.constant 0 : i32
    return %arg0, %c0_i32, %c0_i32_0 : i32, i32, i32
  }
  func.func @transform_21(%arg0: i32) -> (i32, i32, i32) {
    %c0_i32 = arith.constant 0 : i32
    %c0_i32_0 = arith.constant 0 : i32
    %c0_i32_1 = arith.constant 0 : i32
    %c0_i32_2 = arith.constant 0 : i32
    return %c0_i32, %c0_i32_0, %c0_i32_1 : i32, i32, i32
  }
}

</mosaic_0001>

<bundles_post_ra>
// kernel: tpu_custom_call.1
= control target key start
LH: loop header
LB: loop body
LE: loop exit
PB: predicated region body
PF: predicated region fallthrough
CT: control target
= control target key end

     0   :  { %s9076_s0 = inlined_call_operand.vmem [shape: f32[1,8,8], index: 0, kind: input, shape index: {}]   ;;  %s9077_s1 = inlined_call_operand.vmem [shape: f32[2,1,8], index: 1, kind: input, shape index: {}]   ;;  %s9078_s2 = inlined_call_operand.vmem [shape: f32[2,8,32], index: 2, kind: input, shape index: {}]   ;;  %s9079_s3 = inlined_call_operand.vmem [shape: f32[2,3,4,32,8], index: 3, kind: input, shape index: {}]   ;;  %s9080_s4 = inlined_call_operand.vmem [shape: f32[2,3,4,1,8], index: 4, kind: input, shape index: {}]   ;;  %s9081_s5 = inlined_call_operand.vmem [shape: f32[2,4,8,32], index: 5, kind: input, shape index: {}]   ;;  %s9082_s6 = inlined_call_operand.vmem [shape: f32[2,1,32], index: 6, kind: input, shape index: {}]   ;;  %s9083_s7 = inlined_call_operand.vmem [shape: f32[2,3,4,32,8], index: 7, kind: input, shape index: {}]   ;;  %s9084_s8 = inlined_call_operand.vmem [shape: f32[2,3,4,1,8], index: 8, kind: input, shape index: {}]   ;;  %s9085_s9 = inlined_call_operand.vmem [shape: f32[2,4,8,32], index: 9, kind: input, shape index: {}]   ;;  %s9086_s10 = inlined_call_operand.vmem [shape: f32[2,1,32], index: 10, kind: input, shape index: {}]   ;;  %s9087_s11 = inlined_call_operand.vmem [shape: f32[2,1,32], index: 11, kind: input, shape index: {}]   ;;  %s9088_s12 = inlined_call_operand.vmem [shape: f32[2,1,32], index: 12, kind: input, shape index: {}]   ;;  %s9089_s13 = inlined_call_operand.vmem [shape: f32[2,1,32], index: 13, kind: input, shape index: {}]   ;;  %s9090_s14 = inlined_call_operand.vmem [shape: f32[2,1,32], index: 14, kind: input, shape index: {}]   ;;  %s9091_s15 = inlined_call_operand.vmem [shape: f32[2,1,32], index: 15, kind: input, shape index: {}]   ;;  %s9092_s16 = inlined_call_operand.vmem [shape: f32[2,1,32], index: 16, kind: input, shape index: {}]   ;;  %s9093_s17 = inlined_call_operand.vmem [shape: f32[2,32,64], index: 17, kind: input, shape index: {}]   ;;  %s9094_s18 = inlined_call_operand.vmem [shape: f32[2,1,64], index: 18, kind: input, shape index: {}]   ;;  %s9095_s19 = inlined_call_operand.vmem [shape: f32[2,64,32], index: 19, kind: input, shape index: {}]   ;;  %s9096_s20 = inlined_call_operand.vmem [shape: f32[2,1,32], index: 20, kind: input, shape index: {}]   ;;  %s9097_s21 = inlined_call_operand.hbm [shape: f32[2,8,32], index: 21, kind: output, shape index: {}]  }
   0x1   :  { %9108 = sst [smem:[#allocation11_spill]] %s9076_s0 }
   0x2   :  { %9109 = sst [smem:[#allocation12_spill]] %s9077_s1 }
   0x3   :  { %9110 = sst [smem:[#allocation13_spill]] %s9078_s2 }
   0x4   :  { %9111 = sst [smem:[#allocation14_spill]] %s9079_s3 }
   0x5   :  { %9112 = sst [smem:[#allocation15_spill]] %s9080_s4 }
   0x6   :  { %9113 = sst [smem:[#allocation16_spill]] %s9081_s5 }
   0x7   :  { %9114 = sst [smem:[#allocation17_spill]] %s9083_s7 }
   0x8   :  { %9115 = sst [smem:[#allocation18_spill]] %s9084_s8 }
   0x9   :  { %9116 = sst [smem:[#allocation19_spill]] %s9085_s9 }
   0xa   :  { %9117 = sst [smem:[#allocation20_spill]] %s9090_s14 }
   0xb   :  { %9118 = sst [smem:[#allocation21_spill]] %s9094_s18 }
   0xc   :  { %9119 = sst [smem:[#allocation22_spill]] %s9095_s19 }
   0xd   :  { %9120 = sst [smem:[#allocation23_spill]] %s9096_s20 }
   0xe   :  { %9121 = sst [smem:[#allocation24_spill]] %s9097_s21 }
   0xf   :  { %26 = vsyncpa [#allocation4], 0  ;;  %s8405_s2 = smov 0  }
  0x10 LB: > { %9122 = sst [smem:[#allocation6_spill]] %s8288_s2  ;;  %s8411_s25 = sadd.s32 4294967295, %s8288_s2   ;;  %s8288_s2 = sphi %s8405_s2, %s32_s2  }
  0x11   : > { %9123 = sst [smem:[#allocation7_spill]] %s8411_s25  ;;  %p6892_p0 = scmp.ge.s32.totalorder %s8288_s2, 1 }
  0x12   : > { %p731_p1 = scmp.lt.s32.totalorder %s8288_s2, 3 }
  0x14   : > { %p732_p2 = pnand %p6892_p0, %p731_p1 }
  0x16   : > { %735 = sbr.rel (%p732_p2) target bundleno = 9652 (0x25b4), region = 104 }
  0x1d   : > { %p849_p3 = scmp.lt.s32.totalorder %s8411_s25, 1  ;;  %s9124_s4 = sld [smem:[#allocation16_spill]] }
  0x1e   : > { %s9126_s23 = sld [smem:[#allocation14_spill]]  ;;  %s9128_s19 = sld [smem:[#allocation15_spill]] }
  0x1f   : > { %s8417_s26 = scalar_select %p849_p3, %s8411_s25, 1 }
  0x20   : > { %s9129_s7 = sld [smem:[#allocation17_spill]]  ;;  %s9130_s8 = sld [smem:[#allocation18_spill]] }
  0x21   : > { %s8155_s27 = smul.u32 384, %s8417_s26  ;;  %s7177_s3 = sshll.u32 %s8417_s26, 5 }
  0x22   : > { %s8156_s28 = smul.u32 12, %s8417_s26  ;;  %s9131_s9 = sld [smem:[#allocation19_spill]] }
  0x23   : > { %s8425_s30 = scalar_lea.vmem %s9124_s4, %s7177_s3  ;;  %s900_s21 = scalar_lea.vmem %s9092_s16, %s8417_s26 }
  0x24   : > { %9125 = sst [smem:[#allocation8_spill]] %s8425_s30  ;;  %s8430_s1 = scalar_lea.vmem %s9126_s23, %s8155_s27 }
  0x25   : > { %9127 = sst [smem:[#allocation9_spill]] %s8430_s1  ;;  %s8439_s18 = scalar_lea.vmem %s9128_s19, %s8156_s28 }
  0x26   : > { %s8444_s4 = scalar_lea.vmem %s9129_s7, %s8155_s27  ;;  %s8449_s22 = scalar_lea.vmem %s9130_s8, %s8156_s28 }
  0x27   : > { %s8487_s27 = scalar_lea.vmem %s9093_s17, %s7177_s3  ;;  %s9134_s28 = sld [smem:[#allocation21_spill]] }
  0x28   : > { %s8454_s2 = scalar_lea.vmem %s9131_s9, %s7177_s3  ;;  %s7180_s7 = sshll.u32 %s8417_s26, 6 }
  0x29   : > { %9132 = sst [smem:[#allocation10_spill]] %s8454_s2  ;;  %s9135_s23 = sld [smem:[#allocation22_spill]] }
  0x2a   : > { %s9136_s24 = sld [smem:[#allocation23_spill]]  ;;  %s9137_s20 = sld [smem:[#allocation7_spill]] }
  0x2d   : > { %s908_s5 = scalar_lea.vmem %s9134_s28, %s8417_s26 }
  0x2f   : > { %s8497_s14 = scalar_lea.vmem %s9135_s23, %s7180_s7 }
  0x30   : > { %s916_s19 = scalar_lea.vmem %s9136_s24, %s8417_s26  ;;  %p6903_p4 = scmp.ne.s32.totalorder %s9137_s20, 0 }
  0x31   : > { %s9138_s25 = sld [smem:[#allocation13_spill]] (!%p6903_p4)  ;;  %vm923_vm0 = vcmask (!%p6903_p4), 261120  }
  0x32   : > { %920 = sbr.rel (%p6903_p4) target bundleno = 57 (0x39), region = 108 }
  0x37   : > { %v921_v0 = vld [vmem:[%s9138_s25] sm:$0xff] (!%p6903_p4)  ;;  %v922_v1 = vld [vmem:[%s9138_s25 + $0x8] sm:$0xff] (!%p6903_p4) }
  0x38   : > { %924 = vst.msk [vmem:[#allocation2] sm:$0xff] (!%p6903_p4), %vm923_vm0, %v921_v0  ;;  %925 = vst.msk [vmem:[#allocation2 + $0x8] sm:$0xff] (!%p6903_p4), %vm923_vm0, %v922_v1 }
  0x39 PF: > { %s9139_s7 = sld [smem:[#allocation9_spill]]  ;;  %vm966_vm1 = vcmask 261120   ;;  %v8290_v16 = vmov 0.0   ;;  %vm8291_vm2 = vmmov 0   ;;  %v6915_v19 = vld [vmem:[%s8439_s18 + $0x4] ss:$0 sm:$0xff]  ;;  %s9143_s25 = scalar_lea.vmem %s9082_s6, %s8417_s26 }
  0x3a   : > { %vm1224_vm3 = vcmask 64512   ;;  %v6907_v22 = vld [vmem:[%s8439_s18] ss:$0 sm:$0xff]  ;;  %s9140_s28 = sld [smem:[#allocation11_spill]]  ;;  %s9141_s9 = sld [smem:[#allocation12_spill]]  ;;  %vm6531_vm4 = vcmask 523264  }
  0x3b   : > { %v6923_v57 = vld [vmem:[%s8439_s18 + $0x8] ss:$0 sm:$0xff]  ;;  %s9142_s29 = sld [smem:[#allocation8_spill]]  ;;  %s9145_s1 = scalar_lea.vmem %s9087_s11, %s8417_s26 }
  0x3c   : > { %s9148_s3 = scalar_lea.vmem %s9086_s10, %s8417_s26  ;;  %s9149_s0 = scalar_lea.vmem %s9089_s13, %s8417_s26 }
  0x3d   : > { %s9150_s23 = sld [smem:[#allocation20_spill]] }
  0x3f   : > { %v955_v2 = vld [vmem:[%s9139_s7] sm:$0xff]  ;;  %v956_v3 = vld [vmem:[%s9139_s7 + $0x8] sm:$0xff]  ;;  %v957_v4 = vld [vmem:[%s9139_s7 + $0x10] sm:$0xff] }
  0x40   : > { %v7923_v5 = vpack.c.bf16 %v956_v3, %v955_v2  ;;  %v958_v6 = vld [vmem:[%s9139_s7 + $0x18] sm:$0xff]  ;;  %v8514_v7 = vld [vmem:[#allocation2] sm:$0xff]  ;;  %v6911_v10 = vld [vmem:[%s9139_s7 + $0x88] sm:$0xff] }
  0x41   : > { %v7927_v8 = vpack.c.bf16 %v958_v6, %v957_v4  ;;  %7437 = vmatprep.mubr.msk.f32.mxu1 %vm966_vm1, %v8514_v7  ;;  %v6910_v9 = vld [vmem:[%s9139_s7 + $0x80] sm:$0xff]  ;;  %7459 = vmatprep.mubr.msk.f32.mxu0 %vm966_vm1, %v8514_v7  ;;  %v6912_v12 = vld [vmem:[%s9139_s7 + $0x90] sm:$0xff]  ;;  %v6913_v13 = vld [vmem:[%s9139_s7 + $0x98] sm:$0xff] }
  0x42   : > { %7924 = vmatprep.subr.bf16.mxu1 %v7923_v5  ;;  %v7931_v11 = vpack.c.bf16 %v6911_v10, %v6910_v9  ;;  %v8524_v14 = vld [vmem:[#allocation2 + $0x8] sm:$0xff]  ;;  %v7935_v15 = vpack.c.bf16 %v6913_v13, %v6912_v12  ;;  %v6918_v27 = vld [vmem:[%s9139_s7 + $0x100] sm:$0xff]  ;;  %v6920_v29 = vld [vmem:[%s9139_s7 + $0x110] sm:$0xff] }
  0x43   : > { %7926 = vmatpush3.bf16.msra.mxu1 %v7923_v5  ;;  %v6919_v28 = vld [vmem:[%s9139_s7 + $0x108] sm:$0xff]  ;;  %v6921_v31 = vld [vmem:[%s9139_s7 + $0x118] sm:$0xff]  ;;  %v930_v33 = vld [vmem:[%s9140_s28] sm:$0xff]  ;;  %s9151_s24 = scalar_lea.vmem %s9150_s23, %s8417_s26 }
  0x44   : > { %7928 = vmatprep.subr.bf16.mxu1 %v7927_v8  ;;  %v7939_v30 = vpack.c.bf16 %v6919_v28, %v6918_v27  ;;  %v7943_v32 = vpack.c.bf16 %v6921_v31, %v6920_v29  ;;  %v6904_v34 = vld [vmem:[%s9141_s9] ss:$0 sm:$0xff]  ;;  %v6905_v36 = vld [vmem:[%s9141_s9 + $0x1] ss:$0 sm:$0xff]  ;;  %v6943_v5 = vld [vmem:[%s9139_s7 + $0xa8] sm:$0xff] }
  0x45   : > { %v8562_v35 = vadd.f32 %v6904_v34, %v930_v33  ;;  %v8568_v40 = vadd.f32 %v6905_v36, %v930_v33  ;;  %v1545_v3 = vld [vmem:[%s9142_s29] sm:$0xff]  ;;  %v6935_v9 = vld [vmem:[%s9139_s7 + $0x28] sm:$0xff]  ;;  %v6937_v12 = vld [vmem:[%s9139_s7 + $0x38] sm:$0xff] }
  0x46   : > { %7940 = vmatprep.subr.bf16.mxu0 %v7939_v30  ;;  %v6942_v4 = vld [vmem:[%s9139_s7 + $0xa0] sm:$0xff]  ;;  %v6951_v34 = vld [vmem:[%s9139_s7 + $0x128] sm:$0xff]  ;;  %v6952_v36 = vld [vmem:[%s9139_s7 + $0x130] sm:$0xff] }
  0x47   : > { %7930 = vmatpush3.bf16.msra.mxu1 %v7927_v8  ;;  %7942 = vmatpush3.bf16.msra.mxu0 %v7939_v30  ;;  %v7955_v6 = vpack.c.bf16 %v6943_v5, %v6942_v4  ;;  %v6934_v8 = vld [vmem:[%s9139_s7 + $0x20] sm:$0xff] }
  0x48   : > { %7932 = vmatprep.subr.bf16.mxu1 %v7931_v11  ;;  %7944 = vmatprep.subr.bf16.mxu0 %v7943_v32  ;;  %v7947_v10 = vpack.c.bf16 %v6935_v9, %v6934_v8  ;;  %v6939_v27 = vld [vmem:[%s8439_s18 + $0x1] ss:$0 sm:$0xff]  ;;  %v6976_v9 = vld [vmem:[%s9139_s7 + $0xc8] sm:$0xff] }
  0x49   : > { %v6950_v33 = vld [vmem:[%s9139_s7 + $0x120] sm:$0xff] }
  0x4a   : > { %7438 = vmatmul.mubr.msk.f32.vlgmr.msra.gmra.mrb[0].mxu1 %vm966_vm1, %v8524_v14  ;;  %v6975_v8 = vld [vmem:[%s9139_s7 + $0xc0] sm:$0xff] }
  0x4b   : > { %7934 = vmatpush3.bf16.msra.mxu1 %v7931_v11  ;;  %7448 = vmatprep.mubr.msk.f32.mxu1 %vm966_vm1, %v8514_v7  ;;  %v6936_v11 = vld [vmem:[%s9139_s7 + $0x30] sm:$0xff] }
  0x4c   : > { %7936 = vmatprep.subr.bf16.mxu1 %v7935_v15  ;;  %7946 = vmatpush3.bf16.msra.mxu0 %v7943_v32  ;;  %v7951_v13 = vpack.c.bf16 %v6937_v12, %v6936_v11  ;;  %v6967_v11 = vld [vmem:[%s9139_s7 + $0x40] sm:$0xff]  ;;  %v6968_v12 = vld [vmem:[%s9139_s7 + $0x48] sm:$0xff] }
  0x4d   : > { %7472 = vmatprep.subr.mxu0 %v8290_v16 }
  0x4f   : > { %7938 = vmatpush3.bf16.msra.mxu1 %v7935_v15  ;;  %7460 = vmatmul.mubr.msk.f32.vlgmr.msra.gmra.mrb[0].mxu0 %vm966_vm1, %v8524_v14 }
  0x50   : > { %7462 = vmatprep.subr.mxu1 %v8290_v16  ;;  %7474 = vmatprep.mubr.msk.f32.mxu0 %vm8291_vm2, %v8290_v16 }
  0x52   : > { %7449 = vmatmul.mubr.msk.f32.vlgmr.msra.gmra.mrb[2].mxu1 %vm966_vm1, %v8524_v14 }
  0x53   : > { %7464 = vmatprep.mubr.msk.f32.mxu1 %vm8291_vm2, %v8290_v16 }
 0x11d   : > { %v7439_v17 = vpop.f32.mrb[0].mxu1 }
 0x11e   : > { %v1039_v18 = vpop.f32.mrb[1].mxu1  ;;  %v1045_v26 = vadd.f32 %v7439_v17, %v6907_v22  ;;  %v6944_v17 = vld [vmem:[%s9139_s7 + $0xb0] sm:$0xff] }
 0x11f   : > { %v1040_v24 = vadd.f32 %v6907_v22, %v1039_v18  ;;  %v6945_v18 = vld [vmem:[%s9139_s7 + $0xb8] sm:$0xff] }
 0x122   : > { %v7461_v56 = vpop.f32.mrb[0].mxu0 }
 0x123   : > { %v1215_v58 = vpop.f32.mrb[1].mxu0  ;;  %v1221_v60 = vadd.f32 %v7461_v56, %v6923_v57 }
 0x124   : > { %v1216_v59 = vadd.f32 %v6923_v57, %v1215_v58 }
 0x125   : > { %v7450_v20 = vpop.f32.mrb[2].mxu1 }
 0x126   : > { %v1127_v21 = vpop.f32.mrb[3].mxu1  ;;  %v1133_v25 = vadd.f32 %v7450_v20, %v6915_v19  ;;  %7473 = vmatpush3.msra.mxu0 %v1216_v59  ;;  %v7959_v20 = vpack.c.bf16 %v6945_v18, %v6944_v17  ;;  %v6970_v17 = vld [vmem:[%s9139_s7 + $0x58] sm:$0xff] }
 0x127   : > { %v1128_v23 = vadd.f32 %v6915_v19, %v1127_v21  ;;  %7482 = vmatprep.subr.mxu0 %v1545_v3 }
 0x129   : > { %7463 = vmatpush3.xpose.msk.msra.mxu1 %vm1224_vm3, %v1128_v23 }
 0x12a   : > { %7467 = vmatprep.subr.mxu1 %v8290_v16 }
 0x12c   : > { %7465 = vmatmul.mubr.msk.f32.vlgmr.msra.gmra.mrb[4].mxu1 %vm1224_vm3, %v1040_v24 }
 0x12d   : > { %7468 = vmatpush3.xpose.msk.msra.mxu1 %vm1224_vm3, %v1133_v25  ;;  %7469 = vmatprep.mubr.msk.f32.mxu1 %vm8291_vm2, %v8290_v16  ;;  %v6947_v25 = vld [vmem:[%s8439_s18 + $0x5] ss:$0 sm:$0xff] }
 0x12e   : > { %7477 = vmatprep.subr.mxu1 %v8290_v16 }
 0x130   : > { %7470 = vmatmul.mubr.msk.f32.vlgmr.msra.gmra.mrb[6].mxu1 %vm1224_vm3, %v1045_v26 }
 0x131   : > { %7479 = vmatprep.mubr.msk.f32.mxu1 %vm8291_vm2, %v8290_v16  ;;  %7478 = vmatpush3.msra.mxu1 %v1221_v60  ;;  %v6955_v60 = vld [vmem:[%s8439_s18 + $0x9] ss:$0 sm:$0xff] }
 0x132   : > { %7948 = vmatprep.subr.bf16.mxu1 %v7947_v10 }
 0x1ff   : > { %v1297_v37 = vpop.f32.mrb[4].mxu1 }
 0x200   : > { %v1298_v38 = vadd.f32 %v1297_v37, %v8562_v35  ;;  %v7466_v39 = vpop.f32.mrb[5].mxu1  ;;  %v7963_v37 = vpack.c.bf16 %v6951_v34, %v6950_v33 }
 0x202   : > { %v1377_v41 = vsel %vm1224_vm3, %v1298_v38, -inf }
 0x203   : > { %1378 = vmax.xlane.f32.xlu0 %v1377_v41  ;;  %v1373_v42 = vpop.f32.mrb[6].mxu1 }
 0x204   : > { %v1374_v43 = vadd.f32 %v1373_v42, %v8568_v40  ;;  %v7471_v44 = vpop.f32.mrb[7].mxu1 }
 0x206   : > { %v1380_v45 = vsel %vm1224_vm3, %v1374_v43, -inf }
 0x207   : > { %1381 = vmax.xlane.f32.xlu0 %v1380_v45 }
 0x290   : > { %v1379_v46 = vpop.xlane.xlu0 %1378 }
 0x291   : > { %v1383_v47 = vsub.f32 %v1298_v38, %v1379_v46  ;;  %v6953_v38 = vld [vmem:[%s9139_s7 + $0x138] sm:$0xff] }
 0x292   : > { %v7967_v39 = vpack.c.bf16 %v6953_v38, %v6952_v36  ;;  %v6972_v38 = vld [vmem:[%s8439_s18 + $0x2] ss:$0 sm:$0xff] }
 0x293   : > { %v1385_v48 = vmul.f32 1.442695, %v1383_v47 }
 0x294   : > { %v1382_v49 = vpop.xlane.xlu0 %1381 }
 0x295   : > { %8176 = vpow2.f32 %v1385_v48  ;;  %v1384_v50 = vsub.f32 %v1374_v43, %v1382_v49 }
 0x297   : > { %v1387_v51 = vmul.f32 1.442695, %v1384_v50 }
 0x299   : > { %8178 = vpow2.f32 %v1387_v51 }
 0x29f   : > { %v8177_v52 = vpop.eup %8176 }
 0x2a0   : > { %v1389_v53 = vsel %vm1224_vm3, %v8177_v52, 0.0 }
 0x2a1   : > { %1390 = vadd.xlane.f32.xlu1 %v1389_v53 }
 0x2a3   : > { %v8179_v54 = vpop.eup %8178 }
 0x2a4   : > { %v1392_v55 = vsel %vm1224_vm3, %v8179_v54, 0.0 }
 0x2a5   : > { %1393 = vadd.xlane.f32.xlu1 %v1392_v55 }
 0x32e   : > { %v1391_v61 = vpop.xlane.xlu1 %1390 }
 0x32f   : > { %8180 = vrcp.f32 %v1391_v61 }
 0x332   : > { %v1394_v62 = vpop.xlane.xlu1 %1393 }
 0x333   : > { %8182 = vrcp.f32 %v1394_v62 }
 0x339   : > { %v8181_v63 = vpop.eup %8180 }
 0x33a   : > { %v1397_v0 = vmul.f32 %v8181_v63, %v8177_v52 }
 0x33c   : > { %7475 = vmatmul.mubr.msk.f32.vlgmr.msra.gmra.mrb[2].mxu0 %vm1224_vm3, %v1397_v0 }
 0x33d   : > { %v8183_v1 = vpop.eup %8182  ;;  %7483 = vmatpush3.msra.mxu0 %v1545_v3 }
 0x33e   : > { %v1398_v2 = vmul.f32 %v8183_v1, %v8179_v54  ;;  %7956 = vmatprep.subr.bf16.mxu0 %v7955_v6 }
 0x340   : > { %7480 = vmatmul.mubr.msk.f32.vlgmr.msra.gmra.mrb[8].mxu1 %vm1224_vm3, %v1398_v2 }
 0x341   : > { %7495 = vmatprep.mubr.msk.f32.mxu1 %vm966_vm1, %v8514_v7  ;;  %7950 = vmatpush3.bf16.msra.mxu1 %v7947_v10  ;;  %v7979_v10 = vpack.c.bf16 %v6976_v9, %v6975_v8 }
 0x342   : > { %7952 = vmatprep.subr.bf16.mxu1 %v7951_v13 }
 0x345   : > { %7954 = vmatpush3.bf16.msra.mxu1 %v7951_v13  ;;  %v7971_v13 = vpack.c.bf16 %v6968_v12, %v6967_v11  ;;  %v7008_v11 = vld [vmem:[%s9139_s7 + $0xe0] sm:$0xff]  ;;  %v7009_v12 = vld [vmem:[%s9139_s7 + $0xe8] sm:$0xff] }
 0x346   : > { %7964 = vmatprep.subr.bf16.mxu1 %v7963_v37 }
 0x348   : > { %7496 = vmatmul.mubr.msk.f32.vlgmr.msra.gmra.mrb[10].mxu1 %vm966_vm1, %v8524_v14 }
 0x349   : > { %7517 = vmatprep.mubr.msk.f32.mxu1 %vm966_vm1, %v8514_v7  ;;  %7966 = vmatpush3.bf16.msra.mxu1 %v7963_v37  ;;  %v6980_v37 = vld [vmem:[%s8439_s18 + $0x6] ss:$0 sm:$0xff] }
 0x34a   : > { %7968 = vmatprep.subr.bf16.mxu1 %v7967_v39 }
 0x34d   : > { %7970 = vmatpush3.bf16.msra.mxu1 %v7967_v39 }
 0x34e   : > { %7530 = vmatprep.subr.mxu1 %v8290_v16 }
 0x350   : > { %7518 = vmatmul.mubr.msk.f32.vlgmr.msra.gmra.mrb[12].mxu1 %vm966_vm1, %v8524_v14 }
 0x351   : > { %7532 = vmatprep.mubr.msk.f32.mxu1 %vm8291_vm2, %v8290_v16 }
 0x40f   : > { %v1468_v15 = vpop.f32.mrb[2].mxu0 }
 0x410   : > { %v7476_v19 = vpop.f32.mrb[3].mxu0  ;;  %7484 = vmatprep.mubr.msk.f32.mxu0 %vm1224_vm3, %v1468_v15  ;;  %v6969_v15 = vld [vmem:[%s9139_s7 + $0x50] sm:$0xff] }
 0x411   : > { %v7975_v18 = vpack.c.bf16 %v6970_v17, %v6969_v15  ;;  %v6983_v19 = vld [vmem:[%s9139_s7 + $0x140] sm:$0xff]  ;;  %v7001_v17 = vld [vmem:[%s9139_s7 + $0x68] sm:$0xff] }
 0x412   : > { %v7000_v15 = vld [vmem:[%s9139_s7 + $0x60] sm:$0xff] }
 0x413   : > { %v1541_v21 = vpop.f32.mrb[8].mxu1 }
 0x414   : > { %v7481_v22 = vpop.f32.mrb[9].mxu1  ;;  %7485 = vmatmul.mubr.msk.f32.vlgmr.msra.gmra.mrb[4].mxu0 %vm1224_vm3, %v1541_v21  ;;  %v6985_v21 = vld [vmem:[%s9139_s7 + $0x150] sm:$0xff] }
 0x415   : > { %7958 = vmatpush3.bf16.msra.mxu0 %v7955_v6  ;;  %7506 = vmatprep.mubr.msk.f32.mxu0 %vm966_vm1, %v8514_v7  ;;  %v6964_v6 = vld [vmem:[%s9142_s29 + $0x8] sm:$0xff] }
 0x416   : > { %7960 = vmatprep.subr.bf16.mxu0 %v7959_v20 }
 0x419   : > { %7962 = vmatpush3.bf16.msra.mxu0 %v7959_v20  ;;  %v6984_v20 = vld [vmem:[%s9139_s7 + $0x148] sm:$0xff] }
 0x41a   : > { %7520 = vmatprep.subr.mxu0 %v8290_v16  ;;  %v7987_v22 = vpack.c.bf16 %v6984_v20, %v6983_v19  ;;  %v7002_v19 = vld [vmem:[%s9139_s7 + $0x70] sm:$0xff]  ;;  %v7003_v20 = vld [vmem:[%s9139_s7 + $0x78] sm:$0xff] }
 0x41b   : > { %v7497_v23 = vpop.f32.mrb[10].mxu1 }
 0x41c   : > { %7507 = vmatmul.mubr.msk.f32.vlgmr.msra.gmra.mrb[6].mxu0 %vm966_vm1, %v8524_v14  ;;  %v1708_v24 = vpop.f32.mrb[11].mxu1  ;;  %v1714_v32 = vadd.f32 %v7497_v23, %v6939_v27  ;;  %v6986_v23 = vld [vmem:[%s9139_s7 + $0x158] sm:$0xff] }
 0x41d   : > { %7522 = vmatprep.mubr.msk.f32.mxu0 %vm8291_vm2, %v8290_v16  ;;  %v1709_v30 = vadd.f32 %v6939_v27, %v1708_v24  ;;  %v7991_v24 = vpack.c.bf16 %v6986_v23, %v6985_v21  ;;  %v6978_v27 = vld [vmem:[%s9139_s7 + $0xd8] sm:$0xff]  ;;  %v7999_v21 = vpack.c.bf16 %v7003_v20, %v7002_v19 }
 0x41e   : > { %v7011_v23 = vld [vmem:[%s9139_s7 + $0xf8] sm:$0xff] }
 0x423   : > { %v7519_v59 = vpop.f32.mrb[12].mxu1 }
 0x424   : > { %v1884_v61 = vpop.f32.mrb[13].mxu1  ;;  %v1890_v63 = vadd.f32 %v7519_v59, %v6955_v60 }
 0x425   : > { %v1885_v62 = vadd.f32 %v6955_v60, %v1884_v61 }
 0x427   : > { %7531 = vmatpush3.msra.mxu1 %v1885_v62 }
 0x428   : > { %7972 = vmatprep.subr.bf16.mxu1 %v7971_v13 }
 0x4ef   : > { %v7508_v26 = vpop.f32.mrb[6].mxu0 }
 0x4f0   : > { %v1796_v28 = vpop.f32.mrb[7].mxu0  ;;  %v1802_v31 = vadd.f32 %v7508_v26, %v6947_v25  ;;  %v6977_v26 = vld [vmem:[%s9139_s7 + $0xd0] sm:$0xff] }
 0x4f1   : > { %v1797_v29 = vadd.f32 %v6947_v25, %v1796_v28 }
 0x4f3   : > { %7521 = vmatpush3.xpose.msk.msra.mxu0 %vm1224_vm3, %v1797_v29  ;;  %v7983_v29 = vpack.c.bf16 %v6978_v27, %v6977_v26 }
 0x4f4   : > { %7525 = vmatprep.subr.mxu0 %v8290_v16 }
 0x4f6   : > { %7523 = vmatmul.mubr.msk.f32.vlgmr.msra.gmra.mrb[8].mxu0 %vm1224_vm3, %v1709_v30 }
 0x4f7   : > { %7526 = vmatpush3.xpose.msk.msra.mxu0 %vm1224_vm3, %v1802_v31  ;;  %7527 = vmatprep.mubr.msk.f32.mxu0 %vm8291_vm2, %v8290_v16 }
 0x4f8   : > { %7535 = vmatprep.subr.mxu0 %v8290_v16 }
 0x4fa   : > { %7528 = vmatmul.mubr.msk.f32.vlgmr.msra.gmra.mrb[10].mxu0 %vm1224_vm3, %v1714_v32 }
 0x4fb   : > { %7537 = vmatprep.mubr.msk.f32.mxu0 %vm8291_vm2, %v8290_v16  ;;  %7536 = vmatpush3.msra.mxu0 %v1890_v63 }
 0x4fc   : > { %7540 = vmatprep.subr.mxu0 %v6964_v6 }
 0x5c9   : > { %v1965_v41 = vpop.f32.mrb[8].mxu0 }
 0x5ca   : > { %v1966_v42 = vadd.f32 %v1965_v41, %v8562_v35  ;;  %v7524_v43 = vpop.f32.mrb[9].mxu0  ;;  %v6988_v41 = vld [vmem:[%s8439_s18 + $0xa] ss:$0 sm:$0xff] }
 0x5cc   : > { %v2045_v44 = vsel %vm1224_vm3, %v1966_v42, -inf }
 0x5cd   : > { %2046 = vmax.xlane.f32.xlu0 %v2045_v44  ;;  %v2041_v45 = vpop.f32.mrb[10].mxu0 }
 0x5ce   : > { %v2042_v46 = vadd.f32 %v2041_v45, %v8568_v40  ;;  %v7529_v47 = vpop.f32.mrb[11].mxu0 }
 0x5d0   : > { %v2048_v48 = vsel %vm1224_vm3, %v2042_v46, -inf }
 0x5d1   : > { %2049 = vmax.xlane.f32.xlu1 %v2048_v48 }
 0x65a   : > { %v2047_v49 = vpop.xlane.xlu0 %2046 }
 0x65b   : > { %v2051_v50 = vsub.f32 %v1966_v42, %v2047_v49 }
 0x65d   : > { %v2053_v51 = vmul.f32 1.442695, %v2051_v50 }
 0x65e   : > { %v2050_v52 = vpop.xlane.xlu1 %2049 }
 0x65f   : > { %8184 = vpow2.f32 %v2053_v51  ;;  %v2052_v53 = vsub.f32 %v2042_v46, %v2050_v52 }
 0x661   : > { %v2055_v54 = vmul.f32 1.442695, %v2052_v53 }
 0x663   : > { %8186 = vpow2.f32 %v2055_v54 }
 0x669   : > { %v8185_v55 = vpop.eup %8184 }
 0x66a   : > { %v2057_v56 = vsel %vm1224_vm3, %v8185_v55, 0.0 }
 0x66b   : > { %2058 = vadd.xlane.f32.xlu0 %v2057_v56 }
 0x66d   : > { %v8187_v57 = vpop.eup %8186 }
 0x66e   : > { %v2060_v58 = vsel %vm1224_vm3, %v8187_v57, 0.0 }
 0x66f   : > { %2061 = vadd.xlane.f32.xlu1 %v2060_v58 }
 0x6f8   : > { %v2059_v0 = vpop.xlane.xlu0 %2058 }
 0x6f9   : > { %8188 = vrcp.f32 %v2059_v0 }
 0x6fc   : > { %v2062_v1 = vpop.xlane.xlu1 %2061 }
 0x6fd   : > { %8190 = vrcp.f32 %v2062_v1 }
 0x703   : > { %v8189_v2 = vpop.eup %8188 }
 0x704   : > { %v2065_v3 = vmul.f32 %v8189_v2, %v8185_v55 }
 0x706   : > { %7533 = vmatmul.mubr.msk.f32.vlgmr.msra.gmra.mrb[14].mxu1 %vm1224_vm3, %v2065_v3  ;;  %v6997_v3 = vld [vmem:[%s9142_s29 + $0x10] sm:$0xff] }
 0x707   : > { %v8191_v4 = vpop.eup %8190  ;;  %7553 = vmatprep.mubr.msk.f32.mxu1 %vm966_vm1, %v8514_v7  ;;  %7974 = vmatpush3.bf16.msra.mxu1 %v7971_v13  ;;  %v8003_v13 = vpack.c.bf16 %v7009_v12, %v7008_v11  ;;  %v7030_v11 = vld [vmem:[%s9142_s29 + $0x18] sm:$0xff]  ;;  %s9146_s29 = scalar_lea.vmem %s9088_s12, %s8417_s26 }
 0x708   : > { %v2066_v5 = vmul.f32 %v8191_v4, %v8187_v57  ;;  %7976 = vmatprep.subr.bf16.mxu1 %v7975_v18 }
 0x70a   : > { %7538 = vmatmul.mubr.msk.f32.vlgmr.msra.gmra.mrb[12].mxu0 %vm1224_vm3, %v2066_v5 }
 0x70b   : > { %7541 = vmatpush3.msra.mxu0 %v6964_v6  ;;  %7978 = vmatpush3.bf16.msra.mxu1 %v7975_v18  ;;  %v7995_v18 = vpack.c.bf16 %v7001_v17, %v7000_v15 }
 0x70c   : > { %7980 = vmatprep.subr.bf16.mxu0 %v7979_v10  ;;  %7988 = vmatprep.subr.bf16.mxu1 %v7987_v22 }
 0x70e   : > { %7554 = vmatmul.mubr.msk.f32.vlgmr.msra.gmra.mrb[16].mxu1 %vm966_vm1, %v8524_v14 }
 0x70f   : > { %7575 = vmatprep.mubr.msk.f32.mxu1 %vm966_vm1, %v8514_v7  ;;  %7990 = vmatpush3.bf16.msra.mxu1 %v7987_v22  ;;  %v7010_v22 = vld [vmem:[%s9139_s7 + $0xf0] sm:$0xff] }
 0x710   : > { %7992 = vmatprep.subr.bf16.mxu1 %v7991_v24  ;;  %v8007_v27 = vpack.c.bf16 %v7011_v23, %v7010_v22 }
 0x713   : > { %7994 = vmatpush3.bf16.msra.mxu1 %v7991_v24 }
 0x714   : > { %7583 = vmatprep.subr.mxu1 %v8290_v16 }
 0x716   : > { %7576 = vmatmul.mubr.msk.f32.vlgmr.msra.gmra.mrb[18].mxu1 %vm966_vm1, %v8524_v14 }
 0x717   : > { %7585 = vmatprep.mubr.msk.f32.mxu1 %vm8291_vm2, %v8290_v16 }
 0x7d9   : > { %v2136_v25 = vpop.f32.mrb[14].mxu1 }
 0x7da   : > { %v7534_v28 = vpop.f32.mrb[15].mxu1  ;;  %7542 = vmatprep.mubr.msk.f32.mxu0 %vm1224_vm3, %v2136_v25 }
 0x7dd   : > { %v2209_v30 = vpop.f32.mrb[12].mxu0 }
 0x7de   : > { %v7539_v31 = vpop.f32.mrb[13].mxu0  ;;  %7543 = vmatmul.mubr.msk.f32.vlgmr.msra.gmra.mrb[4].mxu0 %vm1224_vm3, %v2209_v30 }
 0x7df   : > { %7982 = vmatpush3.bf16.msra.mxu0 %v7979_v10  ;;  %7564 = vmatprep.mubr.msk.f32.mxu0 %vm966_vm1, %v8514_v7  ;;  %v7013_v31 = vld [vmem:[%s8439_s18 + $0x7] ss:$0 sm:$0xff] }
 0x7e0   : > { %7984 = vmatprep.subr.bf16.mxu0 %v7983_v29 }
 0x7e1   : > { %v7555_v32 = vpop.f32.mrb[16].mxu1 }
 0x7e2   : > { %v2377_v33 = vpop.f32.mrb[17].mxu1  ;;  %v2383_v45 = vadd.f32 %v7555_v32, %v6972_v38 }
 0x7e3   : > { %7986 = vmatpush3.bf16.msra.mxu0 %v7983_v29  ;;  %v2378_v46 = vadd.f32 %v6972_v38, %v2377_v33  ;;  %v7005_v33 = vld [vmem:[%s8439_s18 + $0x3] ss:$0 sm:$0xff] }
 0x7e4   : > { %7578 = vmatprep.subr.mxu0 %v8290_v16 }
 0x7e6   : > { %7565 = vmatmul.mubr.msk.f32.vlgmr.msra.gmra.mrb[14].mxu0 %vm966_vm1, %v8524_v14 }
 0x7e7   : > { %7580 = vmatprep.mubr.msk.f32.mxu0 %vm8291_vm2, %v8290_v16 }
 0x7e9   : > { %v7577_v34 = vpop.f32.mrb[18].mxu1 }
 0x7ea   : > { %v2553_v36 = vpop.f32.mrb[19].mxu1  ;;  %v2559_v47 = vadd.f32 %v7577_v34, %v6988_v41 }
 0x7eb   : > { %v2554_v48 = vadd.f32 %v6988_v41, %v2553_v36  ;;  %v7016_v41 = vld [vmem:[%s9139_s7 + $0x160] sm:$0xff] }
 0x8b9   : > { %v7566_v39 = vpop.f32.mrb[14].mxu0 }
 0x8ba   : > { %v2471_v42 = vadd.f32 %v7566_v39, %v6980_v37  ;;  %v2465_v43 = vpop.f32.mrb[15].mxu0 }
 0x8bb   : > { %v2466_v44 = vadd.f32 %v6980_v37, %v2465_v43  ;;  %v7018_v43 = vld [vmem:[%s9139_s7 + $0x170] sm:$0xff] }
 0x8bc   : > { %7584 = vmatpush3.xpose.msk.msra.mxu1 %vm1224_vm3, %v2471_v42  ;;  %v7017_v42 = vld [vmem:[%s9139_s7 + $0x168] sm:$0xff] }
 0x8bd   : > { %7579 = vmatpush3.xpose.msk.msra.mxu0 %vm1224_vm3, %v2466_v44  ;;  %7593 = vmatprep.subr.mxu1 %v8290_v16  ;;  %v8011_v44 = vpack.c.bf16 %v7017_v42, %v7016_v41  ;;  %v3692_v41 = vld [vmem:[%s8444_s4 + $0x8] sm:$0xff]  ;;  %v7041_v42 = vld [vmem:[%s8444_s4 + $0x90] sm:$0xff] }
 0x8be   : > { %7588 = vmatprep.subr.mxu0 %v8290_v16 }
 0x8bf   : > { %7586 = vmatmul.mubr.msk.f32.vlgmr.msra.gmra.mrb[20].mxu1 %vm1224_vm3, %v2383_v45  ;;  %v7019_v45 = vld [vmem:[%s9139_s7 + $0x178] sm:$0xff]  ;;  %s9144_s7 = sld [smem:[#allocation13_spill]] }
 0x8c0   : > { %7581 = vmatmul.mubr.msk.f32.vlgmr.msra.gmra.mrb[16].mxu0 %vm1224_vm3, %v2378_v46  ;;  %7594 = vmatpush3.msra.mxu1 %v2559_v47  ;;  %v8015_v46 = vpack.c.bf16 %v7019_v45, %v7018_v43 }
 0x8c1   : > { %7589 = vmatpush3.msra.mxu0 %v2554_v48  ;;  %7595 = vmatprep.mubr.msk.f32.mxu1 %vm8291_vm2, %v8290_v16 }
 0x8c2   : > { %7590 = vmatprep.mubr.msk.f32.mxu0 %vm8291_vm2, %v8290_v16  ;;  %7598 = vmatprep.subr.mxu0 %v6997_v3 }
 0x8c3   : > { %7996 = vmatprep.subr.bf16.mxu1 %v7995_v18 }
 0x992   : > { %v2710_v49 = vpop.f32.mrb[20].mxu1 }
 0x993   : > { %v2711_v50 = vadd.f32 %v2710_v49, %v8568_v40  ;;  %v2634_v51 = vpop.f32.mrb[16].mxu0  ;;  %v7587_v52 = vpop.f32.mrb[21].mxu1 }
 0x994   : > { %v2635_v53 = vadd.f32 %v2634_v51, %v8562_v35  ;;  %v7582_v54 = vpop.f32.mrb[17].mxu0 }
 0x995   : > { %v2717_v55 = vsel %vm1224_vm3, %v2711_v50, -inf }
 0x996   : > { %2718 = vmax.xlane.f32.xlu1 %v2717_v55  ;;  %v2714_v56 = vsel %vm1224_vm3, %v2635_v53, -inf }
 0x997   : > { %2715 = vmax.xlane.f32.xlu0 %v2714_v56 }
 0xa23   : > { %v2719_v57 = vpop.xlane.xlu1 %2718 }
 0xa24   : > { %v2721_v58 = vsub.f32 %v2711_v50, %v2719_v57  ;;  %v2716_v59 = vpop.xlane.xlu0 %2715 }
 0xa25   : > { %v2720_v60 = vsub.f32 %v2635_v53, %v2716_v59 }
 0xa26   : > { %v2724_v61 = vmul.f32 1.442695, %v2721_v58 }
 0xa27   : > { %v2722_v62 = vmul.f32 1.442695, %v2720_v60 }
 0xa28   : > { %8192 = vpow2.f32 %v2724_v61 }
 0xa29   : > { %8194 = vpow2.f32 %v2722_v62 }
 0xa32   : > { %v8193_v63 = vpop.eup %8192 }
 0xa33   : > { %v8195_v0 = vpop.eup %8194  ;;  %v2729_v1 = vsel %vm1224_vm3, %v8193_v63, 0.0 }
 0xa34   : > { %2730 = vadd.xlane.f32.xlu1 %v2729_v1  ;;  %v2726_v2 = vsel %vm1224_vm3, %v8195_v0, 0.0 }
 0xa35   : > { %2727 = vadd.xlane.f32.xlu0 %v2726_v2 }
 0xac1   : > { %v2731_v4 = vpop.xlane.xlu1 %2730 }
 0xac2   : > { %8196 = vrcp.f32 %v2731_v4  ;;  %v2728_v5 = vpop.xlane.xlu0 %2727 }
 0xac3   : > { %8198 = vrcp.f32 %v2728_v5 }
 0xacc   : > { %v8197_v6 = vpop.eup %8196 }
 0xacd   : > { %v8199_v8 = vpop.eup %8198  ;;  %v2735_v9 = vmul.f32 %v8197_v6, %v8193_v63 }
 0xace   : > { %v2734_v10 = vmul.f32 %v8199_v8, %v8195_v0  ;;  %v7021_v0 = vld [vmem:[%s8439_s18 + $0xb] ss:$0 sm:$0xff]  ;;  %s9147_s18 = sld [smem:[#allocation10_spill]] }
 0xacf   : > { %7596 = vmatmul.mubr.msk.f32.vlgmr.msra.gmra.mrb[22].mxu1 %vm1224_vm3, %v2735_v9 }
 0xad0   : > { %7591 = vmatmul.mubr.msk.f32.vlgmr.msra.gmra.mrb[18].mxu0 %vm1224_vm3, %v2734_v10  ;;  %7611 = vmatprep.mubr.msk.f32.mxu1 %vm966_vm1, %v8514_v7 }
 0xad1   : > { %7599 = vmatpush3.msra.mxu0 %v6997_v3  ;;  %7998 = vmatpush3.bf16.msra.mxu1 %v7995_v18  ;;  %v6906_v18 = vld [vmem:[%s9143_s25] ss:$0 sm:$0xff] }
 0xad2   : > { %8004 = vmatprep.subr.bf16.mxu0 %v8003_v13  ;;  %8000 = vmatprep.subr.bf16.mxu1 %v7999_v21 }
 0xad5   : > { %8002 = vmatpush3.bf16.msra.mxu1 %v7999_v21 }
 0xad6   : > { %8012 = vmatprep.subr.bf16.mxu1 %v8011_v44 }
 0xad8   : > { %7612 = vmatmul.mubr.msk.f32.vlgmr.msra.gmra.mrb[24].mxu1 %vm966_vm1, %v8524_v14 }
 0xad9   : > { %7633 = vmatprep.mubr.msk.f32.mxu1 %vm966_vm1, %v8514_v7  ;;  %8014 = vmatpush3.bf16.msra.mxu1 %v8011_v44  ;;  %v7042_v44 = vld [vmem:[%s8444_s4 + $0x98] sm:$0xff] }
 0xada   : > { %8016 = vmatprep.subr.bf16.mxu1 %v8015_v46  ;;  %v8031_v45 = vpack.c.bf16 %v7042_v44, %v7041_v42  ;;  %v7064_v42 = vld [vmem:[%s8444_s4 + $0x28] sm:$0xff]  ;;  %v4285_v44 = vld [vmem:[%s9147_s18] sm:$0xff] }
 0xadd   : > { %8018 = vmatpush3.bf16.msra.mxu1 %v8015_v46  ;;  %v8763_v46 = vld [vmem:[%s9144_s7] sm:$0xff] }
 0xade   : > { %7646 = vmatprep.subr.mxu1 %v8290_v16 }
 0xae0   : > { %7634 = vmatmul.mubr.msk.f32.vlgmr.msra.gmra.mrb[26].mxu1 %vm966_vm1, %v8524_v14 }
 0xae1   : > { %7648 = vmatprep.mubr.msk.f32.mxu1 %vm8291_vm2, %v8290_v16 }
 0xba2   : > { %v2878_v24 = vpop.f32.mrb[22].mxu1 }
 0xba3   : > { %v2805_v25 = vpop.f32.mrb[18].mxu0  ;;  %v7597_v26 = vpop.f32.mrb[23].mxu1 }
 0xba4   : > { %v7592_v28 = vpop.f32.mrb[19].mxu0  ;;  %7600 = vmatprep.mubr.msk.f32.mxu0 %vm1224_vm3, %v2805_v25 }
 0xba5   : > { %7601 = vmatmul.mubr.msk.f32.vlgmr.msra.gmra.mrb[4].mxu0 %vm1224_vm3, %v2878_v24 }
 0xba6   : > { %8006 = vmatpush3.bf16.msra.mxu0 %v8003_v13  ;;  %7622 = vmatprep.mubr.msk.f32.mxu0 %vm966_vm1, %v8514_v7 }
 0xba7   : > { %8008 = vmatprep.subr.bf16.mxu0 %v8007_v27 }
 0xbaa   : > { %8010 = vmatpush3.bf16.msra.mxu0 %v8007_v27 }
 0xbab   : > { %7636 = vmatprep.subr.mxu0 %v8290_v16  ;;  %v7613_v29 = vpop.f32.mrb[24].mxu1 }
 0xbac   : > { %v3046_v30 = vpop.f32.mrb[25].mxu1  ;;  %v3052_v39 = vadd.f32 %v7613_v29, %v7005_v33 }
 0xbad   : > { %7623 = vmatmul.mubr.msk.f32.vlgmr.msra.gmra.mrb[20].mxu0 %vm966_vm1, %v8524_v14  ;;  %v3047_v37 = vadd.f32 %v7005_v33, %v3046_v30 }
 0xbae   : > { %7638 = vmatprep.mubr.msk.f32.mxu0 %vm8291_vm2, %v8290_v16 }
 0xbb3   : > { %v7635_v63 = vpop.f32.mrb[26].mxu1 }
 0xbb4   : > { %v3222_v1 = vpop.f32.mrb[27].mxu1  ;;  %v3228_v3 = vadd.f32 %v7635_v63, %v7021_v0  ;;  %v7034_v63 = vld [vmem:[%s9146_s29] ss:$0 sm:$0xff]  ;;  %s9154_s29 = scalar_lea.vmem %s9091_s15, %s8417_s26 }
 0xbb5   : > { %v3223_v2 = vadd.f32 %v7021_v0, %v3222_v1 }
 0xbb7   : > { %7647 = vmatpush3.msra.mxu1 %v3223_v2  ;;  %v7049_v2 = vld [vmem:[%s8444_s4 + $0x110] sm:$0xff] }
 0xc80   : > { %v7624_v32 = vpop.f32.mrb[20].mxu0 }
 0xc81   : > { %v3134_v34 = vpop.f32.mrb[21].mxu0  ;;  %v3140_v38 = vadd.f32 %v7624_v32, %v7013_v31 }
 0xc82   : > { %v3135_v36 = vadd.f32 %v7013_v31, %v3134_v34 }
 0xc84   : > { %7637 = vmatpush3.xpose.msk.msra.mxu0 %vm1224_vm3, %v3135_v36  ;;  %v7039_v36 = vld [vmem:[%s8444_s4 + $0x80] sm:$0xff] }
 0xc85   : > { %7641 = vmatprep.subr.mxu0 %v8290_v16 }
 0xc87   : > { %7639 = vmatmul.mubr.msk.f32.vlgmr.msra.gmra.mrb[22].mxu0 %vm1224_vm3, %v3047_v37  ;;  %v7040_v37 = vld [vmem:[%s8444_s4 + $0x88] sm:$0xff] }
 0xc88   : > { %7642 = vmatpush3.xpose.msk.msra.mxu0 %vm1224_vm3, %v3140_v38  ;;  %7643 = vmatprep.mubr.msk.f32.mxu0 %vm8291_vm2, %v8290_v16  ;;  %v8027_v38 = vpack.c.bf16 %v7040_v37, %v7039_v36 }
 0xc89   : > { %7651 = vmatprep.subr.mxu0 %v8290_v16 }
 0xc8b   : > { %7644 = vmatmul.mubr.msk.f32.vlgmr.msra.gmra.mrb[24].mxu0 %vm1224_vm3, %v3052_v39  ;;  %v3691_v39 = vld [vmem:[%s8444_s4] sm:$0xff] }
 0xc8c   : > { %7653 = vmatprep.mubr.msk.f32.mxu0 %vm8291_vm2, %v8290_v16  ;;  %7652 = vmatpush3.msra.mxu0 %v3228_v3  ;;  %v8019_v43 = vpack.c.bf16 %v3692_v41, %v3691_v39  ;;  %v7050_v3 = vld [vmem:[%s8444_s4 + $0x118] sm:$0xff]  ;;  %v7063_v41 = vld [vmem:[%s8444_s4 + $0x20] sm:$0xff] }
 0xc8d   : > { %7656 = vmatprep.subr.mxu0 %v7030_v11 }
 0xc8e   : > { %8020 = vmatprep.subr.bf16.mxu1 %v8019_v43 }
 0xd5a   : > { %v3303_v47 = vpop.f32.mrb[22].mxu0 }
 0xd5b   : > { %v3304_v48 = vadd.f32 %v3303_v47, %v8562_v35  ;;  %v7640_v49 = vpop.f32.mrb[23].mxu0  ;;  %v3693_v47 = vld [vmem:[%s8444_s4 + $0x10] sm:$0xff] }
 0xd5d   : > { %v3383_v50 = vsel %vm1224_vm3, %v3304_v48, -inf }
 0xd5e   : > { %3384 = vmax.xlane.f32.xlu0 %v3383_v50  ;;  %v3379_v51 = vpop.f32.mrb[24].mxu0  ;;  %v8772_v50 = vld [vmem:[%s9144_s7 + $0x8] sm:$0xff] }
 0xd5f   : > { %v3380_v52 = vadd.f32 %v3379_v51, %v8568_v40  ;;  %v7645_v53 = vpop.f32.mrb[25].mxu0  ;;  %v7047_v51 = vld [vmem:[%s8444_s4 + $0x100] sm:$0xff] }
 0xd61   : > { %v3386_v54 = vsel %vm1224_vm3, %v3380_v52, -inf }
 0xd62   : > { %3387 = vmax.xlane.f32.xlu1 %v3386_v54 }
 0xdeb   : > { %v3385_v55 = vpop.xlane.xlu0 %3384 }
 0xdec   : > { %v3389_v56 = vsub.f32 %v3304_v48, %v3385_v55  ;;  %v3694_v48 = vld [vmem:[%s8444_s4 + $0x18] sm:$0xff] }
 0xded   : > { %v8023_v49 = vpack.c.bf16 %v3694_v48, %v3693_v47  ;;  %v7065_v48 = vld [vmem:[%s8444_s4 + $0x30] sm:$0xff] }
 0xdee   : > { %v3391_v57 = vmul.f32 1.442695, %v3389_v56 }
 0xdef   : > { %v3388_v58 = vpop.xlane.xlu1 %3387 }
 0xdf0   : > { %8200 = vpow2.f32 %v3391_v57  ;;  %v3390_v59 = vsub.f32 %v3380_v52, %v3388_v58  ;;  %v7048_v52 = vld [vmem:[%s8444_s4 + $0x108] sm:$0xff] }
 0xdf1   : > { %v8035_v53 = vpack.c.bf16 %v7048_v52, %v7047_v51 }
 0xdf2   : > { %v3393_v60 = vmul.f32 1.442695, %v3390_v59 }
 0xdf4   : > { %8202 = vpow2.f32 %v3393_v60 }
 0xdfa   : > { %v8201_v35 = vpop.eup %8200 }
 0xdfb   : > { %v3395_v61 = vsel %vm1224_vm3, %v8201_v35, 0.0 }
 0xdfc   : > { %3396 = vadd.xlane.f32.xlu0 %v3395_v61 }
 0xdfe   : > { %v8203_v62 = vpop.eup %8202 }
 0xdff   : > { %v3398_v40 = vsel %vm1224_vm3, %v8203_v62, 0.0 }
 0xe00   : > { %3399 = vadd.xlane.f32.xlu1 %v3398_v40 }
 0xe89   : > { %v3397_v4 = vpop.xlane.xlu0 %3396 }
 0xe8a   : > { %8204 = vrcp.f32 %v3397_v4 }
 0xe8d   : > { %v3400_v5 = vpop.xlane.xlu1 %3399 }
 0xe8e   : > { %8206 = vrcp.f32 %v3400_v5 }
 0xe94   : > { %v8205_v6 = vpop.eup %8204 }
 0xe95   : > { %v3403_v8 = vmul.f32 %v8205_v6, %v8201_v35  ;;  %v7033_v35 = vld [vmem:[%s9145_s1] ss:$0 sm:$0xff]  ;;  %v8039_v6 = vpack.c.bf16 %v7050_v3, %v7049_v2  ;;  %v7076_v2 = vld [vmem:[%s8449_s22 + $0x5] ss:$0 sm:$0xff] }
 0xe97   : > { %7649 = vmatmul.mubr.msk.f32.vlgmr.msra.gmra.mrb[28].mxu1 %vm1224_vm3, %v3403_v8  ;;  %v7044_v8 = vld [vmem:[%s8449_s22 + $0x4] ss:$0 sm:$0xff] }
 0xe98   : > { %v8207_v9 = vpop.eup %8206  ;;  %8022 = vmatpush3.bf16.msra.mxu1 %v8019_v43  ;;  %v8043_v43 = vpack.c.bf16 %v7064_v42, %v7063_v41  ;;  %v7096_v41 = vld [vmem:[%s8444_s4 + $0x40] sm:$0xff]  ;;  %v7097_v42 = vld [vmem:[%s8444_s4 + $0x48] sm:$0xff] }
 0xe99   : > { %v3404_v10 = vmul.f32 %v8207_v9, %v8203_v62  ;;  %8024 = vmatprep.subr.bf16.mxu1 %v8023_v49 }
 0xe9b   : > { %7654 = vmatmul.mubr.msk.f32.vlgmr.msra.gmra.mrb[26].mxu0 %vm1224_vm3, %v3404_v10 }
 0xe9c   : > { %7657 = vmatpush3.msra.mxu0 %v7030_v11  ;;  %8026 = vmatpush3.bf16.msra.mxu1 %v8023_v49  ;;  %v7066_v49 = vld [vmem:[%s8444_s4 + $0x38] sm:$0xff] }
 0xe9d   : > { %8028 = vmatprep.subr.bf16.mxu0 %v8027_v38  ;;  %8036 = vmatprep.subr.bf16.mxu1 %v8035_v53 }
 0xf6a   : > { %v3474_v12 = vpop.f32.mrb[28].mxu1 }
 0xf6b   : > { %v7650_v13 = vpop.f32.mrb[29].mxu1  ;;  %7658 = vmatprep.mubr.msk.f32.mxu0 %vm1224_vm3, %v3474_v12 }
 0xf6c   : > { %v7036_v13 = vld [vmem:[%s8449_s22] ss:$0 sm:$0xff] }
 0xf6e   : > { %v3547_v15 = vpop.f32.mrb[26].mxu0 }
 0xf6f   : > { %v7655_v17 = vpop.f32.mrb[27].mxu0  ;;  %7659 = vmatmul.mubr.msk.f32.vlgmr.msra.gmra.mrb[4].mxu0 %vm1224_vm3, %v3547_v15 }
 0xf70   : > { %8030 = vmatpush3.bf16.msra.mxu0 %v8027_v38  ;;  %7680 = vmatprep.mubr.msk.f32.mxu0 %vm966_vm1, %v8763_v46 }
 0xf71   : > { %8032 = vmatprep.subr.bf16.mxu0 %v8031_v45 }
 0xf74   : > { %8034 = vmatpush3.bf16.msra.mxu0 %v8031_v45 }
 0xf75   : > { %7694 = vmatprep.subr.mxu0 %v8290_v16 }
 0xf77   : > { %7681 = vmatmul.mubr.msk.f32.vlgmr.msra.gmra.mrb[28].mxu0 %vm966_vm1, %v8772_v50 }
 0xf78   : > { %7696 = vmatprep.mubr.msk.f32.mxu0 %vm8291_vm2, %v8290_v16 }
0x1042   : > { %v7660_v19 = vpop.f32.mrb[4].mxu0 }
0x1043   : > { %v8139_v20 = vadd.f32 %v7660_v19, %v6906_v18  ;;  %v3625_v21 = vpop.f32.mrb[5].mxu0 }
0x1044   : > { %v8140_v22 = vadd.f32 %v6906_v18, %v3625_v21 }
0x1045   : > { %v3637_v23 = vadd.f32 %v8139_v20, %v8524_v14  ;;  %v7052_v20 = vld [vmem:[%s8449_s22 + $0x8] ss:$0 sm:$0xff] }
0x1046   : > { %v3636_v24 = vadd.f32 %v8140_v22, %v8514_v7 }
0x1047   : > { %v3641_v25 = vsel %vm966_vm1, %v3637_v23, 0.0 }
0x1048   : > { %3642 = vadd.xlane.f32.xlu1 %v3641_v25  ;;  %v3638_v26 = vsel %vm966_vm1, %v3636_v24, 0.0 }
0x1049   : > { %3639 = vadd.xlane.f32.xlu0 %v3638_v26 }
0x104a   : > { %v7682_v9 = vpop.f32.mrb[28].mxu0 }
0x104b   : > { %v3874_v10 = vadd.f32 %v7682_v9, %v7044_v8  ;;  %v3868_v11 = vpop.f32.mrb[29].mxu0 }
0x104c   : > { %v3869_v12 = vadd.f32 %v7044_v8, %v3868_v11  ;;  %v7068_v8 = vld [vmem:[%s8449_s22 + $0x1] ss:$0 sm:$0xff] }
0x104e   : > { %7695 = vmatpush3.xpose.msk.msra.mxu0 %vm1224_vm3, %v3869_v12 }
0x104f   : > { %7704 = vmatprep.subr.mxu0 %v8290_v16 }
0x10d5   : > { %v3643_v27 = vpop.xlane.xlu1 %3642 }
0x10d6   : > { %v3646_v28 = vmul.f32 0.03125, %v3643_v27  ;;  %v3640_v29 = vpop.xlane.xlu0 %3639 }
0x10d7   : > { %v3645_v30 = vmul.f32 0.03125, %v3640_v29 }
0x10d8   : > { %v3648_v31 = vsub.f32 %v3637_v23, %v3646_v28 }
0x10d9   : > { %v3647_v32 = vsub.f32 %v3636_v24, %v3645_v30 }
0x10da   : > { %v3650_v14 = vmul.f32 %v3648_v31, %v3648_v31 }
0x10db   : > { %v3649_v7 = vmul.f32 %v3647_v32, %v3647_v32 }
0x10dc   : > { %v3654_v33 = vsel %vm966_vm1, %v3650_v14, 0.0 }
0x10dd   : > { %3655 = vadd.xlane.f32.xlu1 %v3654_v33  ;;  %v3651_v34 = vsel %vm966_vm1, %v3649_v7, 0.0 }
0x10de   : > { %3652 = vadd.xlane.f32.xlu0 %v3651_v34 }
0x116a   : > { %v3656_v54 = vpop.xlane.xlu1 %3655 }
0x116b   : > { %v3658_v55 = vmul.f32 0.03125, %v3656_v54  ;;  %v3653_v56 = vpop.xlane.xlu0 %3652  ;;  %v8047_v54 = vpack.c.bf16 %v7066_v49, %v7065_v48  ;;  %v7098_v48 = vld [vmem:[%s8444_s4 + $0x50] sm:$0xff]  ;;  %v7099_v49 = vld [vmem:[%s8444_s4 + $0x58] sm:$0xff] }
0x116c   : > { %v3657_v57 = vmul.f32 0.03125, %v3653_v56  ;;  %v7071_v56 = vld [vmem:[%s8444_s4 + $0xa0] sm:$0xff] }
0x116d   : > { %v3660_v58 = vadd.f32 1e-05, %v3658_v55 }
0x116e   : > { %v3659_v59 = vadd.f32 1e-05, %v3657_v57  ;;  %v7072_v57 = vld [vmem:[%s8444_s4 + $0xa8] sm:$0xff] }
0x116f   : > { %8208 = vrsqrt.f32 %v3660_v58  ;;  %v8051_v58 = vpack.c.bf16 %v7072_v57, %v7071_v56  ;;  %v7093_v56 = vld [vmem:[%s9147_s18 + $0x8] sm:$0xff]  ;;  %v7104_v57 = vld [vmem:[%s8444_s4 + $0xc0] sm:$0xff] }
0x1170   : > { %8210 = vrsqrt.f32 %v3659_v59  ;;  %v7073_v59 = vld [vmem:[%s8444_s4 + $0xb0] sm:$0xff] }
0x1179   : > { %v8209_v60 = vpop.eup %8208 }
0x117a   : > { %v8211_v61 = vpop.eup %8210  ;;  %v3664_v62 = vmul.f32 %v8209_v60, %v3648_v31  ;;  %v7074_v60 = vld [vmem:[%s8444_s4 + $0xb8] sm:$0xff] }
0x117b   : > { %v3663_v40 = vmul.f32 %v8211_v61, %v3647_v32 }
0x117c   : > { %v3673_v0 = vmul.f32 %v7033_v35, %v3664_v62 }
0x117d   : > { %v3672_v1 = vmul.f32 %v7033_v35, %v3663_v40  ;;  %v8055_v40 = vpack.c.bf16 %v7074_v60, %v7073_v59  ;;  %v7112_v60 = vld [vmem:[%s8444_s4 + $0x140] sm:$0xff] }
0x117e   : > { %v8795_v5 = vadd.f32 %v7034_v63, %v3673_v0 }
0x117f   : > { %v8793_v4 = vadd.f32 %v7034_v63, %v3672_v1 }
0x1181   : > { %7669 = vmatprep.mubr.msk.f32.mxu1 %vm966_vm1, %v8793_v4 }
0x1182   : > { %7670 = vmatmul.mubr.msk.f32.vlgmr.msra.gmra.mrb[30].mxu1 %vm966_vm1, %v8795_v5 }
0x1183   : > { %8038 = vmatpush3.bf16.msra.mxu1 %v8035_v53  ;;  %7691 = vmatprep.mubr.msk.f32.mxu1 %vm966_vm1, %v8763_v46 }
0x1184   : > { %8040 = vmatprep.subr.bf16.mxu1 %v8039_v6 }
0x1187   : > { %8042 = vmatpush3.bf16.msra.mxu1 %v8039_v6 }
0x1188   : > { %7699 = vmatprep.subr.mxu1 %v8290_v16 }
0x118a   : > { %7692 = vmatmul.mubr.msk.f32.vlgmr.msra.gmra.mrb[32].mxu1 %vm966_vm1, %v8772_v50 }
0x118b   : > { %7701 = vmatprep.mubr.msk.f32.mxu1 %vm8291_vm2, %v8290_v16 }
0x1190   : > { %7700 = vmatpush3.xpose.msk.msra.mxu1 %vm1224_vm3, %v3874_v10 }
0x1191   : > { %7709 = vmatprep.subr.mxu1 %v8290_v16 }
0x1255   : > { %v7671_v15 = vpop.f32.mrb[30].mxu1 }
0x1256   : > { %v3780_v17 = vadd.f32 %v7671_v15, %v7036_v13  ;;  %v3774_v18 = vpop.f32.mrb[31].mxu1  ;;  %v7080_v15 = vld [vmem:[%s8444_s4 + $0x128] sm:$0xff] }
0x1257   : > { %v3775_v19 = vadd.f32 %v7036_v13, %v3774_v18  ;;  %v7079_v13 = vld [vmem:[%s8444_s4 + $0x120] sm:$0xff] }
0x1258   : > { %7702 = vmatmul.mubr.msk.f32.vlgmr.msra.gmra.mrb[34].mxu1 %vm1224_vm3, %v3780_v17  ;;  %v7081_v17 = vld [vmem:[%s8444_s4 + $0x130] sm:$0xff]  ;;  %v8059_v18 = vpack.c.bf16 %v7080_v15, %v7079_v13  ;;  %v7109_v15 = vld [vmem:[%s8449_s22 + $0x6] ss:$0 sm:$0xff] }
0x1259   : > { %7697 = vmatmul.mubr.msk.f32.vlgmr.msra.gmra.mrb[30].mxu0 %vm1224_vm3, %v3775_v19  ;;  %7711 = vmatprep.mubr.msk.f32.mxu1 %vm8291_vm2, %v8290_v16  ;;  %v7082_v19 = vld [vmem:[%s8444_s4 + $0x138] sm:$0xff] }
0x125a   : > { %7706 = vmatprep.mubr.msk.f32.mxu0 %vm8291_vm2, %v8290_v16 }
0x125d   : > { %v7693_v21 = vpop.f32.mrb[32].mxu1 }
0x125e   : > { %v3962_v22 = vadd.f32 %v7693_v21, %v7052_v20  ;;  %v3956_v23 = vpop.f32.mrb[33].mxu1 }
0x125f   : > { %v3957_v24 = vadd.f32 %v7052_v20, %v3956_v23  ;;  %v8063_v20 = vpack.c.bf16 %v7082_v19, %v7081_v17  ;;  %v7101_v19 = vld [vmem:[%s8449_s22 + $0x2] ss:$0 sm:$0xff] }
0x1260   : > { %7710 = vmatpush3.msra.mxu1 %v3962_v22 }
0x1261   : > { %7705 = vmatpush3.msra.mxu0 %v3957_v24  ;;  %8044 = vmatprep.subr.bf16.mxu1 %v8043_v43 }
0x1262   : > { %7714 = vmatprep.subr.mxu0 %v4285_v44 }
0x132b   : > { %v4113_v25 = vpop.f32.mrb[34].mxu1 }
0x132c   : > { %v4037_v26 = vpop.f32.mrb[30].mxu0  ;;  %v7703_v27 = vpop.f32.mrb[35].mxu1  ;;  %v4120_v28 = vsel %vm1224_vm3, %v4113_v25, -inf }
0x132d   : > { %4121 = vmax.xlane.f32.xlu1 %v4120_v28  ;;  %v7698_v29 = vpop.f32.mrb[31].mxu0  ;;  %v4117_v30 = vsel %vm1224_vm3, %v4037_v26, -inf }
0x132e   : > { %4118 = vmax.xlane.f32.xlu0 %v4117_v30 }
0x13ba   : > { %v4122_v31 = vpop.xlane.xlu1 %4121 }
0x13bb   : > { %v4124_v32 = vsub.f32 %v4113_v25, %v4122_v31  ;;  %v4119_v14 = vpop.xlane.xlu0 %4118 }
0x13bc   : > { %v4123_v7 = vsub.f32 %v4037_v26, %v4119_v14 }
0x13bd   : > { %v4127_v33 = vmul.f32 1.442695, %v4124_v32 }
0x13be   : > { %v4125_v34 = vmul.f32 1.442695, %v4123_v7 }
0x13bf   : > { %8212 = vpow2.f32 %v4127_v33 }
0x13c0   : > { %8214 = vpow2.f32 %v4125_v34 }
0x13c9   : > { %v8213_v36 = vpop.eup %8212 }
0x13ca   : > { %v8215_v37 = vpop.eup %8214  ;;  %v4132_v38 = vsel %vm1224_vm3, %v8213_v36, 0.0 }
0x13cb   : > { %4133 = vadd.xlane.f32.xlu1 %v4132_v38  ;;  %v4129_v39 = vsel %vm1224_vm3, %v8215_v37, 0.0 }
0x13cc   : > { %4130 = vadd.xlane.f32.xlu0 %v4129_v39 }
0x1458   : > { %v4134_v45 = vpop.xlane.xlu1 %4133 }
0x1459   : > { %8216 = vrcp.f32 %v4134_v45  ;;  %v4131_v47 = vpop.xlane.xlu0 %4130 }
0x145a   : > { %8218 = vrcp.f32 %v4131_v47 }
0x1463   : > { %v8217_v51 = vpop.eup %8216 }
0x1464   : > { %v8219_v52 = vpop.eup %8218  ;;  %v4138_v53 = vmul.f32 %v8217_v51, %v8213_v36 }
0x1465   : > { %v4137_v55 = vmul.f32 %v8219_v52, %v8215_v37  ;;  %v7084_v37 = vld [vmem:[%s8449_s22 + $0x9] ss:$0 sm:$0xff] }
0x1466   : > { %7712 = vmatmul.mubr.msk.f32.vlgmr.msra.gmra.mrb[36].mxu1 %vm1224_vm3, %v4138_v53  ;;  %v8071_v53 = vpack.c.bf16 %v7099_v49, %v7098_v48 }
0x1467   : > { %8046 = vmatpush3.bf16.msra.mxu1 %v8043_v43  ;;  %7707 = vmatmul.mubr.msk.f32.vlgmr.msra.gmra.mrb[32].mxu0 %vm1224_vm3, %v4137_v55  ;;  %v8067_v43 = vpack.c.bf16 %v7097_v42, %v7096_v41 }
0x1468   : > { %7727 = vmatprep.mubr.msk.f32.mxu1 %vm966_vm1, %v8793_v4  ;;  %8048 = vmatprep.subr.bf16.mxu1 %v8047_v54 }
0x1469   : > { %7715 = vmatpush3.msra.mxu0 %v4285_v44 }
0x146a   : > { %8052 = vmatprep.subr.bf16.mxu0 %v8051_v58 }
0x146b   : > { %8050 = vmatpush3.bf16.msra.mxu1 %v8047_v54 }
0x146c   : > { %8060 = vmatprep.subr.bf16.mxu1 %v8059_v18 }
0x146e   : > { %7728 = vmatmul.mubr.msk.f32.vlgmr.msra.gmra.mrb[38].mxu1 %vm966_vm1, %v8795_v5 }
0x146f   : > { %7749 = vmatprep.mubr.msk.f32.mxu1 %vm966_vm1, %v8763_v46  ;;  %8062 = vmatpush3.bf16.msra.mxu1 %v8059_v18  ;;  %v7117_v18 = vld [vmem:[%s8449_s22 + $0xa] ss:$0 sm:$0xff] }
0x1470   : > { %8064 = vmatprep.subr.bf16.mxu1 %v8063_v20 }
0x1473   : > { %8066 = vmatpush3.bf16.msra.mxu1 %v8063_v20 }
0x1474   : > { %7762 = vmatprep.subr.mxu1 %v8290_v16 }
0x1476   : > { %7750 = vmatmul.mubr.msk.f32.vlgmr.msra.gmra.mrb[40].mxu1 %vm966_vm1, %v8772_v50 }
0x1477   : > { %7764 = vmatprep.mubr.msk.f32.mxu1 %vm8291_vm2, %v8290_v16 }
0x1539   : > { %v4281_v35 = vpop.f32.mrb[36].mxu1 }
0x153a   : > { %v4208_v61 = vpop.f32.mrb[32].mxu0  ;;  %v7713_v62 = vpop.f32.mrb[37].mxu1 }
0x153b   : > { %v7708_v63 = vpop.f32.mrb[33].mxu0  ;;  %7716 = vmatprep.mubr.msk.f32.mxu0 %vm1224_vm3, %v4208_v61  ;;  %v7114_v61 = vld [vmem:[%s8444_s4 + $0x150] sm:$0xff] }
0x153c   : > { %7717 = vmatmul.mubr.msk.f32.vlgmr.msra.gmra.mrb[34].mxu0 %vm1224_vm3, %v4281_v35  ;;  %v7113_v35 = vld [vmem:[%s8444_s4 + $0x148] sm:$0xff] }
0x153d   : > { %8054 = vmatpush3.bf16.msra.mxu0 %v8051_v58  ;;  %7738 = vmatprep.mubr.msk.f32.mxu0 %vm966_vm1, %v8763_v46  ;;  %v7105_v58 = vld [vmem:[%s8444_s4 + $0xc8] sm:$0xff]  ;;  %v8083_v62 = vpack.c.bf16 %v7113_v35, %v7112_v60  ;;  %v7139_v35 = vld [vmem:[%s8444_s4 + $0xf0] sm:$0xff] }
0x153e   : > { %8056 = vmatprep.subr.bf16.mxu0 %v8055_v40  ;;  %v8075_v59 = vpack.c.bf16 %v7105_v58, %v7104_v57  ;;  %v7137_v58 = vld [vmem:[%s8444_s4 + $0xe0] sm:$0xff] }
0x1541   : > { %v7729_v0 = vpop.f32.mrb[38].mxu1  ;;  %8058 = vmatpush3.bf16.msra.mxu0 %v8055_v40  ;;  %v7115_v40 = vld [vmem:[%s8444_s4 + $0x158] sm:$0xff] }
0x1542   : > { %v4448_v1 = vpop.f32.mrb[39].mxu1  ;;  %7752 = vmatprep.subr.mxu0 %v8290_v16  ;;  %v4454_v12 = vadd.f32 %v7729_v0, %v7068_v8  ;;  %v8087_v63 = vpack.c.bf16 %v7115_v40, %v7114_v61  ;;  %v7140_v61 = vld [vmem:[%s8444_s4 + $0xf8] sm:$0xff] }
0x1543   : > { %v4449_v10 = vadd.f32 %v7068_v8, %v4448_v1  ;;  %v7106_v1 = vld [vmem:[%s8444_s4 + $0xd0] sm:$0xff] }
0x1544   : > { %7739 = vmatmul.mubr.msk.f32.vlgmr.msra.gmra.mrb[36].mxu0 %vm966_vm1, %v8772_v50 }
0x1545   : > { %7754 = vmatprep.mubr.msk.f32.mxu0 %vm8291_vm2, %v8290_v16 }
0x1549   : > { %v7751_v36 = vpop.f32.mrb[40].mxu1 }
0x154a   : > { %v4624_v38 = vpop.f32.mrb[41].mxu1  ;;  %v4630_v44 = vadd.f32 %v7751_v36, %v7084_v37 }
0x154b   : > { %v4625_v39 = vadd.f32 %v7084_v37, %v4624_v38 }
0x154d   : > { %7763 = vmatpush3.msra.mxu1 %v4625_v39 }
0x154e   : > { %8068 = vmatprep.subr.bf16.mxu1 %v8067_v43 }
0x1617   : > { %v7740_v3 = vpop.f32.mrb[36].mxu0 }
0x1618   : > { %v4536_v6 = vpop.f32.mrb[37].mxu0  ;;  %v4542_v11 = vadd.f32 %v7740_v3, %v7076_v2 }
0x1619   : > { %v4537_v9 = vadd.f32 %v7076_v2, %v4536_v6  ;;  %v7107_v2 = vld [vmem:[%s8444_s4 + $0xd8] sm:$0xff] }
0x161a   : > { %v8079_v6 = vpack.c.bf16 %v7107_v2, %v7106_v1 }
0x161b   : > { %7753 = vmatpush3.xpose.msk.msra.mxu0 %vm1224_vm3, %v4537_v9 }
0x161c   : > { %7757 = vmatprep.subr.mxu0 %v8290_v16 }
0x161e   : > { %7755 = vmatmul.mubr.msk.f32.vlgmr.msra.gmra.mrb[38].mxu0 %vm1224_vm3, %v4449_v10 }
0x161f   : > { %7758 = vmatpush3.xpose.msk.msra.mxu0 %vm1224_vm3, %v4542_v11  ;;  %7759 = vmatprep.mubr.msk.f32.mxu0 %vm8291_vm2, %v8290_v16 }
0x1620   : > { %7767 = vmatprep.subr.mxu0 %v8290_v16 }
0x1622   : > { %7760 = vmatmul.mubr.msk.f32.vlgmr.msra.gmra.mrb[40].mxu0 %vm1224_vm3, %v4454_v12 }
0x1623   : > { %7769 = vmatprep.mubr.msk.f32.mxu0 %vm8291_vm2, %v8290_v16  ;;  %7768 = vmatpush3.msra.mxu0 %v4630_v44  ;;  %v7130_v44 = vld [vmem:[%s8444_s4 + $0x68] sm:$0xff] }
0x1624   : > { %7772 = vmatprep.subr.mxu0 %v7093_v56 }
0x16f1   : > { %v4705_v21 = vpop.f32.mrb[38].mxu0 }
0x16f2   : > { %v7756_v22 = vpop.f32.mrb[39].mxu0  ;;  %v4785_v23 = vsel %vm1224_vm3, %v4705_v21, -inf }
0x16f3   : > { %4786 = vmax.xlane.f32.xlu0 %v4785_v23 }
0x16f5   : > { %v4781_v24 = vpop.f32.mrb[40].mxu0 }
0x16f6   : > { %v7761_v25 = vpop.f32.mrb[41].mxu0  ;;  %v4788_v26 = vsel %vm1224_vm3, %v4781_v24, -inf }
0x16f7   : > { %4789 = vmax.xlane.f32.xlu1 %v4788_v26 }
0x1780   : > { %v4787_v27 = vpop.xlane.xlu0 %4786 }
0x1781   : > { %v4791_v28 = vsub.f32 %v4705_v21, %v4787_v27 }
0x1783   : > { %v4793_v29 = vmul.f32 1.442695, %v4791_v28 }
0x1784   : > { %v4790_v30 = vpop.xlane.xlu1 %4789 }
0x1785   : > { %8220 = vpow2.f32 %v4793_v29  ;;  %v4792_v31 = vsub.f32 %v4781_v24, %v4790_v30 }
0x1787   : > { %v4795_v32 = vmul.f32 1.442695, %v4792_v31 }
0x1789   : > { %8222 = vpow2.f32 %v4795_v32 }
0x178f   : > { %v8221_v14 = vpop.eup %8220 }
0x1790   : > { %v4797_v7 = vsel %vm1224_vm3, %v8221_v14, 0.0 }
0x1791   : > { %4798 = vadd.xlane.f32.xlu0 %v4797_v7 }
0x1793   : > { %v8223_v33 = vpop.eup %8222 }
0x1794   : > { %v4800_v34 = vsel %vm1224_vm3, %v8223_v33, 0.0 }
0x1795   : > { %4801 = vadd.xlane.f32.xlu1 %v4800_v34 }
0x181e   : > { %v4799_v45 = vpop.xlane.xlu0 %4798 }
0x181f   : > { %8224 = vrcp.f32 %v4799_v45 }
0x1822   : > { %v4802_v47 = vpop.xlane.xlu1 %4801 }
0x1823   : > { %8226 = vrcp.f32 %v4802_v47  ;;  %v7126_v47 = vld [vmem:[%s9147_s18 + $0x10] sm:$0xff] }
0x1829   : > { %v8225_v51 = vpop.eup %8224 }
0x182a   : > { %v4805_v52 = vmul.f32 %v8225_v51, %v8221_v14  ;;  %v7131_v51 = vld [vmem:[%s8444_s4 + $0x70] sm:$0xff] }
0x182c   : > { %7765 = vmatmul.mubr.msk.f32.vlgmr.msra.gmra.mrb[42].mxu1 %vm1224_vm3, %v4805_v52  ;;  %v7132_v52 = vld [vmem:[%s8444_s4 + $0x78] sm:$0xff] }
0x182d   : > { %v8227_v54 = vpop.eup %8226  ;;  %8070 = vmatpush3.bf16.msra.mxu1 %v8067_v43  ;;  %7785 = vmatprep.mubr.msk.f32.mxu1 %vm966_vm1, %v8793_v4  ;;  %v7129_v43 = vld [vmem:[%s8444_s4 + $0x60] sm:$0xff] }
0x182e   : > { %v4806_v55 = vmul.f32 %v8227_v54, %v8223_v33  ;;  %8072 = vmatprep.subr.bf16.mxu1 %v8071_v53  ;;  %v8091_v45 = vpack.c.bf16 %v7130_v44, %v7129_v43 }
0x1830   : > { %7770 = vmatmul.mubr.msk.f32.vlgmr.msra.gmra.mrb[42].mxu0 %vm1224_vm3, %v4806_v55 }
0x1831   : > { %8074 = vmatpush3.bf16.msra.mxu1 %v8071_v53  ;;  %7773 = vmatpush3.msra.mxu0 %v7093_v56  ;;  %v8095_v56 = vpack.c.bf16 %v7132_v52, %v7131_v51 }
0x1832   : > { %8076 = vmatprep.subr.bf16.mxu0 %v8075_v59  ;;  %8084 = vmatprep.subr.bf16.mxu1 %v8083_v62 }
0x1834   : > { %7786 = vmatmul.mubr.msk.f32.vlgmr.msra.gmra.mrb[44].mxu1 %vm966_vm1, %v8795_v5 }
0x1835   : > { %7807 = vmatprep.mubr.msk.f32.mxu1 %vm966_vm1, %v8763_v46  ;;  %8086 = vmatpush3.bf16.msra.mxu1 %v8083_v62 }
0x1836   : > { %8088 = vmatprep.subr.bf16.mxu1 %v8087_v63 }
0x1839   : > { %8090 = vmatpush3.bf16.msra.mxu1 %v8087_v63 }
0x183a   : > { %7815 = vmatprep.subr.mxu1 %v8290_v16 }
0x183c   : > { %7808 = vmatmul.mubr.msk.f32.vlgmr.msra.gmra.mrb[46].mxu1 %vm966_vm1, %v8772_v50 }
0x183d   : > { %7817 = vmatprep.mubr.msk.f32.mxu1 %vm8291_vm2, %v8290_v16 }
0x18ff   : > { %v4876_v0 = vpop.f32.mrb[42].mxu1 }
0x1900   : > { %v7766_v3 = vpop.f32.mrb[43].mxu1  ;;  %7774 = vmatprep.mubr.msk.f32.mxu0 %vm1224_vm3, %v4876_v0  ;;  %v8103_v0 = vpack.c.bf16 %v7140_v61, %v7139_v35 }
0x1903   : > { %v4949_v8 = vpop.f32.mrb[42].mxu0 }
0x1904   : > { %v7771_v9 = vpop.f32.mrb[43].mxu0  ;;  %7775 = vmatmul.mubr.msk.f32.vlgmr.msra.gmra.mrb[34].mxu0 %vm1224_vm3, %v4949_v8 }
0x1905   : > { %8078 = vmatpush3.bf16.msra.mxu0 %v8075_v59  ;;  %7796 = vmatprep.mubr.msk.f32.mxu0 %vm966_vm1, %v8763_v46  ;;  %v7138_v59 = vld [vmem:[%s8444_s4 + $0xe8] sm:$0xff] }
0x1906   : > { %8080 = vmatprep.subr.bf16.mxu0 %v8079_v6  ;;  %v8099_v60 = vpack.c.bf16 %v7138_v59, %v7137_v58 }
0x1907   : > { %v7787_v10 = vpop.f32.mrb[44].mxu1 }
0x1908   : > { %v5117_v11 = vpop.f32.mrb[45].mxu1  ;;  %v5123_v24 = vadd.f32 %v7787_v10, %v7101_v19  ;;  %v7134_v10 = vld [vmem:[%s8449_s22 + $0x3] ss:$0 sm:$0xff] }
0x1909   : > { %8082 = vmatpush3.bf16.msra.mxu0 %v8079_v6  ;;  %v5118_v26 = vadd.f32 %v7101_v19, %v5117_v11  ;;  %v7142_v6 = vld [vmem:[%s8449_s22 + $0x7] ss:$0 sm:$0xff] }
0x190a   : > { %7810 = vmatprep.subr.mxu0 %v8290_v16 }
0x190c   : > { %7797 = vmatmul.mubr.msk.f32.vlgmr.msra.gmra.mrb[44].mxu0 %vm966_vm1, %v8772_v50 }
0x190d   : > { %7812 = vmatprep.mubr.msk.f32.mxu0 %vm8291_vm2, %v8290_v16 }
0x190f   : > { %v7809_v12 = vpop.f32.mrb[46].mxu1 }
0x1910   : > { %v5293_v13 = vpop.f32.mrb[47].mxu1  ;;  %v5299_v23 = vadd.f32 %v7809_v12, %v7117_v18 }
0x1911   : > { %v5294_v25 = vadd.f32 %v7117_v18, %v5293_v13  ;;  %v7147_v18 = vld [vmem:[%s8444_s4 + $0x170] sm:$0xff] }
0x19df   : > { %v7798_v17 = vpop.f32.mrb[44].mxu0 }
0x19e0   : > { %v5211_v20 = vadd.f32 %v7798_v17, %v7109_v15  ;;  %v5205_v21 = vpop.f32.mrb[45].mxu0  ;;  %v7146_v17 = vld [vmem:[%s8444_s4 + $0x168] sm:$0xff] }
0x19e1   : > { %v5206_v22 = vadd.f32 %v7109_v15, %v5205_v21  ;;  %v7145_v15 = vld [vmem:[%s8444_s4 + $0x160] sm:$0xff] }
0x19e2   : > { %7816 = vmatpush3.xpose.msk.msra.mxu1 %vm1224_vm3, %v5211_v20  ;;  %v8107_v19 = vpack.c.bf16 %v7146_v17, %v7145_v15  ;;  %v7148_v20 = vld [vmem:[%s8444_s4 + $0x178] sm:$0xff]  ;;  %v6517_v15 = vld [vmem:[%s8497_s14 + $0x8] sm:$0xff]  ;;  %v6518_v17 = vld [vmem:[%s8497_s14 + $0x10] sm:$0xff] }
0x19e3   : > { %7811 = vmatpush3.xpose.msk.msra.mxu0 %vm1224_vm3, %v5206_v22  ;;  %7825 = vmatprep.subr.mxu1 %v8290_v16  ;;  %v8111_v21 = vpack.c.bf16 %v7148_v20, %v7147_v18 }
0x19e4   : > { %7820 = vmatprep.subr.mxu0 %v8290_v16 }
0x19e5   : > { %7818 = vmatmul.mubr.msk.f32.vlgmr.msra.gmra.mrb[48].mxu1 %vm1224_vm3, %v5123_v24 }
0x19e6   : > { %7813 = vmatmul.mubr.msk.f32.vlgmr.msra.gmra.mrb[46].mxu0 %vm1224_vm3, %v5118_v26  ;;  %7826 = vmatpush3.msra.mxu1 %v5299_v23 }
0x19e7   : > { %7821 = vmatpush3.msra.mxu0 %v5294_v25  ;;  %7827 = vmatprep.mubr.msk.f32.mxu1 %vm8291_vm2, %v8290_v16 }
0x19e8   : > { %7822 = vmatprep.mubr.msk.f32.mxu0 %vm8291_vm2, %v8290_v16  ;;  %8092 = vmatprep.subr.bf16.mxu1 %v8091_v45 }
0x19e9   : > { %7830 = vmatprep.subr.mxu0 %v7126_v47 }
0x1ab8   : > { %v5450_v27 = vpop.f32.mrb[48].mxu1 }
0x1ab9   : > { %v5374_v28 = vpop.f32.mrb[46].mxu0  ;;  %v7819_v29 = vpop.f32.mrb[49].mxu1  ;;  %v5457_v30 = vsel %vm1224_vm3, %v5450_v27, -inf }
0x1aba   : > { %5458 = vmax.xlane.f32.xlu1 %v5457_v30  ;;  %v7814_v31 = vpop.f32.mrb[47].mxu0  ;;  %v5454_v32 = vsel %vm1224_vm3, %v5374_v28, -inf }
0x1abb   : > { %5455 = vmax.xlane.f32.xlu0 %v5454_v32 }
0x1b47   : > { %v5459_v14 = vpop.xlane.xlu1 %5458 }
0x1b48   : > { %v5461_v7 = vsub.f32 %v5450_v27, %v5459_v14  ;;  %v5456_v33 = vpop.xlane.xlu0 %5455 }
0x1b49   : > { %v5460_v34 = vsub.f32 %v5374_v28, %v5456_v33 }
0x1b4a   : > { %v5464_v36 = vmul.f32 1.442695, %v5461_v7 }
0x1b4b   : > { %v5462_v37 = vmul.f32 1.442695, %v5460_v34 }
0x1b4c   : > { %8228 = vpow2.f32 %v5464_v36  ;;  %v7150_v36 = vld [vmem:[%s8449_s22 + $0xb] ss:$0 sm:$0xff]  ;;  %s9155_s22 = sld [smem:[#allocation7_spill]] }
0x1b4d   : > { %8230 = vpow2.f32 %v5462_v37 }
0x1b52   : > { %p7172_p5 = scmp.ne.s32.totalorder %s9155_s22, 1 }
0x1b56   : > { %v8229_v38 = vpop.eup %8228 }
0x1b57   : > { %v8231_v39 = vpop.eup %8230  ;;  %v5469_v41 = vsel %vm1224_vm3, %v8229_v38, 0.0 }
0x1b58   : > { %5470 = vadd.xlane.f32.xlu1 %v5469_v41  ;;  %v5466_v42 = vsel %vm1224_vm3, %v8231_v39, 0.0 }
0x1b59   : > { %5467 = vadd.xlane.f32.xlu0 %v5466_v42 }
0x1be5   : > { %v5471_v48 = vpop.xlane.xlu1 %5470 }
0x1be6   : > { %8232 = vrcp.f32 %v5471_v48  ;;  %v5468_v49 = vpop.xlane.xlu0 %5467  ;;  %v7159_v48 = vld [vmem:[%s9147_s18 + $0x18] sm:$0xff] }
0x1be7   : > { %8234 = vrcp.f32 %v5468_v49 }
0x1bf0   : > { %v8233_v53 = vpop.eup %8232 }
0x1bf1   : > { %v8235_v54 = vpop.eup %8234  ;;  %v5475_v55 = vmul.f32 %v8233_v53, %v8229_v38 }
0x1bf2   : > { %v5474_v57 = vmul.f32 %v8235_v54, %v8231_v39  ;;  %v7035_v54 = vld [vmem:[%s9148_s3] ss:$0 sm:$0xff] }
0x1bf3   : > { %7828 = vmatmul.mubr.msk.f32.vlgmr.msra.gmra.mrb[50].mxu1 %vm1224_vm3, %v5475_v55 }
0x1bf4   : > { %8094 = vmatpush3.bf16.msra.mxu1 %v8091_v45  ;;  %7823 = vmatmul.mubr.msk.f32.vlgmr.msra.gmra.mrb[48].mxu0 %vm1224_vm3, %v5474_v57 }
0x1bf5   : > { %7843 = vmatprep.mubr.msk.f32.mxu1 %vm966_vm1, %v8793_v4  ;;  %8096 = vmatprep.subr.bf16.mxu1 %v8095_v56 }
0x1bf6   : > { %7831 = vmatpush3.msra.mxu0 %v7126_v47 }
0x1bf7   : > { %8100 = vmatprep.subr.bf16.mxu0 %v8099_v60 }
0x1bf8   : > { %8098 = vmatpush3.bf16.msra.mxu1 %v8095_v56 }
0x1bf9   : > { %8108 = vmatprep.subr.bf16.mxu1 %v8107_v19 }
0x1bfb   : > { %7844 = vmatmul.mubr.msk.f32.vlgmr.msra.gmra.mrb[52].mxu1 %vm966_vm1, %v8795_v5 }
0x1bfc   : > { %7865 = vmatprep.mubr.msk.f32.mxu1 %vm966_vm1, %v8763_v46  ;;  %8110 = vmatpush3.bf16.msra.mxu1 %v8107_v19  ;;  %v6519_v19 = vld [vmem:[%s8497_s14 + $0x18] sm:$0xff] }
0x1bfd   : > { %8112 = vmatprep.subr.bf16.mxu1 %v8111_v21  ;;  %v8127_v20 = vpack.c.bf16 %v6519_v19, %v6518_v17 }
0x1c00   : > { %8114 = vmatpush3.bf16.msra.mxu1 %v8111_v21  ;;  %v6520_v21 = vld [vmem:[%s8497_s14 + $0x20] sm:$0xff] }
0x1c01   : > { %7878 = vmatprep.subr.mxu1 %v8290_v16 }
0x1c03   : > { %7866 = vmatmul.mubr.msk.f32.vlgmr.msra.gmra.mrb[54].mxu1 %vm966_vm1, %v8772_v50 }
0x1c04   : > { %7880 = vmatprep.mubr.msk.f32.mxu1 %vm8291_vm2, %v8290_v16 }
0x1cc6   : > { %v5618_v62 = vpop.f32.mrb[50].mxu1 }
0x1cc7   : > { %v5545_v40 = vpop.f32.mrb[48].mxu0  ;;  %v7829_v63 = vpop.f32.mrb[51].mxu1 }
0x1cc8   : > { %v7824_v1 = vpop.f32.mrb[49].mxu0  ;;  %7832 = vmatprep.mubr.msk.f32.mxu0 %vm1224_vm3, %v5545_v40 }
0x1cc9   : > { %7833 = vmatmul.mubr.msk.f32.vlgmr.msra.gmra.mrb[34].mxu0 %vm1224_vm3, %v5618_v62 }
0x1cca   : > { %8102 = vmatpush3.bf16.msra.mxu0 %v8099_v60  ;;  %7854 = vmatprep.mubr.msk.f32.mxu0 %vm966_vm1, %v8763_v46 }
0x1ccb   : > { %8104 = vmatprep.subr.bf16.mxu0 %v8103_v0 }
0x1cce   : > { %v7845_v2 = vpop.f32.mrb[52].mxu1  ;;  %8106 = vmatpush3.bf16.msra.mxu0 %v8103_v0 }
0x1ccf   : > { %v5786_v3 = vpop.f32.mrb[53].mxu1  ;;  %7868 = vmatprep.subr.mxu0 %v8290_v16  ;;  %v5792_v13 = vadd.f32 %v7845_v2, %v7134_v10 }
0x1cd0   : > { %v5787_v11 = vadd.f32 %v7134_v10, %v5786_v3 }
0x1cd1   : > { %7855 = vmatmul.mubr.msk.f32.vlgmr.msra.gmra.mrb[50].mxu0 %vm966_vm1, %v8772_v50 }
0x1cd2   : > { %7870 = vmatprep.mubr.msk.f32.mxu0 %vm8291_vm2, %v8290_v16 }
0x1cd6   : > { %v7867_v34 = vpop.f32.mrb[54].mxu1 }
0x1cd7   : > { %v5962_v37 = vpop.f32.mrb[55].mxu1  ;;  %v5968_v39 = vadd.f32 %v7867_v34, %v7150_v36 }
0x1cd8   : > { %v5963_v38 = vadd.f32 %v7150_v36, %v5962_v37  ;;  %v6522_v37 = vld [vmem:[%s8497_s14 + $0x30] sm:$0xff] }
0x1cda   : > { %7879 = vmatpush3.msra.mxu1 %v5963_v38  ;;  %v6523_v38 = vld [vmem:[%s8497_s14 + $0x38] sm:$0xff] }
0x1da4   : > { %v7856_v8 = vpop.f32.mrb[50].mxu0 }
0x1da5   : > { %v5874_v9 = vpop.f32.mrb[51].mxu0  ;;  %v5880_v12 = vadd.f32 %v7856_v8, %v7142_v6  ;;  %v6422_v8 = vld [vmem:[%s8487_s27] sm:$0xff] }
0x1da6   : > { %v5875_v46 = vadd.f32 %v7142_v6, %v5874_v9  ;;  %v6423_v9 = vld [vmem:[%s8487_s27 + $0x8] sm:$0xff] }
0x1da7   : > { %v8115_v10 = vpack.c.bf16 %v6423_v9, %v6422_v8 }
0x1da8   : > { %7869 = vmatpush3.xpose.msk.msra.mxu0 %vm1224_vm3, %v5875_v46  ;;  %v6424_v46 = vld [vmem:[%s8487_s27 + $0x10] sm:$0xff] }
0x1da9   : > { %7873 = vmatprep.subr.mxu0 %v8290_v16  ;;  %8116 = vmatprep.subr.bf16.mxu1 %v8115_v10 }
0x1dab   : > { %7871 = vmatmul.mubr.msk.f32.vlgmr.msra.gmra.mrb[52].mxu0 %vm1224_vm3, %v5787_v11  ;;  %v6425_v11 = vld [vmem:[%s8487_s27 + $0x18] sm:$0xff] }
0x1dac   : > { %7874 = vmatpush3.xpose.msk.msra.mxu0 %vm1224_vm3, %v5880_v12  ;;  %7875 = vmatprep.mubr.msk.f32.mxu0 %vm8291_vm2, %v8290_v16  ;;  %v8119_v12 = vpack.c.bf16 %v6425_v11, %v6424_v46  ;;  %v7170_v46 = vld [vmem:[%s9154_s29] ss:$0 sm:$0xff] }
0x1dad   : > { %7883 = vmatprep.subr.mxu0 %v8290_v16 }
0x1daf   : > { %7876 = vmatmul.mubr.msk.f32.vlgmr.msra.gmra.mrb[54].mxu0 %vm1224_vm3, %v5792_v13  ;;  %v6516_v13 = vld [vmem:[%s8497_s14] sm:$0xff] }
0x1db0   : > { %7885 = vmatprep.mubr.msk.f32.mxu0 %vm8291_vm2, %v8290_v16  ;;  %7884 = vmatpush3.msra.mxu0 %v5968_v39  ;;  %v8123_v18 = vpack.c.bf16 %v6517_v15, %v6516_v13  ;;  %v8135_v39 = vpack.c.bf16 %v6523_v38, %v6522_v37  ;;  %v7171_v13 = vld [vmem:[%s900_s21] ss:$0 sm:$0xff] }
0x1db1   : > { %7888 = vmatprep.subr.mxu0 %v7159_v48 }
0x1e7e   : > { %v6043_v22 = vpop.f32.mrb[52].mxu0 }
0x1e7f   : > { %v7872_v23 = vpop.f32.mrb[53].mxu0  ;;  %v6123_v24 = vsel %vm1224_vm3, %v6043_v22, -inf }
0x1e80   : > { %6124 = vmax.xlane.f32.xlu0 %v6123_v24 }
0x1e82   : > { %v6119_v25 = vpop.f32.mrb[54].mxu0 }
0x1e83   : > { %v7877_v26 = vpop.f32.mrb[55].mxu0  ;;  %v6126_v27 = vsel %vm1224_vm3, %v6119_v25, -inf }
0x1e84   : > { %6127 = vmax.xlane.f32.xlu1 %v6126_v27 }
0x1f0d   : > { %v6125_v28 = vpop.xlane.xlu0 %6124 }
0x1f0e   : > { %v6129_v29 = vsub.f32 %v6043_v22, %v6125_v28  ;;  %v6521_v22 = vld [vmem:[%s8497_s14 + $0x28] sm:$0xff] }
0x1f0f   : > { %v8131_v23 = vpack.c.bf16 %v6521_v22, %v6520_v21 }
0x1f10   : > { %v6131_v30 = vmul.f32 1.442695, %v6129_v29 }
0x1f11   : > { %v6128_v31 = vpop.xlane.xlu1 %6127 }
0x1f12   : > { %8236 = vpow2.f32 %v6131_v30  ;;  %v6130_v50 = vsub.f32 %v6119_v25, %v6128_v31  ;;  %v7162_v31 = vld [vmem:[%s9149_s0] ss:$0 sm:$0xff] }
0x1f14   : > { %v6133_v32 = vmul.f32 1.442695, %v6130_v50 }
0x1f16   : > { %8238 = vpow2.f32 %v6133_v32 }
0x1f1c   : > { %v8237_v16 = vpop.eup %8236 }
0x1f1d   : > { %v6135_v14 = vsel %vm1224_vm3, %v8237_v16, 0.0 }
0x1f1e   : > { %6136 = vadd.xlane.f32.xlu0 %v6135_v14 }
0x1f20   : > { %v8239_v7 = vpop.eup %8238 }
0x1f21   : > { %v6138_v33 = vsel %vm1224_vm3, %v8239_v7, 0.0 }
0x1f22   : > { %6139 = vadd.xlane.f32.xlu1 %v6138_v33 }
0x1fab   : > { %v6137_v41 = vpop.xlane.xlu0 %6136 }
0x1fac   : > { %8240 = vrcp.f32 %v6137_v41  ;;  %v7164_v41 = vld [vmem:[%s908_s5] ss:$0 sm:$0xff] }
0x1faf   : > { %v6140_v42 = vpop.xlane.xlu1 %6139 }
0x1fb0   : > { %8242 = vrcp.f32 %v6140_v42 }
0x1fb6   : > { %v8241_v43 = vpop.eup %8240 }
0x1fb7   : > { %v6143_v44 = vmul.f32 %v8241_v43, %v8237_v16 }
0x1fb9   : > { %7881 = vmatmul.mubr.msk.f32.vlgmr.msra.gmra.mrb[56].mxu1 %vm1224_vm3, %v6143_v44 }
0x1fba   : > { %v8243_v45 = vpop.eup %8242  ;;  %8118 = vmatpush3.bf16.msra.mxu1 %v8115_v10 }
0x1fbb   : > { %v6144_v47 = vmul.f32 %v8243_v45, %v8239_v7  ;;  %8120 = vmatprep.subr.bf16.mxu1 %v8119_v12  ;;  %v7163_v7 = vld [vmem:[%s9151_s24] ss:$0 sm:$0xff] }
0x1fbd   : > { %7886 = vmatmul.mubr.msk.f32.vlgmr.msra.gmra.mrb[56].mxu0 %vm1224_vm3, %v6144_v47 }
0x1fbe   : > { %7889 = vmatpush3.msra.mxu0 %v7159_v48  ;;  %8122 = vmatpush3.bf16.msra.mxu1 %v8119_v12 }
0x1fbf   : > { %8124 = vmatprep.subr.bf16.mxu0 %v8123_v18 }
0x208c   : > { %v6214_v49 = vpop.f32.mrb[56].mxu1 }
0x208d   : > { %v7882_v51 = vpop.f32.mrb[57].mxu1  ;;  %7890 = vmatprep.mubr.msk.f32.mxu0 %vm1224_vm3, %v6214_v49  ;;  %v7167_v49 = vld [vmem:[%s916_s19] ss:$0 sm:$0xff] }
0x2090   : > { %v6287_v52 = vpop.f32.mrb[56].mxu0 }
0x2091   : > { %v7887_v53 = vpop.f32.mrb[57].mxu0  ;;  %7891 = vmatmul.mubr.msk.f32.vlgmr.msra.gmra.mrb[34].mxu0 %vm1224_vm3, %v6287_v52 }
0x2092   : > { %8126 = vmatpush3.bf16.msra.mxu0 %v8123_v18 }
0x2093   : > { %8128 = vmatprep.subr.bf16.mxu0 %v8127_v20 }
0x2096   : > { %8130 = vmatpush3.bf16.msra.mxu0 %v8127_v20 }
0x2097   : > { %8132 = vmatprep.subr.bf16.mxu0 %v8131_v23 }
0x209a   : > { %8134 = vmatpush3.bf16.msra.mxu0 %v8131_v23 }
0x209b   : > { %8136 = vmatprep.subr.bf16.mxu0 %v8135_v39 }
0x209e   : > { %8138 = vmatpush3.bf16.msra.mxu0 %v8135_v39 }
0x2164   : > { %v7892_v55 = vpop.f32.mrb[34].mxu0 }
0x2165   : > { %v8141_v56 = vadd.f32 %v7892_v55, %v7035_v54  ;;  %v6365_v57 = vpop.f32.mrb[35].mxu0 }
0x2166   : > { %v8142_v58 = vadd.f32 %v7035_v54, %v6365_v57 }
0x2167   : > { %v6377_v59 = vadd.f32 %v8141_v56, %v8795_v5 }
0x2168   : > { %v6376_v60 = vadd.f32 %v8142_v58, %v8793_v4 }
0x2169   : > { %v6381_v35 = vsel %vm966_vm1, %v6377_v59, 0.0 }
0x216a   : > { %6382 = vadd.xlane.f32.xlu1 %v6381_v35  ;;  %v6378_v61 = vsel %vm966_vm1, %v6376_v60, 0.0 }
0x216b   : > { %6379 = vadd.xlane.f32.xlu0 %v6378_v61 }
0x21f7   : > { %v6383_v62 = vpop.xlane.xlu1 %6382 }
0x21f8   : > { %v6385_v40 = vmul.f32 0.03125, %v6383_v62  ;;  %v6380_v63 = vpop.xlane.xlu0 %6379 }
0x21f9   : > { %v6384_v0 = vmul.f32 0.03125, %v6380_v63 }
0x21fa   : > { %v6387_v1 = vsub.f32 %v6377_v59, %v6385_v40 }
0x21fb   : > { %v6386_v2 = vsub.f32 %v6376_v60, %v6384_v0 }
0x21fc   : > { %v6389_v3 = vmul.f32 %v6387_v1, %v6387_v1 }
0x21fd   : > { %v6388_v5 = vmul.f32 %v6386_v2, %v6386_v2 }
0x21fe   : > { %v6393_v4 = vsel %vm966_vm1, %v6389_v3, 0.0 }
0x21ff   : > { %6394 = vadd.xlane.f32.xlu1 %v6393_v4  ;;  %v6390_v6 = vsel %vm966_vm1, %v6388_v5, 0.0 }
0x2200   : > { %6391 = vadd.xlane.f32.xlu0 %v6390_v6 }
0x228c   : > { %v6395_v24 = vpop.xlane.xlu1 %6394 }
0x228d   : > { %v6397_v25 = vmul.f32 0.03125, %v6395_v24  ;;  %v6392_v26 = vpop.xlane.xlu0 %6391 }
0x228e   : > { %v6396_v27 = vmul.f32 0.03125, %v6392_v26 }
0x228f   : > { %v6399_v28 = vadd.f32 1e-05, %v6397_v25 }
0x2290   : > { %v6398_v29 = vadd.f32 1e-05, %v6396_v27 }
0x2291   : > { %8244 = vrsqrt.f32 %v6399_v28 }
0x2292   : > { %8246 = vrsqrt.f32 %v6398_v29 }
0x229b   : > { %v8245_v30 = vpop.eup %8244 }
0x229c   : > { %v8247_v50 = vpop.eup %8246  ;;  %v6403_v32 = vmul.f32 %v8245_v30, %v6387_v1 }
0x229d   : > { %v6402_v16 = vmul.f32 %v8247_v50, %v6386_v2 }
0x229e   : > { %v6412_v14 = vmul.f32 %v7162_v31, %v6403_v32 }
0x229f   : > { %v6411_v33 = vmul.f32 %v7162_v31, %v6402_v16 }
0x22a0   : > { %v6421_v36 = vadd.f32 %v7163_v7, %v6412_v14 }
0x22a1   : > { %v6420_v34 = vadd.f32 %v7163_v7, %v6411_v33 }
0x22a3   : > { %7901 = vmatprep.mubr.msk.f32.mxu1 %vm966_vm1, %v6420_v34 }
0x22a4   : > { %7902 = vmatmul.mubr.msk.f32.vlgmr.msra.gmra.mrb[58].mxu1 %vm966_vm1, %v6421_v36 }
0x2377   : > { %v7903_v42 = vpop.f32.mrb[58].mxu1 }
0x2378   : > { %v6511_v43 = vadd.f32 %v7903_v42, %v7164_v41  ;;  %v6505_v44 = vpop.f32.mrb[59].mxu1 }
0x2379   : > { %v6506_v45 = vadd.f32 %v7164_v41, %v6505_v44 }
0x237a   : > { %v6515_v48 = vmax.f32 %v6511_v43, 0.0 }
0x237b   : > { %v6514_v47 = vmax.f32 %v6506_v45, 0.0 }
0x237d   : > { %7920 = vmatprep.mubr.msk.f32.mxu0 %vm6531_vm4, %v6514_v47 }
0x237e   : > { %7921 = vmatmul.mubr.msk.f32.vlgmr.msra.gmra.mrb[58].mxu0 %vm6531_vm4, %v6515_v48 }
0x2451   : > { %v7922_v51 = vpop.f32.mrb[58].mxu0 }
0x2452   : > { %v6610_v52 = vadd.f32 %v7922_v51, %v7167_v49  ;;  %v6604_v53 = vpop.f32.mrb[59].mxu0 }
0x2453   : > { %v6605_v54 = vadd.f32 %v7167_v49, %v6604_v53 }
0x2454   : > { %v6614_v55 = vadd.f32 %v6610_v52, %v6421_v36 }
0x2455   : > { %v6613_v56 = vadd.f32 %v6605_v54, %v6420_v34 }
0x2456   : > { %v6618_v57 = vsel %vm966_vm1, %v6614_v55, 0.0 }
0x2457   : > { %6619 = vadd.xlane.f32.xlu1 %v6618_v57  ;;  %v6615_v58 = vsel %vm966_vm1, %v6613_v56, 0.0 }
0x2458   : > { %6616 = vadd.xlane.f32.xlu0 %v6615_v58 }
0x24e4   : > { %v6620_v59 = vpop.xlane.xlu1 %6619 }
0x24e5   : > { %v6622_v60 = vmul.f32 0.03125, %v6620_v59  ;;  %v6617_v35 = vpop.xlane.xlu0 %6616 }
0x24e6   : > { %v6621_v61 = vmul.f32 0.03125, %v6617_v35 }
0x24e7   : > { %v6624_v62 = vsub.f32 %v6614_v55, %v6622_v60 }
0x24e8   : > { %v6623_v40 = vsub.f32 %v6613_v56, %v6621_v61 }
0x24e9   : > { %v6626_v63 = vmul.f32 %v6624_v62, %v6624_v62 }
0x24ea   : > { %v6625_v0 = vmul.f32 %v6623_v40, %v6623_v40 }
0x24eb   : > { %v6630_v1 = vsel %vm966_vm1, %v6626_v63, 0.0 }
0x24ec   : > { %6631 = vadd.xlane.f32.xlu1 %v6630_v1  ;;  %v6627_v2 = vsel %vm966_vm1, %v6625_v0, 0.0 }
0x24ed   : > { %6628 = vadd.xlane.f32.xlu0 %v6627_v2 }
0x2579   : > { %v6632_v3 = vpop.xlane.xlu1 %6631 }
0x257a   : > { %v6634_v5 = vmul.f32 0.03125, %v6632_v3  ;;  %v6629_v4 = vpop.xlane.xlu0 %6628 }
0x257b   : > { %v6633_v6 = vmul.f32 0.03125, %v6629_v4 }
0x257c   : > { %v6636_v8 = vadd.f32 1e-05, %v6634_v5 }
0x257d   : > { %v6635_v9 = vadd.f32 1e-05, %v6633_v6 }
0x257e   : > { %8248 = vrsqrt.f32 %v6636_v8 }
0x257f   : > { %8250 = vrsqrt.f32 %v6635_v9 }
0x2588   : > { %v8249_v10 = vpop.eup %8248 }
0x2589   : > { %v8251_v11 = vpop.eup %8250  ;;  %v6640_v12 = vmul.f32 %v8249_v10, %v6624_v62 }
0x258a   : > { %v6639_v15 = vmul.f32 %v8251_v11, %v6623_v40  ;;  %6664 = sbr.rel (%p7172_p5) target bundleno = 9617 (0x2591), region = 112 }
0x258b   : > { %v6649_v17 = vmul.f32 %v7170_v46, %v6640_v12 }
0x258c   : > { %v6648_v18 = vmul.f32 %v7170_v46, %v6639_v15 }
0x258d   : > { %v6658_v19 = vadd.f32 %v7171_v13, %v6649_v17 }
0x258e   : > { %v6657_v20 = vadd.f32 %v7171_v13, %v6648_v18 }
0x258f   : > { %6660 = vst.msk [vmem:[#allocation2 + $0x8] sm:$0xff] %vm966_vm1, %v6658_v19  ;;  %6666 = vst.msk [vmem:[#allocation3 + $0x8] sm:$0xff] (!%p7172_p5), %vm966_vm1, %v6658_v19 }
0x2590   : > { %6659 = vst.msk [vmem:[#allocation2] sm:$0xff] %vm966_vm1, %v6657_v20  ;;  %6665 = vst.msk [vmem:[#allocation3] sm:$0xff] (!%p7172_p5), %vm966_vm1, %v6657_v20 }
0x2591 PF: > { %s9156_s3 = sld [smem:[#allocation7_spill]]  ;;  %s8292_s26 = smov [#allocation3]  }
0x2592   : > { %s6673_s21 = sshll.u32 %s8292_s26, 4  ;;  %s6674_s21 = int_to_ptr.vmem [resolvable:$true] %s6673_s21 }
0x2593   : > { %s8252_s27 = scalar_lea.vmem %s6674_s21, 256  ;;  %p8259_p10 = scmp.lt.s32.totalorder %s6674_s21, %s6674_s21 }
0x2594   : > { %p8253_p7 = scmp.ne.s32.totalorder %s6674_s21, %s8252_s27  ;;  %p8260_p11 = scmp.lt.s32.totalorder %s8252_s27, %s8252_s27 }
0x2596   : > { %p8261_p12 = por %p8260_p11, %p8259_p10 }
0x2597   : > { %p8161_p6 = scmp.eq.s32.totalorder %s9156_s3, 1 }
0x2599   : > { %p8254_p8 = pnand %p8253_p7, %p8161_p6 }
0x259b   : > { %p8255_p9 = pneg %p8254_p8 }
0x259d   : > { %p8262_p13 = pnand %p8261_p12, %p8255_p9 }
0x259f   : > { %8265 = shalt.err (!%p8262_p13)
}
0x25a0   : > { %s9157_s30 = sld [smem:[#allocation24_spill]] }
0x25a6   : > { %s8266_s7 = scalar_lea.hbm %s9157_s30, 256 }
0x25a7   : > { %p8267_p0 = scmp.ne.s32.totalorder %s9157_s30, %s8266_s7  ;;  %p8272_p3 = scmp.lt.u32.totalorder %s8266_s7, %s9157_s30 }
0x25a9   : > { %p8268_p1 = pnand %p8267_p0, %p8161_p6 }
0x25ab   : > { %p8269_p2 = pneg %p8268_p1 }
0x25ad   : > { %p8274_p4 = pnand %p8272_p3, %p8269_p2 }
0x25af   : > { %8277 = shalt.err (!%p8274_p4)
}
0x25b0   : > { %s8293_s1 = smov 128   ;;  %s8294_s2 = smov 8  }
0x25b1   : > { %8158 = dma.vmem_to_hbm [thread:$0]  (%p8161_p6), %s6674_s21, 256, %s9157_s30, [#allocation4], %s8293_s1, %s8293_s1, %s8294_s2  }
0x25b2   : > { %8283 = dma.done.wait (%p8161_p6), [#allocation4], 256  }
0x25b3   : > { %8285 = vsyncadd (%p8161_p6), [#allocation4], 4294967040 }
0x25b4 PF: > { %s9158_s5 = sld [smem:[#allocation6_spill]] }
0x25ba   : > { %s32_s2 = sadd.s32 1, %s9158_s5  }
0x25bb   : > { %p29_p5 = scmp.ge.s32.totalorder %s32_s2, 4  }
0x25bd   :  { %31 = sbr.rel (!%p29_p5) target bundleno = 16 (0x10), region = 240 }
0x25c4   :  { %6689 = vsyncpa [#allocation4], 1 }
0x25c5   :  { %6691 = vsyncpa [#allocation4 + $0x1], 1 }

</bundles_post_ra>
